<compile_context>
chip_gen: v7x
topology: tpu7x:2x2x1
jax: 0.10.0
libtpu: 0.0.40
codegen_flags: <defaults>
</compile_context>

<pallas_src>
import functools

import jax
import jax.numpy as jnp
from jax.experimental import pallas as pl
from jax.experimental.pallas import tpu as pltpu

FOV = 7            # module default field of view
NEG_SLOPE = 0.01   # nn.LeakyReLU default negative slope


def _round_up(x, m):
    return ((x + m - 1) // m) * m


# ---------------------------------------------------------------------------
# Pallas kernel: normalize -> conv-net-as-bf16-matmuls -> denormalize.
# Layout: features on the sublane axis, patch index on the 128-lane axis.
# ---------------------------------------------------------------------------
def bayerlog_kernel(x_ref, a1_ref, b1_ref, a2_ref, b2_ref, a3_ref, b3_ref,
                    a4_ref, b4_ref, o_ref, *, ff):
    # x_ref : (200, TN)  patch features (f32), feature index = c*ff + u*fov + v,
    #                    rows 196..199 are zero padding (a1 has zero columns there)
    # a*_ref: dense conv matrices in bf16 (upsample folded into a3)
    # b*_ref: per-(channel, position) biases, f32, shape (F, 1)
    # o_ref : (16, TN)   rows 12..15 are padding
    x = x_ref[...]

    # ---- normalization, strength-reduced:
    #      m = mean(log(green+1)); h = exp(log(x+1) - m) - 1 == (x+1)*exp(-m) - 1
    lg0 = jnp.log(x[0 * ff:1 * ff, :] + 1.0)          # green #1 (rows 0:49)
    lg3 = jnp.log(x[3 * ff:4 * ff, :] + 1.0)          # green #2 (rows 147:196)
    m = 0.5 * (jnp.mean(lg0, axis=0, keepdims=True) +
               jnp.mean(lg3, axis=0, keepdims=True))  # (1, TN)
    inv_em = jnp.exp(-m)
    em = jnp.exp(m)
    h = ((x + 1.0) * inv_em - 1.0).astype(jnp.bfloat16)

    # ---- conv net as dense bf16 matmuls with f32 accumulation (single MXU pass)
    h = jnp.dot(a1_ref[...], h, preferred_element_type=jnp.float32) + b1_ref[...]
    h = jnp.maximum(h, NEG_SLOPE * h).astype(jnp.bfloat16)
    h = jnp.dot(a2_ref[...], h, preferred_element_type=jnp.float32) + b2_ref[...]
    h = jnp.maximum(h, NEG_SLOPE * h).astype(jnp.bfloat16)
    h = jnp.dot(a3_ref[...], h, preferred_element_type=jnp.float32) + b3_ref[...]
    h = jnp.maximum(h, NEG_SLOPE * h).astype(jnp.bfloat16)
    y = jnp.dot(a4_ref[...], h, preferred_element_type=jnp.float32) + b4_ref[...]

    # ---- de-normalization, strength-reduced:
    #      exp(log(clamp(y)+1) + m) - 1 == (clamp(y)+1)*exp(m) - 1
    o_ref[...] = (jnp.maximum(y, -0.5) + 1.0) * em - 1.0


# ---------------------------------------------------------------------------
# Wrapper helpers (one-time weight folding + unfold-chain glue).
# ---------------------------------------------------------------------------
def _conv_as_matrix(w, hi, wi):
    """Valid 2-D conv as a dense matrix A:  (A @ x.reshape(cin*hi*wi)) equals
    conv2d_valid(x, w).reshape(cout*ho*wo).  Built with gathers/masks only."""
    cout, cin, k, _ = w.shape
    ho, wo = hi - k + 1, wi - k + 1
    dy = jnp.arange(hi)[None, :] - jnp.arange(ho)[:, None]        # (ho, hi)
    dx = jnp.arange(wi)[None, :] - jnp.arange(wo)[:, None]        # (wo, wi)
    valid = (dy >= 0) & (dy < k)
    validx = (dx >= 0) & (dx < k)
    a = w[:, :, jnp.clip(dy, 0, k - 1)[:, :, None, None],
             jnp.clip(dx, 0, k - 1)[None, None, :, :]]            # (o,c,ho,hi,wo,wi)
    mask = (valid[:, :, None, None] & validx[None, None, :, :])[None, None]
    a = jnp.where(mask, a, 0.0)
    a = jnp.transpose(a, (0, 2, 4, 1, 3, 5))                      # (o,ho,wo,c,hi,wi)
    return a.reshape(cout * ho * wo, cin * hi * wi)


def _fold_upsample2(a, cin, s):
    """Fold a nearest 2x upsample (s -> 2s) into conv matrix `a` whose input
    was (cin, 2s, 2s); returns a' acting directly on (cin, s, s)."""
    rows = a.shape[0]
    a = a.reshape(rows, cin, s, 2, s, 2)
    return a.sum(axis=(3, 5)).reshape(rows, cin * s * s)


def _expand_bias(b, n_pos):
    """Per-channel bias -> per-(channel, position) bias column, shape (F, 1)."""
    return jnp.repeat(b, n_pos).reshape(-1, 1)


def _bayer_patch_slab(mosaic, fov):
    """Mirror of the module's unfold chain, emitted FEATURE-MAJOR.

    Returns a slab of shape (4*fov*fov, N), N = bs*hp*wp, with
      feature index = c*fov*fov + u*fov + v   (c = col_off*2 + row_off of quad,
                                               u = column offset, v = row offset)
      patch index   = (b*hp + y)*wp + x
    exactly matching the permuted torch unfolds; no (N,F)->(F,N) HBM transpose."""
    bs, _, h2, w2 = mosaic.shape
    hh, ww = h2 // 2, w2 // 2
    gray = mosaic.sum(axis=1)                                     # (bs, 2H, 2W)
    quads = gray.reshape(bs, hh, 2, ww, 2)                        # [b, y, e, x, a]
    color = jnp.transpose(quads, (0, 4, 2, 1, 3)).reshape(bs, 4, hh, ww)
    hp, wp = hh - fov + 1, ww - fov + 1
    ridx = jnp.arange(hp)[:, None] + jnp.arange(fov)[None, :]     # rows    (y+v)
    cidx = jnp.arange(wp)[:, None] + jnp.arange(fov)[None, :]     # columns (x+u)
    t = color[:, :, ridx, :]                                      # (b,c,y,v,W)
    t = t[:, :, :, :, cidx]                                       # (b,c,y,v,x,u)
    slab = jnp.transpose(t, (1, 5, 3, 0, 2, 4))                   # (c,u,v,b,y,x)
    return slab.reshape(4 * fov * fov, bs * hp * wp), (bs, hp, wp)


# ---------------------------------------------------------------------------
# Forward pass (Pallas-backed).
# ---------------------------------------------------------------------------
def bayerlog_forward(mosaic, params, *, fov=FOV, tn=1024):
    # tn = patches per grid step (lane-axis tile, multiple of 128).  Capped so
    # the 1-D "parallel" grid has >= 2 steps (v7x megacore); VMEM at tn=1024 is
    # ~9 MB, safe under every generation's scoped default.
    w1, b1 = params["w1"], params["b1"]
    w2, b2 = params["w2"], params["b2"]
    w3, b3 = params["w3"], params["b3"]
    w4, b4 = params["w4"], params["b4"]

    slab, (bs, hp, wp) = _bayer_patch_slab(mosaic, fov)           # (196, N) f32
    n = bs * hp * wp
    f_in = 4 * fov * fov
    f_in_pad = _round_up(f_in, 8)                                 # 200

    half = _round_up(max((n + 1) // 2, 1), 128)
    tn_eff = max(128, min(_round_up(tn, 128), half))
    n_pad = _round_up(n, tn_eff)
    x_slab = jnp.pad(slab, ((0, f_in_pad - f_in), (0, n_pad - n)))

    # Fold the conv net into 4 dense matrices; spatial: 7 ->5 ->3 -(x2)-> 6 ->4 ->2.
    s1, s2 = fov - 2, fov - 4
    a1 = _conv_as_matrix(w1, fov, fov)                            # (400, 196)
    a2 = _conv_as_matrix(w2, s1, s1)                              # (144, 400)
    a3 = _fold_upsample2(_conv_as_matrix(w3, 2 * s2, 2 * s2), w3.shape[1], s2)  # (512,144)
    a4 = _conv_as_matrix(w4, 2 * s2 - 2, 2 * s2 - 2)              # (12, 512)
    f_out = a4.shape[0]                                           # 12 = 3*2*2
    f_out_pad = _round_up(f_out, 8)                               # 16

    # Pad K of a1 (196->200) with zero cols, rows of a4 (12->16) with zero rows,
    # then cast the big operands to bf16 for single-pass MXU matmuls.
    a1 = jnp.pad(a1, ((0, 0), (0, f_in_pad - f_in)))
    a4 = jnp.pad(a4, ((0, f_out_pad - f_out), (0, 0)))
    b1e = _expand_bias(b1, s1 * s1)
    b2e = _expand_bias(b2, s2 * s2)
    b3e = _expand_bias(b3, (2 * s2 - 2) ** 2)
    b4e = jnp.pad(_expand_bias(b4, (2 * s2 - 4) ** 2),
                  ((0, f_out_pad - f_out), (0, 0)))
    a1, a2, a3, a4 = (a.astype(jnp.bfloat16) for a in (a1, a2, a3, a4))

    const = lambda shape: pl.BlockSpec(shape, lambda i: (0, 0))   # fetched once
    out_slab = pl.pallas_call(
        functools.partial(bayerlog_kernel, ff=fov * fov),
        out_shape=jax.ShapeDtypeStruct((f_out_pad, n_pad), jnp.float32),
        grid_spec=pltpu.PrefetchScalarGridSpec(
            num_scalar_prefetch=0,
            grid=(n_pad // tn_eff,),
            in_specs=[
                pl.BlockSpec((f_in_pad, tn_eff), lambda i: (0, i)),  # patch stream
                const(a1.shape), const(b1e.shape),
                const(a2.shape), const(b2e.shape),
                const(a3.shape), const(b3e.shape),
                const(a4.shape), const(b4e.shape),
            ],
            out_specs=pl.BlockSpec((f_out_pad, tn_eff), lambda i: (0, i)),
        ),
        compiler_params=pltpu.CompilerParams(
            dimension_semantics=("parallel",)),
    )(x_slab, a1, b1e, a2, b2e, a3, b3e, a4, b4e)

    # (16, N_pad) -> (bs, 3, 2*hp, 2*wp), mirroring the module's view/permute.
    out = out_slab[:f_out, :n].T.reshape(bs, hp, wp, 3, 2, 2)
    out = jnp.transpose(out, (0, 3, 1, 4, 2, 5)).reshape(bs, 3, 2 * hp, 2 * wp)
    return out


# ---------------------------------------------------------------------------
# Pure-JAX reference (direct transcription of BayerLog.forward).
# ---------------------------------------------------------------------------
def _leaky(x):
    return jnp.maximum(x, NEG_SLOPE * x)


def _conv_valid(x, w, b):
    y = jax.lax.conv_general_dilated(
        x, w, window_strides=(1, 1), padding="VALID",
        dimension_numbers=("NCHW", "OIHW", "NCHW"),
        precision=jax.lax.Precision.HIGHEST)
    return y + b[None, :, None, None]


def bayerlog_reference(mosaic, params, *, fov=FOV):
    slab, (bs, hp, wp) = _bayer_patch_slab(mosaic, fov)
    n = bs * hp * wp
    patches = slab.T.reshape(n, 4, fov, fov)
    in_f = jnp.log(patches.reshape(n, 4, fov * fov) + 1.0)
    mean_f = in_f.mean(axis=2, keepdims=True)                     # (N, 4, 1)
    m = 0.5 * (mean_f[:, 0] + mean_f[:, 3])                       # (N, 1)
    in_f = in_f - m[:, None, :]
    in_f = (jnp.exp(in_f) - 1.0).reshape(n, 4, fov, fov)

    h = _leaky(_conv_valid(in_f, params["w1"], params["b1"]))
    h = _leaky(_conv_valid(h, params["w2"], params["b2"]))
    h = jnp.repeat(jnp.repeat(h, 2, axis=2), 2, axis=3)           # nearest x2
    h = _leaky(_conv_valid(h, params["w3"], params["b3"]))
    y = _conv_valid(h, params["w4"], params["b4"])                # (N, 3, 2, 2)

    y = jnp.log(jnp.maximum(y, -0.5) + 1.0).reshape(n, 3, 4)
    y = y + m[:, :, None]
    y = (jnp.exp(y) - 1.0).reshape(bs, hp, wp, 3, 2, 2)
    return jnp.transpose(y, (0, 3, 1, 4, 2, 5)).reshape(bs, 3, 2 * hp, 2 * wp)


if __name__ == "__main__":
    key = jax.random.PRNGKey(0)
    keys = jax.random.split(key, 9)

    # Small, deterministic example: 32x32 RGB mosaic -> 16x16 quads -> 10x10
    # patches per image -> N = 200 patches (tile capped to 128 -> 2 grid steps).
    bs, full = 2, 32
    mosaic = jax.random.uniform(keys[0], (bs, 3, full, full), dtype=jnp.float32)

    def conv_init(kw, kb, cout, cin, k):
        return (jax.random.normal(kw, (cout, cin, k, k), jnp.float32) * 0.1,
                jax.random.normal(kb, (cout,), jnp.float32) * 0.1)

    w1, b1 = conv_init(keys[1], keys[2], 16, 4, 3)
    w2, b2 = conv_init(keys[3], keys[4], 16, 16, 3)
    w3, b3 = conv_init(keys[5], keys[6], 32, 16, 3)
    w4, b4 = conv_init(keys[7], keys[8], 3, 32, 3)
    params = dict(w1=w1, b1=b1, w2=w2, b2=b2, w3=w3, b3=b3, w4=w4, b4=b4)

    out = jax.jit(bayerlog_forward)(mosaic, params)
    out = jax.block_until_ready(out)

    ref = bayerlog_reference(mosaic, params)
    hp = full // 2 - FOV + 1
    assert out.shape == (bs, 3, 2 * hp, 2 * hp), out.shape
    # The kernel now runs its four folded matmuls with bf16 operands (f32 MXU
    # accumulation) per the perf review, so expect ~1-2% relative error vs the
    # HIGHEST-precision conv reference; compare against the output scale.
    # Semantic bugs show as errors on the order of the scale itself.
    scale = float(jnp.abs(ref).max())
    max_err = float(jnp.abs(out - ref).max())
    assert max_err <= 0.05 * max(1.0, scale), (max_err, scale)
    assert bool(jnp.isfinite(out).all())

    print("KERNEL_OK")
</pallas_src>

<mosaic_0001>
module attributes {stable_mosaic.version = 11 : i64} {
  func.func @bayerlog_kernel(%arg0: i32, %arg1: memref<200x128xf32, #tpu.memory_space<vmem>>, %arg2: memref<400x200xbf16, #tpu.memory_space<vmem>>, %arg3: memref<400x1xf32, #tpu.memory_space<vmem>>, %arg4: memref<144x400xbf16, #tpu.memory_space<vmem>>, %arg5: memref<144x1xf32, #tpu.memory_space<vmem>>, %arg6: memref<512x144xbf16, #tpu.memory_space<vmem>>, %arg7: memref<512x1xf32, #tpu.memory_space<vmem>>, %arg8: memref<16x512xbf16, #tpu.memory_space<vmem>>, %arg9: memref<16x1xf32, #tpu.memory_space<vmem>>, %arg10: memref<16x128xf32, #tpu.memory_space<vmem>>) attributes {dimension_semantics = [#tpu.dimension_semantics<parallel>], iteration_bounds = array<i64: 2>, scalar_prefetch = 0 : i64, scratch_operands = 0 : i64, tpu.core_type = #tpu.core_type<tc>, window_params = [{transform_indices = @transform_0, window_bounds = array<i64: 200, 128>}, {pipeline_mode = #tpu.pipeline_mode<synchronous>, transform_indices = @transform_1, window_bounds = array<i64: 400, 200>}, {pipeline_mode = #tpu.pipeline_mode<synchronous>, transform_indices = @transform_2, window_bounds = array<i64: 400, 1>}, {pipeline_mode = #tpu.pipeline_mode<synchronous>, transform_indices = @transform_3, window_bounds = array<i64: 144, 400>}, {pipeline_mode = #tpu.pipeline_mode<synchronous>, transform_indices = @transform_4, window_bounds = array<i64: 144, 1>}, {pipeline_mode = #tpu.pipeline_mode<synchronous>, transform_indices = @transform_5, window_bounds = array<i64: 512, 144>}, {pipeline_mode = #tpu.pipeline_mode<synchronous>, transform_indices = @transform_6, window_bounds = array<i64: 512, 1>}, {pipeline_mode = #tpu.pipeline_mode<synchronous>, transform_indices = @transform_7, window_bounds = array<i64: 16, 512>}, {pipeline_mode = #tpu.pipeline_mode<synchronous>, transform_indices = @transform_8, window_bounds = array<i64: 16, 1>}, {transform_indices = @transform_9, window_bounds = array<i64: 16, 128>}]} {
    %c0 = arith.constant 0 : index
    %c0_0 = arith.constant 0 : index
    %0 = vector.load %arg1[%c0, %c0_0] : memref<200x128xf32, #tpu.memory_space<vmem>>, vector<200x128xf32>
    %1 = vector.extract_strided_slice %0 {offsets = [0, 0], sizes = [49, 128], strides = [1, 1]} : vector<200x128xf32> to vector<49x128xf32>
    %cst = arith.constant 1.000000e+00 : f32
    %2 = vector.broadcast %cst : f32 to vector<49x128xf32>
    %3 = arith.addf %1, %2 : vector<49x128xf32>
    %4 = math.log %3 : vector<49x128xf32>
    %5 = vector.extract_strided_slice %0 {offsets = [147, 0], sizes = [49, 128], strides = [1, 1]} : vector<200x128xf32> to vector<49x128xf32>
    %cst_1 = arith.constant 1.000000e+00 : f32
    %6 = vector.broadcast %cst_1 : f32 to vector<49x128xf32>
    %7 = arith.addf %5, %6 : vector<49x128xf32>
    %8 = math.log %7 : vector<49x128xf32>
    %cst_2 = arith.constant dense<0.000000e+00> : vector<128xf32>
    %9 = vector.multi_reduction <add>, %4, %cst_2 [0] : vector<49x128xf32> to vector<128xf32>
    %10 = vector.shape_cast %9 : vector<128xf32> to vector<1x128xf32>
    %cst_3 = arith.constant 4.900000e+01 : f32
    %11 = vector.broadcast %cst_3 : f32 to vector<1x128xf32>
    %12 = arith.divf %10, %11 : vector<1x128xf32>
    %cst_4 = arith.constant dense<0.000000e+00> : vector<128xf32>
    %13 = vector.multi_reduction <add>, %8, %cst_4 [0] : vector<49x128xf32> to vector<128xf32>
    %14 = vector.shape_cast %13 : vector<128xf32> to vector<1x128xf32>
    %cst_5 = arith.constant 4.900000e+01 : f32
    %15 = vector.broadcast %cst_5 : f32 to vector<1x128xf32>
    %16 = arith.divf %14, %15 : vector<1x128xf32>
    %17 = arith.addf %12, %16 : vector<1x128xf32>
    %cst_6 = arith.constant 5.000000e-01 : f32
    %18 = vector.broadcast %cst_6 : f32 to vector<1x128xf32>
    %19 = arith.mulf %18, %17 : vector<1x128xf32>
    %cst_7 = arith.constant 0.000000e+00 : f32
    %20 = vector.broadcast %cst_7 : f32 to vector<1x128xf32>
    %21 = arith.subf %20, %19 : vector<1x128xf32>
    %22 = math.exp %21 : vector<1x128xf32>
    %23 = math.exp %19 : vector<1x128xf32>
    %cst_8 = arith.constant 1.000000e+00 : f32
    %24 = vector.broadcast %cst_8 : f32 to vector<200x128xf32>
    %25 = arith.addf %0, %24 : vector<200x128xf32>
    %26 = vector.broadcast %22 : vector<1x128xf32> to vector<200x128xf32>
    %27 = arith.mulf %25, %26 : vector<200x128xf32>
    %cst_9 = arith.constant 1.000000e+00 : f32
    %28 = vector.broadcast %cst_9 : f32 to vector<200x128xf32>
    %29 = arith.subf %27, %28 : vector<200x128xf32>
    %30 = arith.truncf %29 : vector<200x128xf32> to vector<200x128xbf16>
    %c0_10 = arith.constant 0 : index
    %c0_11 = arith.constant 0 : index
    %31 = vector.load %arg2[%c0_10, %c0_11] : memref<400x200xbf16, #tpu.memory_space<vmem>>, vector<400x200xbf16>
    %cst_12 = arith.constant dense<0.000000e+00> : vector<400x128xf32>
    %32 = tpu.matmul %31, %30, %cst_12 {dimension_numbers = #tpu.dot_dimension_numbers<[1], [0], [0], [1], [0, 0, 1, 1], [], []>} : vector<400x200xbf16>, vector<200x128xbf16>, vector<400x128xf32> -> vector<400x128xf32>
    %c0_13 = arith.constant 0 : index
    %c0_14 = arith.constant 0 : index
    %33 = vector.load %arg3[%c0_13, %c0_14] : memref<400x1xf32, #tpu.memory_space<vmem>>, vector<400x1xf32>
    %34 = vector.broadcast %33 : vector<400x1xf32> to vector<400x128xf32>
    %35 = arith.addf %32, %34 : vector<400x128xf32>
    %cst_15 = arith.constant 0.00999999977 : f32
    %36 = vector.broadcast %cst_15 : f32 to vector<400x128xf32>
    %37 = arith.mulf %36, %35 : vector<400x128xf32>
    %38 = arith.maximumf %35, %37 : vector<400x128xf32>
    %39 = arith.truncf %38 : vector<400x128xf32> to vector<400x128xbf16>
    %c0_16 = arith.constant 0 : index
    %c0_17 = arith.constant 0 : index
    %40 = vector.load %arg4[%c0_16, %c0_17] : memref<144x400xbf16, #tpu.memory_space<vmem>>, vector<144x400xbf16>
    %cst_18 = arith.constant dense<0.000000e+00> : vector<144x128xf32>
    %41 = tpu.matmul %40, %39, %cst_18 {dimension_numbers = #tpu.dot_dimension_numbers<[1], [0], [0], [1], [0, 0, 1, 1], [], []>} : vector<144x400xbf16>, vector<400x128xbf16>, vector<144x128xf32> -> vector<144x128xf32>
    %c0_19 = arith.constant 0 : index
    %c0_20 = arith.constant 0 : index
    %42 = vector.load %arg5[%c0_19, %c0_20] : memref<144x1xf32, #tpu.memory_space<vmem>>, vector<144x1xf32>
    %43 = vector.broadcast %42 : vector<144x1xf32> to vector<144x128xf32>
    %44 = arith.addf %41, %43 : vector<144x128xf32>
    %cst_21 = arith.constant 0.00999999977 : f32
    %45 = vector.broadcast %cst_21 : f32 to vector<144x128xf32>
    %46 = arith.mulf %45, %44 : vector<144x128xf32>
    %47 = arith.maximumf %44, %46 : vector<144x128xf32>
    %48 = arith.truncf %47 : vector<144x128xf32> to vector<144x128xbf16>
    %c0_22 = arith.constant 0 : index
    %c0_23 = arith.constant 0 : index
    %49 = vector.load %arg6[%c0_22, %c0_23] : memref<512x144xbf16, #tpu.memory_space<vmem>>, vector<512x144xbf16>
    %cst_24 = arith.constant dense<0.000000e+00> : vector<512x128xf32>
    %50 = tpu.matmul %49, %48, %cst_24 {dimension_numbers = #tpu.dot_dimension_numbers<[1], [0], [0], [1], [0, 0, 1, 1], [], []>} : vector<512x144xbf16>, vector<144x128xbf16>, vector<512x128xf32> -> vector<512x128xf32>
    %c0_25 = arith.constant 0 : index
    %c0_26 = arith.constant 0 : index
    %51 = vector.load %arg7[%c0_25, %c0_26] : memref<512x1xf32, #tpu.memory_space<vmem>>, vector<512x1xf32>
    %52 = vector.broadcast %51 : vector<512x1xf32> to vector<512x128xf32>
    %53 = arith.addf %50, %52 : vector<512x128xf32>
    %cst_27 = arith.constant 0.00999999977 : f32
    %54 = vector.broadcast %cst_27 : f32 to vector<512x128xf32>
    %55 = arith.mulf %54, %53 : vector<512x128xf32>
    %56 = arith.maximumf %53, %55 : vector<512x128xf32>
    %57 = arith.truncf %56 : vector<512x128xf32> to vector<512x128xbf16>
    %c0_28 = arith.constant 0 : index
    %c0_29 = arith.constant 0 : index
    %58 = vector.load %arg8[%c0_28, %c0_29] : memref<16x512xbf16, #tpu.memory_space<vmem>>, vector<16x512xbf16>
    %cst_30 = arith.constant dense<0.000000e+00> : vector<16x128xf32>
    %59 = tpu.matmul %58, %57, %cst_30 {dimension_numbers = #tpu.dot_dimension_numbers<[1], [0], [0], [1], [0, 0, 1, 1], [], []>} : vector<16x512xbf16>, vector<512x128xbf16>, vector<16x128xf32> -> vector<16x128xf32>
    %c0_31 = arith.constant 0 : index
    %c0_32 = arith.constant 0 : index
    %60 = vector.load %arg9[%c0_31, %c0_32] : memref<16x1xf32, #tpu.memory_space<vmem>>, vector<16x1xf32>
    %61 = vector.broadcast %60 : vector<16x1xf32> to vector<16x128xf32>
    %62 = arith.addf %59, %61 : vector<16x128xf32>
    %cst_33 = arith.constant -5.000000e-01 : f32
    %63 = vector.broadcast %cst_33 : f32 to vector<16x128xf32>
    %64 = arith.maximumf %62, %63 : vector<16x128xf32>
    %cst_34 = arith.constant 1.000000e+00 : f32
    %65 = vector.broadcast %cst_34 : f32 to vector<16x128xf32>
    %66 = arith.addf %64, %65 : vector<16x128xf32>
    %67 = vector.broadcast %23 : vector<1x128xf32> to vector<16x128xf32>
    %68 = arith.mulf %66, %67 : vector<16x128xf32>
    %cst_35 = arith.constant 1.000000e+00 : f32
    %69 = vector.broadcast %cst_35 : f32 to vector<16x128xf32>
    %70 = arith.subf %68, %69 : vector<16x128xf32>
    %c0_36 = arith.constant 0 : index
    %c0_37 = arith.constant 0 : index
    %71 = vector.load %arg10[%c0_36, %c0_37] : memref<16x128xf32, #tpu.memory_space<vmem>>, vector<16x128xf32>
    tpu.vector_store %arg10[%c0_36, %c0_37], %70 {strides = array<i32>} : memref<16x128xf32, #tpu.memory_space<vmem>>, vector<16x128xf32>,
    return
  }
  func.func @transform_0(%arg0: i32) -> (i32, i32) {
    %c0_i32 = arith.constant 0 : i32
    %c0_i32_0 = arith.constant 0 : i32
    return %c0_i32, %arg0 : i32, i32
  }
  func.func @transform_1(%arg0: i32) -> (i32, i32) {
    %c0_i32 = arith.constant 0 : i32
    %c0_i32_0 = arith.constant 0 : i32
    %c0_i32_1 = arith.constant 0 : i32
    return %c0_i32, %c0_i32_0 : i32, i32
  }
  func.func @transform_2(%arg0: i32) -> (i32, i32) {
    %c0_i32 = arith.constant 0 : i32
    %c0_i32_0 = arith.constant 0 : i32
    %c0_i32_1 = arith.constant 0 : i32
    return %c0_i32, %c0_i32_0 : i32, i32
  }
  func.func @transform_3(%arg0: i32) -> (i32, i32) {
    %c0_i32 = arith.constant 0 : i32
    %c0_i32_0 = arith.constant 0 : i32
    %c0_i32_1 = arith.constant 0 : i32
    return %c0_i32, %c0_i32_0 : i32, i32
  }
  func.func @transform_4(%arg0: i32) -> (i32, i32) {
    %c0_i32 = arith.constant 0 : i32
    %c0_i32_0 = arith.constant 0 : i32
    %c0_i32_1 = arith.constant 0 : i32
    return %c0_i32, %c0_i32_0 : i32, i32
  }
  func.func @transform_5(%arg0: i32) -> (i32, i32) {
    %c0_i32 = arith.constant 0 : i32
    %c0_i32_0 = arith.constant 0 : i32
    %c0_i32_1 = arith.constant 0 : i32
    return %c0_i32, %c0_i32_0 : i32, i32
  }
  func.func @transform_6(%arg0: i32) -> (i32, i32) {
    %c0_i32 = arith.constant 0 : i32
    %c0_i32_0 = arith.constant 0 : i32
    %c0_i32_1 = arith.constant 0 : i32
    return %c0_i32, %c0_i32_0 : i32, i32
  }
  func.func @transform_7(%arg0: i32) -> (i32, i32) {
    %c0_i32 = arith.constant 0 : i32
    %c0_i32_0 = arith.constant 0 : i32
    %c0_i32_1 = arith.constant 0 : i32
    return %c0_i32, %c0_i32_0 : i32, i32
  }
  func.func @transform_8(%arg0: i32) -> (i32, i32) {
    %c0_i32 = arith.constant 0 : i32
    %c0_i32_0 = arith.constant 0 : i32
    %c0_i32_1 = arith.constant 0 : i32
    return %c0_i32, %c0_i32_0 : i32, i32
  }
  func.func @transform_9(%arg0: i32) -> (i32, i32) {
    %c0_i32 = arith.constant 0 : i32
    %c0_i32_0 = arith.constant 0 : i32
    return %c0_i32, %arg0 : i32, i32
  }
}

</mosaic_0001>

<bundles_post_ra>
// kernel: bayerlog_forward.1
= control target key start
LH: loop header
LB: loop body
LE: loop exit
PB: predicated region body
PF: predicated region fallthrough
CT: control target
= control target key end

     0   :  { %s4524_s30 = smov 0   ;;  %s4526_s10 = smov 0   ;;  %s6069_s0 = inlined_call_operand.vmem [shape: f32[200,256], index: 0, kind: input, shape index: {}]   ;;  %s6070_s1 = inlined_call_operand.vmem [shape: bf16[400,200], index: 1, kind: input, shape index: {}]   ;;  %s6071_s2 = inlined_call_operand.vmem [shape: f32[400,1], index: 2, kind: input, shape index: {}]   ;;  %s6072_s3 = inlined_call_operand.vmem [shape: bf16[144,400], index: 3, kind: input, shape index: {}]   ;;  %s6073_s4 = inlined_call_operand.vmem [shape: f32[144,1], index: 4, kind: input, shape index: {}]   ;;  %s6074_s5 = inlined_call_operand.vmem [shape: bf16[512,144], index: 5, kind: input, shape index: {}]   ;;  %s6075_s6 = inlined_call_operand.vmem [shape: f32[512,1], index: 6, kind: input, shape index: {}]   ;;  %s6076_s7 = inlined_call_operand.vmem [shape: bf16[16,512], index: 7, kind: input, shape index: {}]   ;;  %s6077_s8 = inlined_call_operand.vmem [shape: f32[16,1], index: 8, kind: input, shape index: {}]   ;;  %s6078_s9 = inlined_call_operand.vmem [shape: f32[16,256], index: 9, kind: output, shape index: {}]  }
   0x1   :  { %s4528_s11 = smov 0  }
   0x2 LB: > { %s3785_s12 = sadd.s32 4294967295, %s4471_s11   ;;  %s4541_s13 = sadd.s32 1, %s4471_s11   ;;  %s4471_s11 = sphi %s4528_s11, %s6082_s11   ;;  %s4467_s10 = sphi %s4526_s10, %s6081_s10   ;;  %s4463_s30 = sphi %s4524_s30, %s6080_s30  }
   0x3   : > { %s23_s14 = ssub.s32 %s4471_s11, %s4541_s13  ;;  %s26_s15 = sadd.s32 1, %s4467_s10 }
   0x4   : > { %p24_p0 = scmp.eq.s32.totalorder %s23_s14, 0  ;;  %p33_p1 = scmp.ne.s32.totalorder %s4467_s10, %s4463_s30 }
   0x5   : > { %p34_p2 = scmp.eq.s32.totalorder %s4471_s11, 0  ;;  %p231_p3 = scmp.eq.s32.totalorder %s3785_s12, 1 }
   0x6   : > { %s4552_s16 = scalar_select %p24_p0, %s4467_s10, %s26_s15  }
   0x7   : > { %p35_p4 = por %p34_p2, %p33_p1  ;;  %p4554_p5 = por %p231_p3, %p33_p1 }
   0x8   : > { %p3788_p6 = scmp.ge.s32.totalorder %s4471_s11, 2 }
   0xa   : > { %277 = sbr.rel (%p3788_p6) target bundleno = 34 (0x22), region = 48 }
  0x11   : > { %280 = sbr.rel (!%p35_p4) target bundleno = 34 (0x22), region = 52  ;;  %s282_s18 = sand.u32 (%p35_p4), 1, %s4467_s10  }
  0x12   : > { %s3789_s19 = sshll.u32 (%p35_p4), %s4471_s11, 3  ;;  %s4157_s20 = smul.u32 (%p35_p4), 200, %s282_s18 }
  0x13   : > { %s4564_s23 = scalar_lea.vmem (%p35_p4), %s6069_s0, %s3789_s19 }
  0x14   : > { %v362_v0 = vld [vmem:[%s4564_s23] sm:$0xff] (%p35_p4)  ;;  %v364_v1 = vld [vmem:[%s4564_s23 + $0x10] sm:$0xff] (%p35_p4)  ;;  %s4572_s24 = scalar_lea.vmem (%p35_p4), [#allocation2], %s4157_s20 }
  0x15   : > { %v366_v2 = vld [vmem:[%s4564_s23 + $0x20] sm:$0xff] (%p35_p4)  ;;  %v368_v3 = vld [vmem:[%s4564_s23 + $0x30] sm:$0xff] (%p35_p4)  ;;  %363 = vst [vmem:[%s4572_s24] sm:$0xff] (%p35_p4), %v362_v0  ;;  %365 = vst [vmem:[%s4572_s24 + $0x8] sm:$0xff] (%p35_p4), %v364_v1 }
  0x16   : > { %v370_v4 = vld [vmem:[%s4564_s23 + $0x40] sm:$0xff] (%p35_p4)  ;;  %v372_v5 = vld [vmem:[%s4564_s23 + $0x50] sm:$0xff] (%p35_p4)  ;;  %367 = vst [vmem:[%s4572_s24 + $0x10] sm:$0xff] (%p35_p4), %v366_v2  ;;  %369 = vst [vmem:[%s4572_s24 + $0x18] sm:$0xff] (%p35_p4), %v368_v3 }
  0x17   : > { %371 = vst [vmem:[%s4572_s24 + $0x20] sm:$0xff] (%p35_p4), %v370_v4  ;;  %373 = vst [vmem:[%s4572_s24 + $0x28] sm:$0xff] (%p35_p4), %v372_v5  ;;  %v374_v6 = vld [vmem:[%s4564_s23 + $0x60] sm:$0xff] (%p35_p4)  ;;  %v376_v7 = vld [vmem:[%s4564_s23 + $0x70] sm:$0xff] (%p35_p4) }
  0x18   : > { %v378_v8 = vld [vmem:[%s4564_s23 + $0x80] sm:$0xff]  ;;  %375 = vst [vmem:[%s4572_s24 + $0x30] sm:$0xff] %v374_v6  ;;  %377 = vst [vmem:[%s4572_s24 + $0x38] sm:$0xff] %v376_v7  ;;  %v380_v9 = vld [vmem:[%s4564_s23 + $0x90] sm:$0xff] }
  0x19   : > { %379 = vst [vmem:[%s4572_s24 + $0x40] sm:$0xff] %v378_v8  ;;  %v382_v10 = vld [vmem:[%s4564_s23 + $0xa0] sm:$0xff]  ;;  %v384_v11 = vld [vmem:[%s4564_s23 + $0xb0] sm:$0xff]  ;;  %381 = vst [vmem:[%s4572_s24 + $0x48] sm:$0xff] %v380_v9 }
  0x1a   : > { %383 = vst [vmem:[%s4572_s24 + $0x50] sm:$0xff] %v382_v10  ;;  %385 = vst [vmem:[%s4572_s24 + $0x58] sm:$0xff] %v384_v11  ;;  %v386_v12 = vld [vmem:[%s4564_s23 + $0xc0] sm:$0xff]  ;;  %v388_v13 = vld [vmem:[%s4564_s23 + $0xd0] sm:$0xff] }
  0x1b   : > { %v390_v14 = vld [vmem:[%s4564_s23 + $0xe0] sm:$0xff]  ;;  %387 = vst [vmem:[%s4572_s24 + $0x60] sm:$0xff] %v386_v12  ;;  %389 = vst [vmem:[%s4572_s24 + $0x68] sm:$0xff] %v388_v13  ;;  %v392_v15 = vld [vmem:[%s4564_s23 + $0xf0] sm:$0xff] }
  0x1c   : > { %391 = vst [vmem:[%s4572_s24 + $0x70] sm:$0xff] %v390_v14  ;;  %v394_v16 = vld [vmem:[%s4564_s23 + $0x100] sm:$0xff]  ;;  %v396_v17 = vld [vmem:[%s4564_s23 + $0x110] sm:$0xff]  ;;  %393 = vst [vmem:[%s4572_s24 + $0x78] sm:$0xff] %v392_v15 }
  0x1d   : > { %395 = vst [vmem:[%s4572_s24 + $0x80] sm:$0xff] %v394_v16  ;;  %397 = vst [vmem:[%s4572_s24 + $0x88] sm:$0xff] %v396_v17  ;;  %v398_v18 = vld [vmem:[%s4564_s23 + $0x120] sm:$0xff]  ;;  %v400_v19 = vld [vmem:[%s4564_s23 + $0x130] sm:$0xff] }
  0x1e   : > { %v402_v20 = vld [vmem:[%s4564_s23 + $0x140] sm:$0xff]  ;;  %399 = vst [vmem:[%s4572_s24 + $0x90] sm:$0xff] %v398_v18  ;;  %401 = vst [vmem:[%s4572_s24 + $0x98] sm:$0xff] %v400_v19  ;;  %v404_v21 = vld [vmem:[%s4564_s23 + $0x150] sm:$0xff] }
  0x1f   : > { %403 = vst [vmem:[%s4572_s24 + $0xa0] sm:$0xff] %v402_v20  ;;  %v406_v22 = vld [vmem:[%s4564_s23 + $0x160] sm:$0xff]  ;;  %v408_v23 = vld [vmem:[%s4564_s23 + $0x170] sm:$0xff]  ;;  %405 = vst [vmem:[%s4572_s24 + $0xa8] sm:$0xff] %v404_v21 }
  0x20   : > { %407 = vst [vmem:[%s4572_s24 + $0xb0] sm:$0xff] %v406_v22  ;;  %409 = vst [vmem:[%s4572_s24 + $0xb8] sm:$0xff] %v408_v23  ;;  %v410_v24 = vld [vmem:[%s4564_s23 + $0x180] sm:$0xff] }
  0x21   : > { %411 = vst [vmem:[%s4572_s24 + $0xc0] sm:$0xff] %v410_v24 }
  0x22 PF: > { %p3790_p7 = scmp.ge.s32.totalorder %s4471_s11, 1  ;;  %p416_p8 = scmp.lt.s32.totalorder %s4471_s11, 3 }
  0x24   : > { %p417_p9 = pnand %p3790_p7, %p416_p8 }
  0x25   : > { %v730_v25 = vld [vmem:[%s6071_s2 + $0x80] sm:$0xff] (!%p417_p9)  ;;  %v4473_v27 = vmov (!%p417_p9), 0   ;;  %v731_v28 = vld [vmem:[%s6071_s2 + $0x88] sm:$0xff] (!%p417_p9)  ;;  %s423_s19 = sand.u32 (!%p417_p9), 1, %s4463_s30   ;;  %v732_v32 = vld [vmem:[%s6071_s2 + $0x90] sm:$0xff] (!%p417_p9)  ;;  %vm1239_vm0 = vcmask (!%p417_p9), 588800  }
  0x26   : > { %420 = sbr.rel (%p417_p9) target bundleno = 1588 (0x634), region = 90  ;;  %v714_v26 = vld [vmem:[%s6071_s2] sm:$0xff] (!%p417_p9)  ;;  %4184 = vset.pattern.permute.xlu0 (!%p417_p9), %v4473_v27  ;;  %4185 = vset.pattern.permute.xlu1 (!%p417_p9), %v4473_v27  ;;  %v715_v29 = vld [vmem:[%s6071_s2 + $0x8] sm:$0xff] (!%p417_p9)  ;;  %v733_v33 = vld [vmem:[%s6071_s2 + $0x98] sm:$0xff] (!%p417_p9)  ;;  %vm530_vm1 = vcmask (!%p417_p9), 1040384   ;;  %vm548_vm2 = vcmask (!%p417_p9), 1044480  }
  0x27   : > { %846 = vperm.xlu0 (!%p417_p9), %4184, %v730_v25   ;;  %766 = vperm.xlu1 (!%p417_p9), %4185, %v714_v26   ;;  %s4158_s20 = smul.u32 (!%p417_p9), 200, %s423_s19  ;;  %v746_v30 = vld [vmem:[%s6071_s2 + $0x100] sm:$0xff] (!%p417_p9)  ;;  %v747_v31 = vld [vmem:[%s6071_s2 + $0x108] sm:$0xff] (!%p417_p9)  ;;  %v716_v47 = vld [vmem:[%s6071_s2 + $0x10] sm:$0xff] (!%p417_p9)  ;;  %vm1315_vm3 = vcmask (!%p417_p9), 1043456   ;;  %vm1992_vm4 = vcmask (!%p417_p9), 130048  }
  0x28   : > { %1319 = vmatprep.subr.bf16.mxu0 (!%p417_p9), %v4473_v27  ;;  %2125 = vmatprep.subr.bf16.mxu1 (!%p417_p9), %v4473_v27  ;;  %v717_v48 = vld [vmem:[%s6071_s2 + $0x18] sm:$0xff] (!%p417_p9)  ;;  %v748_v57 = vld [vmem:[%s6071_s2 + $0x110] sm:$0xff] (!%p417_p9)  ;;  %v734_v1 = vld [vmem:[%s6071_s2 + $0xa0] sm:$0xff] (!%p417_p9)  ;;  %s3791_s25 = sshll.u32 (!%p417_p9), %s423_s19, 4 }
  0x29   : > { %s4651_s29 = scalar_lea.vmem (!%p417_p9), [#allocation2], %s4158_s20  ;;  %v749_v58 = vld [vmem:[%s6071_s2 + $0x118] sm:$0xff] (!%p417_p9)  ;;  %v735_v2 = vld [vmem:[%s6071_s2 + $0xa8] sm:$0xff] (!%p417_p9)  ;;  %v718_v10 = vld [vmem:[%s6071_s2 + $0x20] sm:$0xff] (!%p417_p9)  ;;  %s456_s26 = scalar_lea.vmem (!%p417_p9), [#allocation3], %s3791_s25 }
  0x2a   : > { %v458_v34 = vld [vmem:[%s4651_s29] sm:$0xff] (!%p417_p9)  ;;  %v459_v35 = vld [vmem:[%s4651_s29 + $0x8] sm:$0xff] (!%p417_p9)  ;;  %v460_v36 = vld [vmem:[%s4651_s29 + $0x10] sm:$0xff] (!%p417_p9) }
  0x2b   : > { %851 = vperm.xlu0 (!%p417_p9), %4184, %v731_v28   ;;  %771 = vperm.xlu1 (!%p417_p9), %4185, %v715_v29   ;;  %v461_v37 = vld [vmem:[%s4651_s29 + $0x18] sm:$0xff] (!%p417_p9)  ;;  %v462_v38 = vld [vmem:[%s4651_s29 + $0x20] sm:$0xff] (!%p417_p9)  ;;  %v4658_v39 = vadd.f32 (!%p417_p9), 1.0, %v458_v34  ;;  %v4660_v40 = vadd.f32 (!%p417_p9), 1.0, %v459_v35  ;;  %v463_v41 = vld [vmem:[%s4651_s29 + $0x28] sm:$0xff] (!%p417_p9)  ;;  %v4664_v43 = vadd.f32 (!%p417_p9), 1.0, %v460_v36 }
  0x2c   : > { %v464_v42 = vld [vmem:[%s4651_s29 + $0x30] sm:$0xff] (!%p417_p9)  ;;  %v4666_v44 = vadd.f32 (!%p417_p9), 1.0, %v461_v37  ;;  %v4669_v46 = vadd.f32 (!%p417_p9), 1.0, %v462_v38  ;;  %v477_v49 = vld [vmem:[%s4651_s29 + $0x98] sm:$0xff] (!%p417_p9)  ;;  %v4679_v50 = vadd.f32 (!%p417_p9), 1.0, %v463_v41  ;;  %v478_v51 = vld [vmem:[%s4651_s29 + $0xa0] sm:$0xff] (!%p417_p9) }
  0x2d   : > { %v476_v45 = vld [vmem:[%s4651_s29 + $0x90] sm:$0xff]  ;;  %4417 = vlog2.f32 %v4658_v39  ;;  %v4683_v52 = vadd.f32 1.0, %v464_v42  ;;  %v479_v53 = vld [vmem:[%s4651_s29 + $0xa8] sm:$0xff]  ;;  %v4692_v56 = vadd.f32 1.0, %v477_v49  ;;  %v481_v59 = vld [vmem:[%s4651_s29 + $0xb8] sm:$0xff]  ;;  %v4702_v60 = vadd.f32 1.0, %v478_v51 }
  0x2e   : > { %4419 = vlog2.f32 %v4660_v40  ;;  %v4688_v54 = vadd.f32 1.0, %v476_v45  ;;  %v480_v55 = vld [vmem:[%s4651_s29 + $0xb0] sm:$0xff]  ;;  %v482_v61 = vld [vmem:[%s4651_s29 + $0xc0] sm:$0xff]  ;;  %v4706_v62 = vadd.f32 1.0, %v479_v53  ;;  %v4711_v0 = vadd.f32 1.0, %v481_v59 }
  0x2f   : > { %926 = vperm.xlu0 %4184, %v746_v30   ;;  %931 = vperm.xlu1 %4185, %v747_v31   ;;  %4421 = vlog2.f32 %v4664_v43  ;;  %v4708_v63 = vadd.f32 1.0, %v480_v55  ;;  %v4720_v3 = vadd.f32 1.0, %v482_v61  ;;  %v719_v11 = vld [vmem:[%s6071_s2 + $0x28] sm:$0xff]  ;;  %v750_v18 = vld [vmem:[%s6071_s2 + $0x120] sm:$0xff]  ;;  %v736_v37 = vld [vmem:[%s6071_s2 + $0xb0] sm:$0xff] }
  0x30   : > { %4423 = vlog2.f32 %v4666_v44  ;;  %v4188_v21 = vld [vmem:[%s6070_s1 + $0x4] ss:$8 sps:$4 sm:$0xff]   ;;  %v737_v38 = vld [vmem:[%s6071_s2 + $0xb8] sm:$0xff] }
  0x31   : > { %4425 = vlog2.f32 %v4669_v46  ;;  %v751_v23 = vld [vmem:[%s6071_s2 + $0x128] sm:$0xff]  ;;  %3867 = vmatprep.mubr.msk.bf16.mxu0 %vm1239_vm0, %v4188_v21  ;;  %v738_v21 = vld [vmem:[%s6071_s2 + $0xc0] sm:$0xff] }
  0x32   : > { %4427 = vlog2.f32 %v4679_v50 }
  0x33   : > { %856 = vperm.xlu0 %4184, %v732_v32   ;;  %861 = vperm.xlu1 %4185, %v733_v33   ;;  %4429 = vlog2.f32 %v4683_v52 }
  0x34   : > { %4431 = vlog2.f32 %v4688_v54 }
  0x35   : > { %4433 = vlog2.f32 %v4692_v56 }
  0x36   : > { %4435 = vlog2.f32 %v4702_v60 }
  0x37   : > { %776 = vperm.xlu0 %4184, %v716_v47   ;;  %781 = vperm.xlu1 %4185, %v717_v48   ;;  %v4418_v4 = vpop.eup %4417  ;;  %4437 = vlog2.f32 %v4706_v62 }
  0x38   : > { %v4420_v5 = vpop.eup %4419  ;;  %v491_v6 = vmul.f32 0.6931472, %v4418_v4  ;;  %4439 = vlog2.f32 %v4708_v63  ;;  %v720_v4 = vld [vmem:[%s6071_s2 + $0x30] sm:$0xff] }
  0x39   : > { %v4422_v7 = vpop.eup %4421  ;;  %v493_v8 = vmul.f32 0.6931472, %v4420_v5  ;;  %4441 = vlog2.f32 %v4711_v0  ;;  %v721_v5 = vld [vmem:[%s6071_s2 + $0x38] sm:$0xff] }
  0x3a   : > { %v4424_v9 = vpop.eup %4423  ;;  %v495_v12 = vmul.f32 0.6931472, %v4422_v7  ;;  %4443 = vlog2.f32 %v4720_v3 }
  0x3b   : > { %936 = vperm.xlu0 %4184, %v748_v57   ;;  %941 = vperm.xlu1 %4185, %v749_v58   ;;  %v4426_v13 = vpop.eup %4425  ;;  %v497_v14 = vmul.f32 0.6931472, %v4424_v9  ;;  %v525_v15 = vadd.f32 %v493_v8, %v491_v6 }
  0x3c   : > { %v4428_v16 = vpop.eup %4427  ;;  %v499_v19 = vmul.f32 0.6931472, %v4426_v13  ;;  %v753_v13 = vld [vmem:[%s6071_s2 + $0x138] sm:$0xff] }
  0x3d   : > { %v4430_v17 = vpop.eup %4429  ;;  %v526_v20 = vadd.f32 %v525_v15, %v495_v12  ;;  %v501_v26 = vmul.f32 0.6931472, %v4428_v16  ;;  %v752_v12 = vld [vmem:[%s6071_s2 + $0x130] sm:$0xff] }
  0x3e   : > { %v4432_v22 = vpop.eup %4431  ;;  %v503_v24 = vmul.f32 0.6931472, %v4430_v17 }
  0x3f   : > { %866 = vperm.xlu0 %4184, %v734_v1   ;;  %871 = vperm.xlu1 %4185, %v735_v2   ;;  %v4434_v25 = vpop.eup %4433  ;;  %v512_v28 = vmul.f32 0.6931472, %v4432_v22  ;;  %v527_v29 = vadd.f32 %v526_v20, %v497_v14  ;;  %v739_v22 = vld [vmem:[%s6071_s2 + $0xc8] sm:$0xff] }
  0x40   : > { %v4436_v30 = vpop.eup %4435  ;;  %v514_v31 = vmul.f32 0.6931472, %v4434_v25  ;;  %v531_v42 = vsel %vm530_vm1, %v503_v24, 0.0  ;;  %v722_v25 = vld [vmem:[%s6071_s2 + $0x40] sm:$0xff] }
  0x41   : > { %v4438_v32 = vpop.eup %4437  ;;  %v516_v33 = vmul.f32 0.6931472, %v4436_v30  ;;  %v528_v34 = vadd.f32 %v527_v29, %v499_v19  ;;  %v549_v35 = vrot.slane %v512_v28, 3 }
  0x42   : > { %v4440_v36 = vpop.eup %4439  ;;  %v518_v41 = vmul.f32 0.6931472, %v4438_v32  ;;  %v550_v45 = vrot.slane %v514_v31, 3 }
  0x43   : > { %786 = vperm.xlu0 %4184, %v718_v10   ;;  %791 = vperm.xlu1 %4185, %v719_v11   ;;  %v4442_v47 = vpop.eup %4441  ;;  %v520_v48 = vmul.f32 0.6931472, %v4440_v36  ;;  %v529_v49 = vadd.f32 %v528_v34, %v501_v26  ;;  %v552_v51 = vrot.slane %v516_v33, 3  ;;  %v723_v26 = vld [vmem:[%s6071_s2 + $0x48] sm:$0xff]  ;;  %v754_v33 = vld [vmem:[%s6071_s2 + $0x140] sm:$0xff]  ;;  %v740_v36 = vld [vmem:[%s6071_s2 + $0xd0] sm:$0xff] }
  0x44   : > { %v4444_v53 = vpop.eup %4443  ;;  %v522_v55 = vmul.f32 0.6931472, %v4442_v47  ;;  %v551_v57 = vsel %vm548_vm2, %v549_v35, %v550_v45  ;;  %v554_v58 = vrot.slane %v518_v41, 3  ;;  %v755_v34 = vld [vmem:[%s6071_s2 + $0x148] sm:$0xff] }
  0x45   : > { %v524_v59 = vmul.f32 0.6931472, %v4444_v53  ;;  %v532_v61 = vadd.f32 %v531_v42, %v529_v49  ;;  %v553_v1 = vsel %vm548_vm2, %v550_v45, %v552_v51  ;;  %v556_v2 = vrot.slane %v520_v48, 3  ;;  %v724_v48 = vld [vmem:[%s6071_s2 + $0x50] sm:$0xff]  ;;  %v725_v49 = vld [vmem:[%s6071_s2 + $0x58] sm:$0xff] }
  0x46   : > { %v555_v6 = vsel %vm548_vm2, %v552_v51, %v554_v58  ;;  %v558_v7 = vrot.slane %v522_v55, 3  ;;  %v569_v8 = vadd.f32 %v553_v1, %v551_v57  ;;  %v756_v55 = vld [vmem:[%s6071_s2 + $0x150] sm:$0xff]  ;;  %v757_v57 = vld [vmem:[%s6071_s2 + $0x158] sm:$0xff]  ;;  %v743_v1 = vld [vmem:[%s6071_s2 + $0xe8] sm:$0xff] }
  0x47   : > { %946 = vperm.xlu0 %4184, %v750_v18   ;;  %951 = vperm.xlu1 %4185, %v751_v23   ;;  %v533_v9 = vrot.slane %v532_v61, 4  ;;  %v557_v10 = vsel %vm548_vm2, %v554_v58, %v556_v2  ;;  %v560_v11 = vrot.slane %v524_v59, 3 }
  0x48   : > { %v570_v14 = vadd.f32 %v569_v8, %v555_v6  ;;  %v559_v16 = vsel %vm548_vm2, %v556_v2, %v558_v7  ;;  %v758_v6 = vld [vmem:[%s6071_s2 + $0x160] sm:$0xff] }
  0x49   : > { %v534_v15 = vadd.f32 %v533_v9, %v532_v61  ;;  %v561_v18 = vsel %vm548_vm2, %v558_v7, %v560_v11  ;;  %v574_v23 = vsel %vm530_vm1, %v560_v11, 0.0  ;;  %v742_v61 = vld [vmem:[%s6071_s2 + $0xe0] sm:$0xff]  ;;  %v759_v7 = vld [vmem:[%s6071_s2 + $0x168] sm:$0xff]  ;;  %v744_v9 = vld [vmem:[%s6071_s2 + $0xf0] sm:$0xff] }
  0x4a   : > { %v571_v17 = vadd.f32 %v570_v14, %v557_v10  ;;  %v465_v8 = vld [vmem:[%s4651_s29 + $0x38] sm:$0xff] }
  0x4b   : > { %876 = vperm.xlu0 %4184, %v736_v37   ;;  %881 = vperm.xlu1 %4185, %v737_v38   ;;  %v535_v19 = vrot.slane %v534_v15, 2  ;;  %v741_v37 = vld [vmem:[%s6071_s2 + $0xd8] sm:$0xff] }
  0x4c   : > { %v572_v20 = vadd.f32 %v571_v17, %v559_v16  ;;  %v745_v10 = vld [vmem:[%s6071_s2 + $0xf8] sm:$0xff] }
  0x4d   : > { %v536_v28 = vadd.f32 %v535_v19, %v534_v15 }
  0x4e   : > { %v573_v24 = vadd.f32 %v572_v20, %v561_v18  ;;  %v590_v18 = vadd.f32 1.0, %v465_v8 }
  0x4f   : > { %796 = vperm.xlu0 %4184, %v720_v4   ;;  %801 = vperm.xlu1 %4185, %v721_v5   ;;  %v537_v31 = vrot.slane %v536_v28, 1  ;;  %v726_v4 = vld [vmem:[%s6071_s2 + $0x60] sm:$0xff]  ;;  %v727_v5 = vld [vmem:[%s6071_s2 + $0x68] sm:$0xff] }
  0x50   : > { %v575_v29 = vadd.f32 %v574_v23, %v573_v24  ;;  %v468_v23 = vld [vmem:[%s4651_s29 + $0x50] sm:$0xff] }
  0x51   : > { %v538_v38 = vadd.f32 %v537_v31, %v536_v28  ;;  %v760_v28 = vld [vmem:[%s6071_s2 + $0x170] sm:$0xff] }
  0x52   : > { %v576_v30 = vrot.slane %v575_v29, 4 }
  0x53   : > { %956 = vperm.xlu0 %4184, %v752_v12   ;;  %961 = vperm.xlu1 %4185, %v753_v13   ;;  %v540_v45 = vmul.f32 0.020408163, %v538_v38 }
  0x54   : > { %v577_v32 = vadd.f32 %v576_v30, %v575_v29 }
  0x56   : > { %v578_v35 = vrot.slane %v577_v32, 2 }
  0x57   : > { %886 = vperm.xlu0 %4184, %v738_v21   ;;  %891 = vperm.xlu1 %4185, %v739_v22   ;;  %v467_v22 = vld [vmem:[%s4651_s29 + $0x48] sm:$0xff] }
  0x58   : > { %v579_v41 = vadd.f32 %v578_v35, %v577_v32  ;;  %v592_v32 = vadd.f32 1.0, %v467_v22  ;;  %v593_v35 = vadd.f32 1.0, %v468_v23 }
  0x5a   : > { %v580_v42 = vrot.slane %v579_v41, 1 }
  0x5b   : > { %806 = vperm.xlu0 %4184, %v722_v25   ;;  %811 = vperm.xlu1 %4185, %v723_v26   ;;  %v469_v26 = vld [vmem:[%s4651_s29 + $0x58] sm:$0xff] }
  0x5c   : > { %v581_v47 = vadd.f32 %v580_v42, %v579_v41  ;;  %v594_v42 = vadd.f32 1.0, %v469_v26  ;;  %v1719_v26 = vld [vmem:[%s6073_s4 + $0x30] sm:$0xff] }
  0x5e   : > { %v582_v51 = vmul.f32 0.020408163, %v581_v47  ;;  %v762_v47 = vld [vmem:[%s6071_s2 + $0x180] sm:$0xff] }
  0x5f   : > { %966 = vperm.xlu0 %4184, %v754_v33   ;;  %971 = vperm.xlu1 %4185, %v755_v34  }
  0x60   : > { %v583_v53 = vadd.f32 %v582_v51, %v540_v45  ;;  %v471_v45 = vld [vmem:[%s4651_s29 + $0x68] sm:$0xff]  ;;  %v473_v51 = vld [vmem:[%s4651_s29 + $0x78] sm:$0xff] }
  0x61   : > { %v598_v8 = vadd.f32 1.0, %v473_v51 }
  0x62   : > { %v4805_v58 = vmul.f32 0.5, %v583_v53 }
  0x63   : > { %896 = vperm.xlu0 %4184, %v740_v36   ;;  %901 = vperm.xlu1 %4185, %v741_v37   ;;  %v470_v36 = vld [vmem:[%s4651_s29 + $0x60] sm:$0xff] }
  0x64   : > { %v585_v59 = vsub.f32 0.0, %v4805_v58 }
  0x66   : > { %v586_v2 = vmul.f32 1.442695, %v585_v59  ;;  %v1713_v59 = vld [vmem:[%s6073_s4] sm:$0xff] }
  0x67   : > { %816 = vperm.xlu0 %4184, %v724_v48   ;;  %821 = vperm.xlu1 %4185, %v725_v49   ;;  %v763_v48 = vld [vmem:[%s6071_s2 + $0x188] sm:$0xff]  ;;  %v472_v49 = vld [vmem:[%s4651_s29 + $0x70] sm:$0xff] }
  0x68   : > { %4445 = vpow2.f32 %v586_v2 }
  0x6b   : > { %976 = vperm.xlu0 %4184, %v756_v55   ;;  %981 = vperm.xlu1 %4185, %v757_v57   ;;  %v595_v55 = vadd.f32 1.0, %v470_v36  ;;  %v596_v57 = vadd.f32 1.0, %v471_v45 }
  0x6f   : > { %906 = vperm.xlu0 %4184, %v742_v61   ;;  %911 = vperm.xlu1 %4185, %v743_v1  }
  0x72   : > { %v4833_v11 = vpop.eup %4445 }
  0x73   : > { %826 = vperm.xlu0 %4184, %v726_v4   ;;  %831 = vperm.xlu1 %4185, %v727_v5   ;;  %v601_v12 = vmul.f32 %v4833_v11, %v4658_v39  ;;  %v602_v13 = vmul.f32 %v4833_v11, %v4660_v40  ;;  %v603_v14 = vmul.f32 %v4833_v11, %v4664_v43  ;;  %v466_v40 = vld [vmem:[%s4651_s29 + $0x40] sm:$0xff]  ;;  %v728_v43 = vld [vmem:[%s6071_s2 + $0x70] sm:$0xff] }
  0x74   : > { %v604_v15 = vmul.f32 %v4833_v11, %v4666_v44  ;;  %v605_v16 = vmul.f32 %v4833_v11, %v4669_v46  ;;  %v606_v17 = vmul.f32 %v4833_v11, %v4679_v50  ;;  %v729_v46 = vld [vmem:[%s6071_s2 + $0x78] sm:$0xff]  ;;  %v607_v50 = vmul.f32 %v4833_v11, %v4683_v52  ;;  %v1714_v5 = vld [vmem:[%s6073_s4 + $0x8] sm:$0xff] }
  0x75   : > { %v3792_v19 = vadd.f32 -1.0, %v601_v12  ;;  %v3793_v39 = vadd.f32 -1.0, %v602_v13  ;;  %v3794_v20 = vadd.f32 -1.0, %v603_v14  ;;  %v608_v24 = vmul.f32 %v4833_v11, %v590_v18  ;;  %v761_v52 = vld [vmem:[%s6071_s2 + $0x178] sm:$0xff] }
  0x76   : > { %v3795_v21 = vadd.f32 -1.0, %v604_v15  ;;  %v591_v25 = vadd.f32 1.0, %v466_v40  ;;  %v3796_v30 = vadd.f32 -1.0, %v605_v16  ;;  %v3797_v31 = vadd.f32 -1.0, %v606_v17  ;;  %v475_v15 = vld [vmem:[%s4651_s29 + $0x88] sm:$0xff]  ;;  %v1716_v17 = vld [vmem:[%s6073_s4 + $0x18] sm:$0xff] }
  0x77   : > { %986 = vperm.xlu0 %4184, %v758_v6   ;;  %991 = vperm.xlu1 %4185, %v759_v7   ;;  %v651_v44 = vpack.c.bf16 %v3793_v39, %v3792_v19  ;;  %v3798_v33 = vadd.f32 -1.0, %v607_v50  ;;  %v3799_v34 = vadd.f32 -1.0, %v608_v24  ;;  %v610_v41 = vmul.f32 %v4833_v11, %v592_v32  ;;  %v1715_v16 = vld [vmem:[%s6073_s4 + $0x10] sm:$0xff] }
  0x78   : > { %v652_v29 = vpack.c.bf16 %v3795_v21, %v3794_v20  ;;  %v653_v37 = vpack.c.bf16 %v3797_v31, %v3796_v30  ;;  %v609_v38 = vmul.f32 %v4833_v11, %v591_v25  ;;  %v611_v2 = vmul.f32 %v4833_v11, %v593_v35 }
  0x79   : > { %1320 = vmatpush1.bf16.msra.mxu0 %v651_v44  ;;  %v654_v53 = vpack.c.bf16 %v3799_v34, %v3798_v33  ;;  %v3801_v1 = vadd.f32 -1.0, %v610_v41  ;;  %v612_v4 = vmul.f32 %v4833_v11, %v594_v42  ;;  %v613_v6 = vmul.f32 %v4833_v11, %v595_v55  ;;  %v1718_v44 = vld [vmem:[%s6073_s4 + $0x28] sm:$0xff]  ;;  %v1721_v33 = vld [vmem:[%s6073_s4 + $0x40] sm:$0xff]  ;;  %v1724_v41 = vld [vmem:[%s6073_s4 + $0x58] sm:$0xff] }
  0x7a   : > { %1321 = vmatprep.subr.bf16.mxu0 %v4473_v27  ;;  %v3800_v61 = vadd.f32 -1.0, %v609_v38  ;;  %v597_v7 = vadd.f32 1.0, %v472_v49  ;;  %v3802_v12 = vadd.f32 -1.0, %v611_v2  ;;  %v614_v14 = vmul.f32 %v4833_v11, %v596_v57  ;;  %v1722_v34 = vld [vmem:[%s6073_s4 + $0x48] sm:$0xff]  ;;  %v1723_v38 = vld [vmem:[%s6073_s4 + $0x50] sm:$0xff]  ;;  %v1725_v49 = vld [vmem:[%s6073_s4 + $0x60] sm:$0xff] }
  0x7b   : > { %916 = vperm.xlu0 %4184, %v744_v9   ;;  %921 = vperm.xlu1 %4185, %v745_v10   ;;  %v474_v9 = vld [vmem:[%s4651_s29 + $0x80] sm:$0xff]  ;;  %v3803_v13 = vadd.f32 -1.0, %v612_v4  ;;  %v600_v39 = vadd.f32 1.0, %v475_v15  ;;  %v3804_v21 = vadd.f32 -1.0, %v613_v6  ;;  %v616_v22 = vmul.f32 %v4833_v11, %v598_v8  ;;  %v2341_v15 = vld [vmem:[%s6075_s6 + $0x10] sm:$0xff]  ;;  %s4040_s29 = sshll.u32 (%p4554_p5), %s3785_s12, 3 }
  0x7c   : > { %v655_v10 = vpack.c.bf16 %v3801_v1, %v3800_v61  ;;  %v615_v18 = vmul.f32 %v4833_v11, %v597_v7  ;;  %v599_v19 = vadd.f32 1.0, %v474_v9  ;;  %v3805_v40 = vadd.f32 -1.0, %v614_v14  ;;  %v1729_v61 = vld [vmem:[%s6073_s4 + $0x80] sm:$0xff]  ;;  %v1730_v1 = vld [vmem:[%s6073_s4 + $0x88] sm:$0xff]  ;;  %v4189_v7 = vld [vmem:[%s6070_s1 + $0x14] ss:$8 sps:$4 sm:$0xff]   ;;  %s3692_s27 = scalar_lea.vmem (%p4554_p5), %s6078_s9, %s4040_s29 }
  0x7d   : > { %1322 = vmatpush1.bf16.msra.mxu0 %v652_v29  ;;  %v656_v20 = vpack.c.bf16 %v3803_v13, %v3802_v12  ;;  %v3807_v24 = vadd.f32 -1.0, %v616_v22  ;;  %v618_v25 = vmul.f32 %v4833_v11, %v600_v39  ;;  %v619_v32 = vmul.f32 %v4833_v11, %v4688_v54  ;;  %v2355_v4 = vld [vmem:[%s6075_s6 + $0x80] sm:$0xff]  ;;  %v2340_v9 = vld [vmem:[%s6075_s6 + $0x8] sm:$0xff]  ;;  %v2358_v12 = vld [vmem:[%s6075_s6 + $0x98] sm:$0xff] }
  0x7e   : > { %1323 = vmatprep.subr.bf16.mxu0 %v4473_v27  ;;  %v617_v23 = vmul.f32 %v4833_v11, %v599_v19  ;;  %v3806_v50 = vadd.f32 -1.0, %v615_v18  ;;  %v621_v35 = vmul.f32 %v4833_v11, %v4702_v60  ;;  %v623_v60 = vmul.f32 %v4833_v11, %v4708_v63  ;;  %v1726_v63 = vld [vmem:[%s6073_s4 + $0x68] sm:$0xff]  ;;  %v2339_v8 = vld [vmem:[%s6075_s6] sm:$0xff]  ;;  %v4191_v13 = vld [vmem:[%s6070_s1 + $0x10] ss:$8 sps:$4 sm:$0xff]  }
  0x7f   : > { %836 = vperm.xlu0 %4184, %v728_v43   ;;  %841 = vperm.xlu1 %4185, %v729_v46   ;;  %v1717_v43 = vld [vmem:[%s6073_s4 + $0x20] sm:$0xff]  ;;  %v657_v46 = vpack.c.bf16 %v3805_v40, %v3804_v21  ;;  %v3809_v31 = vadd.f32 -1.0, %v618_v25  ;;  %v3810_v36 = vadd.f32 -1.0, %v619_v32  ;;  %v2360_v18 = vld [vmem:[%s6075_s6 + $0xa8] sm:$0xff]  ;;  %v4195_v39 = vld [vmem:[%s6070_s1 + $0x34] ss:$8 sps:$4 sm:$0xff]  }
  0x80   : > { %v3808_v29 = vadd.f32 -1.0, %v617_v23  ;;  %v658_v30 = vpack.c.bf16 %v3807_v24, %v3806_v50  ;;  %v3812_v45 = vadd.f32 -1.0, %v621_v35  ;;  %v4186_v6 = vld [vmem:[%s6070_s1] ss:$8 sps:$4 sm:$0xff]   ;;  %v4192_v14 = vld [vmem:[%s6070_s1 + $0x24] ss:$8 sps:$4 sm:$0xff]  }
  0x81   : > { %1324 = vmatpush1.bf16.msra.mxu0 %v653_v37  ;;  %v4194_v19 = vld [vmem:[%s6070_s1 + $0x20] ss:$8 sps:$4 sm:$0xff]   ;;  %v2361_v40 = vld [vmem:[%s6075_s6 + $0xb0] sm:$0xff]  ;;  %v2362_v22 = vld [vmem:[%s6075_s6 + $0xb8] sm:$0xff] }
  0x82   : > { %1325 = vmatprep.subr.bf16.mxu0 %v4473_v27  ;;  %v659_v54 = vpack.c.bf16 %v3809_v31, %v3808_v29  ;;  %v2344_v21 = vld [vmem:[%s6075_s6 + $0x28] sm:$0xff]  ;;  %v2345_v23 = vld [vmem:[%s6075_s6 + $0x30] sm:$0xff]  ;;  %v2346_v50 = vld [vmem:[%s6075_s6 + $0x38] sm:$0xff] }
  0x83   : > { %996 = vperm.xlu0 %4184, %v760_v28   ;;  %1001 = vperm.xlu1 %4185, %v761_v52   ;;  %v1720_v28 = vld [vmem:[%s6073_s4 + $0x38] sm:$0xff]  ;;  %v620_v52 = vmul.f32 %v4833_v11, %v4692_v56  ;;  %v622_v56 = vmul.f32 %v4833_v11, %v4706_v62  ;;  %v624_v62 = vmul.f32 %v4833_v11, %v4711_v0  ;;  %v2363_v25 = vld [vmem:[%s6075_s6 + $0xc0] sm:$0xff] }
  0x84   : > { %v2347_v32 = vld [vmem:[%s6075_s6 + $0x40] sm:$0xff]  ;;  %v2366_v35 = vld [vmem:[%s6075_s6 + $0xd8] sm:$0xff] }
  0x85   : > { %1326 = vmatpush1.bf16.msra.mxu0 %v654_v53  ;;  %v3811_v37 = vadd.f32 -1.0, %v620_v52  ;;  %v3814_v53 = vadd.f32 -1.0, %v623_v60  ;;  %v3815_v55 = vadd.f32 -1.0, %v624_v62  ;;  %v2348_v52 = vld [vmem:[%s6075_s6 + $0x48] sm:$0xff]  ;;  %v4207_v62 = vld [vmem:[%s6070_s1 + $0x74] ss:$8 sps:$4 sm:$0xff]  }
  0x86   : > { %1327 = vmatprep.subr.bf16.mxu0 %v4473_v27 }
  0x87   : > { %1006 = vperm.xlu0 %4184, %v762_v47   ;;  %1011 = vperm.xlu1 %4185, %v763_v48   ;;  %v660_v42 = vpack.c.bf16 %v3811_v37, %v3810_v36  ;;  %v3813_v47 = vadd.f32 -1.0, %v622_v56  ;;  %v625_v48 = vmul.f32 %v4833_v11, %v4720_v3  ;;  %v1727_v3 = vld [vmem:[%s6073_s4 + $0x70] sm:$0xff]  ;;  %v1728_v11 = vld [vmem:[%s6073_s4 + $0x78] sm:$0xff]  ;;  %v662_v57 = vpack.c.bf16 %v3815_v55, %v3814_v53  ;;  %v4204_v37 = vld [vmem:[%s6070_s1 + $0x64] ss:$8 sps:$4 sm:$0xff]  }
  0x88   : > { %v4203_v36 = vld [vmem:[%s6070_s1 + $0x50] ss:$8 sps:$4 sm:$0xff]  }
  0x89   : > { %1328 = vmatpush1.bf16.msra.mxu0 %v655_v10  ;;  %v661_v51 = vpack.c.bf16 %v3813_v47, %v3812_v45  ;;  %v3816_v0 = vadd.f32 -1.0, %v625_v48  ;;  %v2357_v10 = vld [vmem:[%s6075_s6 + $0x90] sm:$0xff]  ;;  %v2368_v45 = vld [vmem:[%s6075_s6 + $0xe8] sm:$0xff]  ;;  %v2351_v48 = vld [vmem:[%s6075_s6 + $0x60] sm:$0xff] }
  0x8a   : > { %1329 = vmatprep.subr.bf16.mxu0 %v4473_v27  ;;  %v2349_v56 = vld [vmem:[%s6075_s6 + $0x50] sm:$0xff]  ;;  %v4206_v47 = vld [vmem:[%s6070_s1 + $0x60] ss:$8 sps:$4 sm:$0xff]   ;;  %v2370_v55 = vld [vmem:[%s6075_s6 + $0xf8] sm:$0xff] }
  0x8b   : > { %1733 = vperm.xlu0 %4184, %v1713_v59   ;;  %1738 = vperm.xlu1 %4185, %v1714_v5   ;;  %v663_v59 = vpack.c.bf16 %v3816_v0, %v3816_v0  ;;  %v2356_v5 = vld [vmem:[%s6075_s6 + $0x88] sm:$0xff]  ;;  %v2369_v53 = vld [vmem:[%s6075_s6 + $0xf0] sm:$0xff] }
  0x8c   : > { %v4209_v0 = vld [vmem:[%s6070_s1 + $0x70] ss:$8 sps:$4 sm:$0xff]  }
  0x8d   : > { %1330 = vmatpush1.bf16.msra.mxu0 %v656_v20  ;;  %v1317_v2 = vsel %vm1315_vm3, %v663_v59, 0  ;;  %v2343_v20 = vld [vmem:[%s6075_s6 + $0x20] sm:$0xff]  ;;  %v2353_v59 = vld [vmem:[%s6075_s6 + $0x70] sm:$0xff] }
  0x8e   : > { %1331 = vmatprep.subr.bf16.mxu0 %v4473_v27 }
  0x8f   : > { %1743 = vperm.xlu0 %4184, %v1715_v16   ;;  %1748 = vperm.xlu1 %4185, %v1716_v17   ;;  %v2342_v16 = vld [vmem:[%s6075_s6 + $0x18] sm:$0xff]  ;;  %v2359_v17 = vld [vmem:[%s6075_s6 + $0xa0] sm:$0xff] }
  0x91   : > { %1332 = vmatpush1.bf16.msra.mxu0 %v657_v46 }
  0x92   : > { %1333 = vmatprep.subr.bf16.mxu0 %v4473_v27 }
  0x93   : > { %1753 = vperm.xlu0 %4184, %v1717_v43   ;;  %1758 = vperm.xlu1 %4185, %v1718_v44   ;;  %v4197_v43 = vld [vmem:[%s6070_s1 + $0x30] ss:$8 sps:$4 sm:$0xff]   ;;  %v4198_v44 = vld [vmem:[%s6070_s1 + $0x44] ss:$8 sps:$4 sm:$0xff]  }
  0x95   : > { %1334 = vmatpush1.bf16.msra.mxu0 %v658_v30  ;;  %v4201_v30 = vld [vmem:[%s6070_s1 + $0x54] ss:$8 sps:$4 sm:$0xff]  }
  0x96   : > { %1335 = vmatprep.subr.bf16.mxu0 %v4473_v27 }
  0x97   : > { %1763 = vperm.xlu0 %4184, %v1719_v26   ;;  %1768 = vperm.xlu1 %4185, %v1720_v28   ;;  %v2364_v26 = vld [vmem:[%s6075_s6 + $0xc8] sm:$0xff] }
  0x98   : > { %v4200_v28 = vld [vmem:[%s6070_s1 + $0x40] ss:$8 sps:$4 sm:$0xff]  }
  0x99   : > { %1336 = vmatpush1.bf16.msra.mxu0 %v659_v54 }
  0x9a   : > { %1337 = vmatprep.subr.bf16.mxu0 %v4473_v27 }
  0x9b   : > { %1773 = vperm.xlu0 %4184, %v1721_v33   ;;  %1778 = vperm.xlu1 %4185, %v1722_v34   ;;  %v2365_v33 = vld [vmem:[%s6075_s6 + $0xd0] sm:$0xff] }
  0x9d   : > { %1338 = vmatpush1.bf16.msra.mxu0 %v660_v42  ;;  %v2367_v42 = vld [vmem:[%s6075_s6 + $0xe0] sm:$0xff] }
  0x9e   : > { %1339 = vmatprep.subr.bf16.mxu0 %v4473_v27 }
  0x9f   : > { %1783 = vperm.xlu0 %4184, %v1723_v38   ;;  %1788 = vperm.xlu1 %4185, %v1724_v41   ;;  %v2350_v38 = vld [vmem:[%s6075_s6 + $0x58] sm:$0xff] }
  0xa1   : > { %1340 = vmatpush1.bf16.msra.mxu0 %v661_v51 }
  0xa2   : > { %1341 = vmatprep.subr.bf16.mxu0 %v4473_v27 }
  0xa3   : > { %1793 = vperm.xlu0 %4184, %v1725_v49   ;;  %1798 = vperm.xlu1 %4185, %v1726_v63   ;;  %v2352_v63 = vld [vmem:[%s6075_s6 + $0x68] sm:$0xff] }
  0xa5   : > { %1342 = vmatpush1.bf16.msra.mxu0 %v662_v57 }
  0xa6   : > { %1343 = vmatprep.subr.bf16.mxu0 %v4473_v27  ;;  %v5040_v46 = vpop.permute.xlu0 %846  ;;  %v5045_v24 = vpop.permute.xlu1 %766 }
  0xa7   : > { %1803 = vperm.xlu0 %4184, %v1727_v3   ;;  %1808 = vperm.xlu1 %4185, %v1728_v11   ;;  %v4210_v11 = vld [vmem:[%s6070_s1 + $0x84] ss:$8 sps:$4 sm:$0xff]  }
  0xa9   : > { %1344 = vmatpush1.bf16.msra.mxu0 %v1317_v2 }
  0xaa   : > { %v5057_v29 = vpop.permute.xlu0 %851  ;;  %v5062_v31 = vpop.permute.xlu1 %771 }
  0xab   : > { %1813 = vperm.xlu0 %4184, %v1729_v61   ;;  %1818 = vperm.xlu1 %4185, %v1730_v1   ;;  %v2354_v61 = vld [vmem:[%s6075_s6 + $0x78] sm:$0xff]  ;;  %v2387_v1 = vld [vmem:[%s6075_s6 + $0x180] sm:$0xff] }
  0xac   : > { %1352 = vmatmul.mubr.bf16.vlgmr.msra.gmra.mrb[0].mxu0 %v4186_v6  ;;  %v4212_v6 = vld [vmem:[%s6070_s1 + $0x80] ss:$8 sps:$4 sm:$0xff]  }
  0xad   : > { %3868 = vmatprep.mubr.msk.bf16.mxu0 %vm1239_vm0, %v4189_v7  ;;  %v4213_v7 = vld [vmem:[%s6070_s1 + $0x94] ss:$8 sps:$4 sm:$0xff]  }
  0xae   : > { %v5074_v34 = vpop.permute.xlu0 %926  ;;  %v5079_v54 = vpop.permute.xlu1 %931 }
  0xaf   : > { %2485 = vperm.xlu0 %4184, %v2355_v4   ;;  %2490 = vperm.xlu1 %4185, %v2356_v5   ;;  %v2388_v4 = vld [vmem:[%s6075_s6 + $0x188] sm:$0xff] }
  0xb2   : > { %v5093_v41 = vpop.permute.xlu0 %856  ;;  %v5096_v60 = vpop.permute.xlu1 %861 }
  0xb3   : > { %2405 = vperm.xlu0 %4184, %v2339_v8   ;;  %2410 = vperm.xlu1 %4185, %v2340_v9   ;;  %v2371_v8 = vld [vmem:[%s6075_s6 + $0x100] sm:$0xff]  ;;  %v2372_v9 = vld [vmem:[%s6075_s6 + $0x108] sm:$0xff] }
  0xb4   : > { %1360 = vmatmul.mubr.bf16.gmra.mrb[4].mxu0 %v4191_v13  ;;  %v2389_v13 = vld [vmem:[%s6075_s6 + $0x190] sm:$0xff] }
  0xb5   : > { %3869 = vmatprep.mubr.msk.bf16.mxu0 %vm1239_vm0, %v4192_v14  ;;  %v2390_v14 = vld [vmem:[%s6075_s6 + $0x198] sm:$0xff] }
  0xb6   : > { %v5113_v49 = vpop.permute.xlu0 %776  ;;  %v5118_v51 = vpop.permute.xlu1 %781 }
  0xb7   : > { %2495 = vperm.xlu0 %4184, %v2357_v10   ;;  %2500 = vperm.xlu1 %4185, %v2358_v12  }
  0xba   : > { %v5130_v3 = vpop.permute.xlu0 %936  ;;  %v5135_v57 = vpop.permute.xlu1 %941 }
  0xbb   : > { %2415 = vperm.xlu0 %4184, %v2341_v15   ;;  %2420 = vperm.xlu1 %4185, %v2342_v16   ;;  %v4215_v15 = vld [vmem:[%s6070_s1 + $0x90] ss:$8 sps:$4 sm:$0xff]   ;;  %v4216_v16 = vld [vmem:[%s6070_s1 + $0xa4] ss:$8 sps:$4 sm:$0xff]  }
  0xbc   : > { %1368 = vmatmul.mubr.bf16.gmra.mrb[8].mxu0 %v4194_v19  ;;  %v2374_v19 = vld [vmem:[%s6075_s6 + $0x118] sm:$0xff] }
  0xbd   : > { %3870 = vmatprep.mubr.msk.bf16.mxu0 %vm1239_vm0, %v4195_v39 }
  0xbe   : > { %v5147_v2 = vpop.permute.xlu0 %866  ;;  %v5152_v5 = vpop.permute.xlu1 %871 }
  0xbf   : > { %2505 = vperm.xlu0 %4184, %v2359_v17   ;;  %2510 = vperm.xlu1 %4185, %v2360_v18   ;;  %v2373_v17 = vld [vmem:[%s6075_s6 + $0x110] sm:$0xff] }
  0xc2   : > { %v5166_v10 = vpop.permute.xlu0 %786  ;;  %v5169_v12 = vpop.permute.xlu1 %791 }
  0xc3   : > { %2425 = vperm.xlu0 %4184, %v2343_v20   ;;  %2430 = vperm.xlu1 %4185, %v2344_v21   ;;  %v2391_v20 = vld [vmem:[%s6075_s6 + $0x1a0] sm:$0xff]  ;;  %v2392_v21 = vld [vmem:[%s6075_s6 + $0x1a8] sm:$0xff] }
  0xc4   : > { %1376 = vmatmul.mubr.bf16.gmra.mrb[12].mxu0 %v4197_v43  ;;  %v4219_v43 = vld [vmem:[%s6070_s1 + $0xb4] ss:$8 sps:$4 sm:$0xff]  }
  0xc5   : > { %3871 = vmatprep.mubr.msk.bf16.mxu0 %vm1239_vm0, %v4198_v44 }
  0xc6   : > { %v5186_v18 = vpop.permute.xlu0 %946  ;;  %v5191_v39 = vpop.permute.xlu1 %951 }
  0xc7   : > { %2515 = vperm.xlu0 %4184, %v2361_v40   ;;  %2520 = vperm.xlu1 %4185, %v2362_v22   ;;  %v4218_v40 = vld [vmem:[%s6070_s1 + $0xa0] ss:$8 sps:$4 sm:$0xff]  }
  0xca   : > { %v5203_v22 = vpop.permute.xlu0 %876  ;;  %v5208_v44 = vpop.permute.xlu1 %881 }
  0xcb   : > { %2435 = vperm.xlu0 %4184, %v2345_v23   ;;  %2440 = vperm.xlu1 %4185, %v2346_v50   ;;  %v2375_v23 = vld [vmem:[%s6075_s6 + $0x120] sm:$0xff]  ;;  %v2376_v50 = vld [vmem:[%s6075_s6 + $0x128] sm:$0xff] }
  0xcc   : > { %1384 = vmatmul.mubr.bf16.gmra.mrb[16].mxu0 %v4200_v28  ;;  %v2394_v28 = vld [vmem:[%s6075_s6 + $0x1b8] sm:$0xff] }
  0xcd   : > { %3872 = vmatprep.mubr.msk.bf16.mxu0 %vm1239_vm0, %v4201_v30 }
  0xce   : > { %v5225_v30 = vpop.permute.xlu1 %801 }
  0xcf   : > { %2525 = vperm.xlu0 %4184, %v2363_v25   ;;  %2530 = vperm.xlu1 %4185, %v2364_v26   ;;  %v2393_v25 = vld [vmem:[%s6075_s6 + $0x1b0] sm:$0xff]  ;;  %v5220_v26 = vpop.permute.xlu0 %796 }
  0xd3   : > { %2445 = vperm.xlu0 %4184, %v2347_v32   ;;  %2450 = vperm.xlu1 %4185, %v2348_v52   ;;  %v4221_v32 = vld [vmem:[%s6070_s1 + $0xb0] ss:$8 sps:$4 sm:$0xff]   ;;  %v4222_v52 = vld [vmem:[%s6070_s1 + $0xc4] ss:$8 sps:$4 sm:$0xff]  }
  0xd4   : > { %1392 = vmatmul.mubr.bf16.gmra.mrb[20].mxu0 %v4203_v36  ;;  %v5239_v36 = vpop.permute.xlu0 %956 }
  0xd5   : > { %3873 = vmatprep.mubr.msk.bf16.mxu0 %vm1239_vm0, %v4204_v37  ;;  %v5242_v37 = vpop.permute.xlu1 %961 }
  0xd7   : > { %2535 = vperm.xlu0 %4184, %v2365_v33   ;;  %2540 = vperm.xlu1 %4185, %v2366_v35   ;;  %v2377_v33 = vld [vmem:[%s6075_s6 + $0x130] sm:$0xff]  ;;  %v2378_v35 = vld [vmem:[%s6075_s6 + $0x138] sm:$0xff] }
  0xdb   : > { %2455 = vperm.xlu0 %4184, %v2349_v56   ;;  %2460 = vperm.xlu1 %4185, %v2350_v38   ;;  %v2395_v56 = vld [vmem:[%s6075_s6 + $0x1c0] sm:$0xff]  ;;  %v2396_v38 = vld [vmem:[%s6075_s6 + $0x1c8] sm:$0xff] }
  0xdc   : > { %1400 = vmatmul.mubr.bf16.gmra.mrb[24].mxu0 %v4206_v47  ;;  %v2379_v47 = vld [vmem:[%s6075_s6 + $0x140] sm:$0xff] }
  0xdd   : > { %3874 = vmatprep.mubr.msk.bf16.mxu0 %vm1239_vm0, %v4207_v62  ;;  %v5259_v62 = vpop.permute.xlu0 %886 }
  0xdf   : > { %2545 = vperm.xlu0 %4184, %v2367_v42   ;;  %2550 = vperm.xlu1 %4185, %v2368_v45   ;;  %v4224_v42 = vld [vmem:[%s6070_s1 + $0xc0] ss:$8 sps:$4 sm:$0xff]   ;;  %v4225_v45 = vld [vmem:[%s6070_s1 + $0xd4] ss:$8 sps:$4 sm:$0xff]  }
  0xe3   : > { %2465 = vperm.xlu0 %4184, %v2351_v48   ;;  %2470 = vperm.xlu1 %4185, %v2352_v63   ;;  %v2380_v48 = vld [vmem:[%s6075_s6 + $0x148] sm:$0xff]  ;;  %v5264_v63 = vpop.permute.xlu1 %891 }
  0xe4   : > { %1408 = vmatmul.mubr.bf16.gmra.mrb[28].mxu0 %v4209_v0  ;;  %v4227_v0 = vld [vmem:[%s6070_s1 + $0xd0] ss:$8 sps:$4 sm:$0xff]  }
  0xe5   : > { %3875 = vmatprep.mubr.msk.bf16.mxu0 %vm1239_vm0, %v4210_v11  ;;  %v5276_v11 = vpop.permute.xlu0 %806 }
  0xe7   : > { %2555 = vperm.xlu0 %4184, %v2369_v53   ;;  %2560 = vperm.xlu1 %4185, %v2370_v55   ;;  %v2397_v53 = vld [vmem:[%s6075_s6 + $0x1d0] sm:$0xff]  ;;  %v2398_v55 = vld [vmem:[%s6075_s6 + $0x1d8] sm:$0xff] }
  0xeb   : > { %2475 = vperm.xlu0 %4184, %v2353_v59   ;;  %2480 = vperm.xlu1 %4185, %v2354_v61   ;;  %v4228_v59 = vld [vmem:[%s6070_s1 + $0xe4] ss:$8 sps:$4 sm:$0xff]   ;;  %v5281_v61 = vpop.permute.xlu1 %811 }
  0xec   : > { %1416 = vmatmul.mubr.bf16.gmra.mrb[32].mxu0 %v4212_v6  ;;  %v2399_v6 = vld [vmem:[%s6075_s6 + $0x1e0] sm:$0xff] }
  0xed   : > { %3876 = vmatprep.mubr.msk.bf16.mxu0 %vm1239_vm0, %v4213_v7  ;;  %v5293_v7 = vpop.permute.xlu0 %966 }
  0xef   : > { %2645 = vperm.xlu0 %4184, %v2387_v1   ;;  %2650 = vperm.xlu1 %4185, %v2388_v4   ;;  %v2381_v1 = vld [vmem:[%s6075_s6 + $0x150] sm:$0xff]  ;;  %v2382_v4 = vld [vmem:[%s6075_s6 + $0x158] sm:$0xff] }
  0xf3   : > { %2565 = vperm.xlu0 %4184, %v2371_v8   ;;  %2570 = vperm.xlu1 %4185, %v2372_v9   ;;  %v2400_v8 = vld [vmem:[%s6075_s6 + $0x1e8] sm:$0xff]  ;;  %v5298_v9 = vpop.permute.xlu1 %971 }
  0xf4   : > { %1424 = vmatmul.mubr.bf16.gmra.mrb[36].mxu0 %v4215_v15  ;;  %v2383_v15 = vld [vmem:[%s6075_s6 + $0x160] sm:$0xff] }
  0xf5   : > { %3877 = vmatprep.mubr.msk.bf16.mxu0 %vm1239_vm0, %v4216_v16  ;;  %v2384_v16 = vld [vmem:[%s6075_s6 + $0x168] sm:$0xff] }
  0xf7   : > { %2655 = vperm.xlu0 %4184, %v2389_v13   ;;  %2660 = vperm.xlu1 %4185, %v2390_v14   ;;  %v4230_v13 = vld [vmem:[%s6070_s1 + $0xe0] ss:$8 sps:$4 sm:$0xff]   ;;  %v4231_v14 = vld [vmem:[%s6070_s1 + $0xf4] ss:$8 sps:$4 sm:$0xff]  }
  0xfb   : > { %2575 = vperm.xlu0 %4184, %v2373_v17   ;;  %2580 = vperm.xlu1 %4185, %v2374_v19   ;;  %v5312_v17 = vpop.permute.xlu0 %896  ;;  %v5315_v19 = vpop.permute.xlu1 %901 }
  0xfc   : > { %1432 = vmatmul.mubr.bf16.gmra.mrb[40].mxu0 %v4218_v40  ;;  %v4233_v40 = vld [vmem:[%s6070_s1 + $0xf0] ss:$8 sps:$4 sm:$0xff]  }
  0xfd   : > { %3878 = vmatprep.mubr.msk.bf16.mxu0 %vm1239_vm0, %v4219_v43  ;;  %v4234_v43 = vld [vmem:[%s6070_s1 + $0x104] ss:$8 sps:$4 sm:$0xff]  }
  0xff   : > { %2665 = vperm.xlu0 %4184, %v2391_v20   ;;  %2670 = vperm.xlu1 %4185, %v2392_v21   ;;  %v2401_v20 = vld [vmem:[%s6075_s6 + $0x1f0] sm:$0xff]  ;;  %v2402_v21 = vld [vmem:[%s6075_s6 + $0x1f8] sm:$0xff] }
 0x103   : > { %2585 = vperm.xlu0 %4184, %v2375_v23   ;;  %2590 = vperm.xlu1 %4185, %v2376_v50   ;;  %v2385_v23 = vld [vmem:[%s6075_s6 + $0x170] sm:$0xff]  ;;  %v5332_v50 = vpop.permute.xlu0 %816 }
 0x104   : > { %1440 = vmatmul.mubr.bf16.gmra.mrb[44].mxu0 %v4221_v32  ;;  %v3560_v32 = vld [vmem:[%s6077_s8] sm:$0xff] }
 0x105   : > { %3879 = vmatprep.mubr.msk.bf16.mxu0 %vm1239_vm0, %v4222_v52  ;;  %v3561_v52 = vld [vmem:[%s6077_s8 + $0x8] sm:$0xff] }
 0x107   : > { %2675 = vperm.xlu0 %4184, %v2393_v25   ;;  %2680 = vperm.xlu1 %4185, %v2394_v28   ;;  %v2386_v25 = vld [vmem:[%s6075_s6 + $0x178] sm:$0xff]  ;;  %v5337_v28 = vpop.permute.xlu1 %821 }
 0x10b   : > { %2595 = vperm.xlu0 %4184, %v2377_v33   ;;  %2600 = vperm.xlu1 %4185, %v2378_v35   ;;  %v4236_v33 = vld [vmem:[%s6070_s1 + $0x100] ss:$8 sps:$4 sm:$0xff]   ;;  %v5349_v35 = vpop.permute.xlu0 %976 }
 0x10c   : > { %1448 = vmatmul.mubr.bf16.gmra.mrb[48].mxu0 %v4224_v42  ;;  %v4239_v42 = vld [vmem:[%s6070_s1 + $0x110] ss:$8 sps:$4 sm:$0xff]  }
 0x10d   : > { %3880 = vmatprep.mubr.msk.bf16.mxu0 %vm1239_vm0, %v4225_v45  ;;  %v4240_v45 = vld [vmem:[%s6070_s1 + $0x124] ss:$8 sps:$4 sm:$0xff]  }
 0x10f   : > { %2685 = vperm.xlu0 %4184, %v2395_v56   ;;  %2690 = vperm.xlu1 %4185, %v2396_v38   ;;  %v4237_v56 = vld [vmem:[%s6070_s1 + $0x114] ss:$8 sps:$4 sm:$0xff]   ;;  %v5354_v38 = vpop.permute.xlu1 %981 }
 0x113   : > { %2605 = vperm.xlu0 %4184, %v2379_v47   ;;  %2610 = vperm.xlu1 %4185, %v2380_v48   ;;  %v4242_v47 = vld [vmem:[%s6070_s1 + $0x120] ss:$8 sps:$4 sm:$0xff]   ;;  %v4243_v48 = vld [vmem:[%s6070_s1 + $0x134] ss:$8 sps:$4 sm:$0xff]  }
 0x114   : > { %1456 = vmatmul.mubr.bf16.gmra.mrb[52].mxu0 %v4227_v0  ;;  %v4248_v0 = vld [vmem:[%s6070_s1 + $0x140] ss:$8 sps:$4 sm:$0xff]  }
 0x115   : > { %3881 = vmatprep.mubr.msk.bf16.mxu0 %vm1239_vm0, %v4228_v59  ;;  %v4249_v59 = vld [vmem:[%s6070_s1 + $0x154] ss:$8 sps:$4 sm:$0xff]  }
 0x117   : > { %2695 = vperm.xlu0 %4184, %v2397_v53   ;;  %2700 = vperm.xlu1 %4185, %v2398_v55   ;;  %v4245_v53 = vld [vmem:[%s6070_s1 + $0x130] ss:$8 sps:$4 sm:$0xff]   ;;  %v4246_v55 = vld [vmem:[%s6070_s1 + $0x144] ss:$8 sps:$4 sm:$0xff]  }
 0x11b   : > { %2615 = vperm.xlu0 %4184, %v2381_v1   ;;  %2620 = vperm.xlu1 %4185, %v2382_v4   ;;  %v4251_v1 = vld [vmem:[%s6070_s1 + $0x150] ss:$8 sps:$4 sm:$0xff]   ;;  %v4252_v4 = vld [vmem:[%s6070_s1 + $0x164] ss:$8 sps:$4 sm:$0xff]  }
 0x11c   : > { %1464 = vmatmul.mubr.bf16.gmra.mrb[56].mxu0 %v4230_v13  ;;  %v4257_v13 = vld [vmem:[%s6070_s1 + $0x170] ss:$8 sps:$4 sm:$0xff]  }
 0x11d   : > { %3882 = vmatprep.mubr.msk.bf16.mxu0 %vm1239_vm0, %v4231_v14  ;;  %v4258_v14 = vld [vmem:[%s6070_s1 + $0x184] ss:$8 sps:$4 sm:$0xff]  }
 0x11f   : > { %2705 = vperm.xlu0 %4184, %v2399_v6   ;;  %2710 = vperm.xlu1 %4185, %v2400_v8   ;;  %v4254_v6 = vld [vmem:[%s6070_s1 + $0x160] ss:$8 sps:$4 sm:$0xff]   ;;  %v4255_v8 = vld [vmem:[%s6070_s1 + $0x174] ss:$8 sps:$4 sm:$0xff]  }
 0x123   : > { %2625 = vperm.xlu0 %4184, %v2383_v15   ;;  %2630 = vperm.xlu1 %4185, %v2384_v16   ;;  %v4260_v15 = vld [vmem:[%s6070_s1 + $0x180] ss:$8 sps:$4 sm:$0xff]  }
 0x124   : > { %1472 = vmatmul.mubr.bf16.gmra.mrb[60].mxu0 %v4233_v40 }
 0x125   : > { %3883 = vmatprep.mubr.msk.bf16.mxu0 %vm1239_vm0, %v4234_v43 }
 0x127   : > { %2715 = vperm.xlu0 %4184, %v2401_v20   ;;  %2720 = vperm.xlu1 %4185, %v2402_v21  }
 0x12b   : > { %2635 = vperm.xlu0 %4184, %v2385_v23   ;;  %2640 = vperm.xlu1 %4185, %v2386_v25  }
 0x12c   : > { %1480 = vmatmul.mubr.bf16.gmra.mrb[64].mxu0 %v4236_v33 }
 0x12d   : > { %3884 = vmatprep.mubr.msk.bf16.mxu0 %vm1239_vm0, %v4237_v56 }
 0x12f   : > { %3564 = vperm.xlu0 %4184, %v3560_v32   ;;  %3569 = vperm.xlu1 %4185, %v3561_v52   ;;  %v4263_v32 = vld [vmem:[%s6072_s3 + $0x4] ss:$16 sps:$4 sm:$0xff]  }
 0x134   : > { %1488 = vmatmul.mubr.bf16.gmra.mrb[68].mxu0 %v4239_v42 }
 0x135   : > { %3885 = vmatprep.mubr.msk.bf16.mxu0 %vm1239_vm0, %v4240_v45 }
 0x13c   : > { %1496 = vmatmul.mubr.bf16.gmra.mrb[72].mxu0 %v4242_v47 }
 0x13d   : > { %3886 = vmatprep.mubr.msk.bf16.mxu0 %vm1239_vm0, %v4243_v48 }
 0x144   : > { %1504 = vmatmul.mubr.bf16.gmra.mrb[76].mxu0 %v4245_v53 }
 0x145   : > { %3887 = vmatprep.mubr.msk.bf16.mxu0 %vm1239_vm0, %v4246_v55 }
 0x14c   : > { %1512 = vmatmul.mubr.bf16.gmra.mrb[80].mxu0 %v4248_v0 }
 0x14d   : > { %3888 = vmatprep.mubr.msk.bf16.mxu0 %vm1239_vm0, %v4249_v59 }
 0x154   : > { %1520 = vmatmul.mubr.bf16.gmra.mrb[84].mxu0 %v4251_v1 }
 0x155   : > { %3889 = vmatprep.mubr.msk.bf16.mxu0 %vm1239_vm0, %v4252_v4 }
 0x15c   : > { %1528 = vmatmul.mubr.bf16.gmra.mrb[88].mxu0 %v4254_v6 }
 0x15d   : > { %3890 = vmatprep.mubr.msk.bf16.mxu0 %vm1239_vm0, %v4255_v8 }
 0x164   : > { %1536 = vmatmul.mubr.bf16.gmra.mrb[92].mxu0 %v4257_v13 }
 0x165   : > { %3891 = vmatprep.mubr.msk.bf16.mxu0 %vm1239_vm0, %v4258_v14 }
 0x16c   : > { %1544 = vmatmul.mubr.bf16.gmra.mrb[96].mxu0 %v4260_v15 }
 0x16d   : > { %2052 = vmatprep.mubr.bf16.mxu0 %v4263_v32 }
 0x17f   : > { %v1353_v16 = vpop.f32.mrb[0].mxu0 }
 0x180   : > { %v1354_v20 = vadd.f32 %v1353_v16, %v5045_v24  ;;  %v1355_v21 = vpop.f32.mrb[1].mxu0 }
 0x181   : > { %v1356_v40 = vpop.f32.mrb[2].mxu0 }
 0x182   : > { %v1552_v43 = vmul.f32 0.01, %v1354_v20  ;;  %v1357_v23 = vadd.f32 %v1356_v40, %v5062_v31  ;;  %v1358_v25 = vpop.f32.mrb[3].mxu0 }
 0x184   : > { %v1553_v52 = vmul.f32 0.01, %v1357_v23  ;;  %v1602_v33 = vmax.f32 %v1354_v20, %v1552_v43 }
 0x186   : > { %v1603_v56 = vmax.f32 %v1357_v23, %v1553_v52 }
 0x187   : > { %v1361_v42 = vpop.f32.mrb[4].mxu0 }
 0x188   : > { %v5414_v45 = vpack.c.bf16 %v1603_v56, %v1602_v33  ;;  %v1362_v47 = vadd.f32 %v1361_v42, %v5113_v49  ;;  %v1363_v24 = vpop.f32.mrb[5].mxu0 }
 0x189   : > { %v1364_v48 = vpop.f32.mrb[6].mxu0  ;;  %v5426_v24 = vpop.permute.xlu0 %906 }
 0x18a   : > { %v1554_v53 = vmul.f32 0.01, %v1362_v47  ;;  %v1365_v55 = vadd.f32 %v1364_v48, %v5118_v51  ;;  %v1366_v31 = vpop.f32.mrb[7].mxu0 }
 0x18b   : > { %v5431_v31 = vpop.permute.xlu1 %911 }
 0x18c   : > { %v1555_v0 = vmul.f32 0.01, %v1365_v55  ;;  %v1604_v59 = vmax.f32 %v1362_v47, %v1554_v53 }
 0x18e   : > { %v1605_v1 = vmax.f32 %v1365_v55, %v1555_v0 }
 0x18f   : > { %v1369_v4 = vpop.f32.mrb[8].mxu0 }
 0x190   : > { %v5418_v6 = vpack.c.bf16 %v1605_v1, %v1604_v59  ;;  %v1370_v8 = vadd.f32 %v1369_v4, %v5166_v10  ;;  %v1371_v13 = vpop.f32.mrb[9].mxu0  ;;  %v827_v4 = vpop.permute.xlu0 %826 }
 0x191   : > { %v1372_v14 = vpop.f32.mrb[10].mxu0 }
 0x192   : > { %v1556_v15 = vmul.f32 0.01, %v1370_v8  ;;  %v1373_v16 = vadd.f32 %v1372_v14, %v5169_v12  ;;  %v1374_v49 = vpop.f32.mrb[11].mxu0  ;;  %v832_v14 = vpop.permute.xlu1 %831 }
 0x194   : > { %v1557_v20 = vmul.f32 0.01, %v1373_v16  ;;  %v1606_v21 = vmax.f32 %v1370_v8, %v1556_v15 }
 0x196   : > { %v1607_v40 = vmax.f32 %v1373_v16, %v1557_v20 }
 0x197   : > { %v1377_v43 = vpop.f32.mrb[12].mxu0 }
 0x198   : > { %v5422_v51 = vpack.c.bf16 %v1607_v40, %v1606_v21  ;;  %v1378_v23 = vadd.f32 %v1377_v43, %v5220_v26  ;;  %v1379_v25 = vpop.f32.mrb[13].mxu0 }
 0x199   : > { %v1380_v32 = vpop.f32.mrb[14].mxu0  ;;  %v5440_v25 = vpop.permute.xlu1 %991 }
 0x19a   : > { %v1558_v52 = vmul.f32 0.01, %v1378_v23  ;;  %v1381_v33 = vadd.f32 %v1380_v32, %v5225_v30  ;;  %v1382_v10 = vpop.f32.mrb[15].mxu0 }
 0x19c   : > { %v1559_v56 = vmul.f32 0.01, %v1381_v33  ;;  %v1608_v42 = vmax.f32 %v1378_v23, %v1558_v52  ;;  %v5438_v23 = vpop.permute.xlu0 %986 }
 0x19e   : > { %v1609_v47 = vmax.f32 %v1381_v33, %v1559_v56 }
 0x19f   : > { %v1385_v12 = vpop.f32.mrb[16].mxu0 }
 0x1a0   : > { %v5428_v48 = vpack.c.bf16 %v1609_v47, %v1608_v42  ;;  %v1386_v53 = vadd.f32 %v1385_v12, %v5276_v11  ;;  %v1387_v55 = vpop.f32.mrb[17].mxu0  ;;  %v5444_v47 = vpop.permute.xlu0 %916 }
 0x1a1   : > { %v1388_v26 = vpop.f32.mrb[18].mxu0 }
 0x1a2   : > { %v1560_v0 = vmul.f32 0.01, %v1386_v53  ;;  %v1389_v59 = vadd.f32 %v1388_v26, %v5281_v61  ;;  %v1390_v1 = vpop.f32.mrb[19].mxu0 }
 0x1a4   : > { %v1561_v30 = vmul.f32 0.01, %v1389_v59  ;;  %v1610_v8 = vmax.f32 %v1386_v53, %v1560_v0  ;;  %v837_v1 = vpop.permute.xlu0 %836 }
 0x1a6   : > { %v1611_v13 = vmax.f32 %v1389_v59, %v1561_v30 }
 0x1a7   : > { %v1393_v15 = vpop.f32.mrb[20].mxu0 }
 0x1a8   : > { %v5434_v16 = vpack.c.bf16 %v1611_v13, %v1610_v8  ;;  %v1394_v49 = vadd.f32 %v1393_v15, %v5332_v50  ;;  %v1395_v20 = vpop.f32.mrb[21].mxu0 }
 0x1a9   : > { %v1396_v11 = vpop.f32.mrb[22].mxu0 }
 0x1aa   : > { %v1562_v21 = vmul.f32 0.01, %v1394_v49  ;;  %v1397_v40 = vadd.f32 %v1396_v11, %v5337_v28  ;;  %v1398_v43 = vpop.f32.mrb[23].mxu0  ;;  %v5446_v28 = vpop.permute.xlu1 %921 }
 0x1ac   : > { %v1563_v61 = vmul.f32 0.01, %v1397_v40  ;;  %v1612_v32 = vmax.f32 %v1394_v49, %v1562_v21 }
 0x1ae   : > { %v1613_v52 = vmax.f32 %v1397_v40, %v1563_v61  ;;  %v842_v49 = vpop.permute.xlu1 %841 }
 0x1af   : > { %v1401_v33 = vpop.f32.mrb[24].mxu0 }
 0x1b0   : > { %v5442_v10 = vpack.c.bf16 %v1613_v52, %v1612_v32  ;;  %v1402_v56 = vadd.f32 %v1401_v33, %v827_v4  ;;  %v1403_v42 = vpop.f32.mrb[25].mxu0 }
 0x1b1   : > { %v1404_v50 = vpop.f32.mrb[26].mxu0 }
 0x1b2   : > { %v1564_v12 = vmul.f32 0.01, %v1402_v56  ;;  %v1405_v53 = vadd.f32 %v1404_v50, %v832_v14  ;;  %v1406_v55 = vpop.f32.mrb[27].mxu0 }
 0x1b4   : > { %v1565_v26 = vmul.f32 0.01, %v1405_v53  ;;  %v1614_v0 = vmax.f32 %v1402_v56, %v1564_v12 }
 0x1b6   : > { %v1615_v59 = vmax.f32 %v1405_v53, %v1565_v26 }
 0x1b7   : > { %v1409_v30 = vpop.f32.mrb[28].mxu0 }
 0x1b8   : > { %v5448_v8 = vpack.c.bf16 %v1615_v59, %v1614_v0  ;;  %v1410_v13 = vadd.f32 %v1409_v30, %v837_v1  ;;  %v1411_v15 = vpop.f32.mrb[29].mxu0 }
 0x1b9   : > { %v1412_v4 = vpop.f32.mrb[30].mxu0 }
 0x1ba   : > { %v1566_v20 = vmul.f32 0.01, %v1410_v13  ;;  %v1413_v11 = vadd.f32 %v1412_v4, %v842_v49  ;;  %v1414_v21 = vpop.f32.mrb[31].mxu0 }
 0x1bc   : > { %v1567_v40 = vmul.f32 0.01, %v1413_v11  ;;  %v1616_v43 = vmax.f32 %v1410_v13, %v1566_v20 }
 0x1be   : > { %v1617_v14 = vmax.f32 %v1413_v11, %v1567_v40 }
 0x1bf   : > { %v1417_v61 = vpop.f32.mrb[32].mxu0 }
 0x1c0   : > { %v5450_v32 = vpack.c.bf16 %v1617_v14, %v1616_v43  ;;  %v1418_v52 = vadd.f32 %v1417_v61, %v5040_v46  ;;  %v1419_v33 = vpop.f32.mrb[33].mxu0 }
 0x1c1   : > { %v1420_v56 = vpop.f32.mrb[34].mxu0 }
 0x1c2   : > { %v1568_v42 = vmul.f32 0.01, %v1418_v52  ;;  %v1421_v50 = vadd.f32 %v1420_v56, %v5057_v29  ;;  %v1422_v12 = vpop.f32.mrb[35].mxu0  ;;  %v4290_v29 = vld [vmem:[%s6072_s3 + $0xc] ss:$16 sps:$4 sm:$0xff]  }
 0x1c3   : > { %3928 = vmatprep.mubr.msk.bf16.mxu1 %vm1992_vm4, %v4290_v29 }
 0x1c4   : > { %v1569_v53 = vmul.f32 0.01, %v1421_v50  ;;  %v1618_v55 = vmax.f32 %v1418_v52, %v1568_v42 }
 0x1c6   : > { %v1619_v26 = vmax.f32 %v1421_v50, %v1569_v53 }
 0x1c7   : > { %v1425_v0 = vpop.f32.mrb[36].mxu0 }
 0x1c8   : > { %v1426_v59 = vadd.f32 %v1425_v0, %v5093_v41  ;;  %v1427_v1 = vpop.f32.mrb[37].mxu0  ;;  %v1660_v30 = vpack.c.bf16 %v1619_v26, %v1618_v55 }
 0x1c9   : > { %v1428_v13 = vpop.f32.mrb[38].mxu0 }
 0x1ca   : > { %v1570_v15 = vmul.f32 0.01, %v1426_v59  ;;  %v1429_v49 = vadd.f32 %v1428_v13, %v5096_v60  ;;  %4043 = vmatprep.subr.bf16.mxu0 %v1660_v30  ;;  %v1430_v46 = vpop.f32.mrb[39].mxu0 }
 0x1cb   : > { %4044 = vmatpush3.bf16.msra.mxu0 %v5414_v45 }
 0x1cc   : > { %v1571_v4 = vmul.f32 0.01, %v1429_v49  ;;  %v1620_v20 = vmax.f32 %v1426_v59, %v1570_v15 }
 0x1ce   : > { %v1621_v41 = vmax.f32 %v1429_v49, %v1571_v4 }
 0x1cf   : > { %v1433_v11 = vpop.f32.mrb[40].mxu0 }
 0x1d0   : > { %v1434_v21 = vadd.f32 %v1433_v11, %v5147_v2  ;;  %v1435_v40 = vpop.f32.mrb[41].mxu0  ;;  %v1661_v43 = vpack.c.bf16 %v1621_v41, %v1620_v20 }
 0x1d1   : > { %v1436_v60 = vpop.f32.mrb[42].mxu0 }
 0x1d2   : > { %v1572_v14 = vmul.f32 0.01, %v1434_v21  ;;  %v1437_v61 = vadd.f32 %v1436_v60, %v5152_v5  ;;  %4045 = vmatprep.subr.bf16.mxu0 %v1661_v43  ;;  %v1438_v45 = vpop.f32.mrb[43].mxu0 }
 0x1d3   : > { %4046 = vmatpush3.bf16.msra.mxu0 %v5418_v6 }
 0x1d4   : > { %v1573_v52 = vmul.f32 0.01, %v1437_v61  ;;  %v1622_v33 = vmax.f32 %v1434_v21, %v1572_v14 }
 0x1d6   : > { %v1623_v56 = vmax.f32 %v1437_v61, %v1573_v52 }
 0x1d7   : > { %v1441_v42 = vpop.f32.mrb[44].mxu0 }
 0x1d8   : > { %v1442_v50 = vadd.f32 %v1441_v42, %v5203_v22  ;;  %v1443_v12 = vpop.f32.mrb[45].mxu0  ;;  %v1662_v53 = vpack.c.bf16 %v1623_v56, %v1622_v33 }
 0x1d9   : > { %v1444_v55 = vpop.f32.mrb[46].mxu0 }
 0x1da   : > { %v1574_v2 = vmul.f32 0.01, %v1442_v50  ;;  %v1445_v26 = vadd.f32 %v1444_v55, %v5208_v44  ;;  %4047 = vmatprep.subr.bf16.mxu0 %v1662_v53  ;;  %v1446_v0 = vpop.f32.mrb[47].mxu0 }
 0x1db   : > { %4048 = vmatpush3.bf16.msra.mxu0 %v5422_v51 }
 0x1dc   : > { %v1575_v5 = vmul.f32 0.01, %v1445_v26  ;;  %v1624_v59 = vmax.f32 %v1442_v50, %v1574_v2 }
 0x1de   : > { %v1625_v1 = vmax.f32 %v1445_v26, %v1575_v5 }
 0x1df   : > { %v1449_v6 = vpop.f32.mrb[48].mxu0 }
 0x1e0   : > { %v1450_v30 = vadd.f32 %v1449_v6, %v5259_v62  ;;  %v1451_v13 = vpop.f32.mrb[49].mxu0  ;;  %v1663_v15 = vpack.c.bf16 %v1625_v1, %v1624_v59 }
 0x1e1   : > { %v1452_v49 = vpop.f32.mrb[50].mxu0 }
 0x1e2   : > { %v1576_v22 = vmul.f32 0.01, %v1450_v30  ;;  %v1453_v46 = vadd.f32 %v1452_v49, %v5264_v63  ;;  %4049 = vmatprep.subr.bf16.mxu0 %v1663_v15  ;;  %v1454_v29 = vpop.f32.mrb[51].mxu0 }
 0x1e3   : > { %4050 = vmatpush3.bf16.msra.mxu0 %v5428_v48 }
 0x1e4   : > { %v1577_v44 = vmul.f32 0.01, %v1453_v46  ;;  %v1626_v4 = vmax.f32 %v1450_v30, %v1576_v22 }
 0x1e6   : > { %v1627_v20 = vmax.f32 %v1453_v46, %v1577_v44 }
 0x1e7   : > { %v1457_v51 = vpop.f32.mrb[52].mxu0 }
 0x1e8   : > { %v1458_v41 = vadd.f32 %v1457_v51, %v5312_v17  ;;  %v1459_v11 = vpop.f32.mrb[53].mxu0  ;;  %v1664_v21 = vpack.c.bf16 %v1627_v20, %v1626_v4 }
 0x1e9   : > { %v1460_v40 = vpop.f32.mrb[54].mxu0 }
 0x1ea   : > { %v1578_v62 = vmul.f32 0.01, %v1458_v41  ;;  %v1461_v43 = vadd.f32 %v1460_v40, %v5315_v19  ;;  %4051 = vmatprep.subr.bf16.mxu0 %v1664_v21  ;;  %v1462_v60 = vpop.f32.mrb[55].mxu0  ;;  %v4266_v40 = vld [vmem:[%s6072_s3 + $0x20] ss:$16 sps:$4 sm:$0xff]  }
 0x1eb   : > { %4052 = vmatpush3.bf16.msra.mxu0 %v5434_v16 }
 0x1ec   : > { %v1579_v63 = vmul.f32 0.01, %v1461_v43  ;;  %v1628_v14 = vmax.f32 %v1458_v41, %v1578_v62  ;;  %v4267_v62 = vld [vmem:[%s6072_s3 + $0x44] ss:$16 sps:$4 sm:$0xff]  }
 0x1ee   : > { %v1629_v61 = vmax.f32 %v1461_v43, %v1579_v63 }
 0x1ef   : > { %v1465_v48 = vpop.f32.mrb[56].mxu0 }
 0x1f0   : > { %v1466_v45 = vadd.f32 %v1465_v48, %v5426_v24  ;;  %v1467_v52 = vpop.f32.mrb[57].mxu0  ;;  %v1665_v33 = vpack.c.bf16 %v1629_v61, %v1628_v14 }
 0x1f1   : > { %v1468_v56 = vpop.f32.mrb[58].mxu0 }
 0x1f2   : > { %v1580_v17 = vmul.f32 0.01, %v1466_v45  ;;  %v1469_v42 = vadd.f32 %v1468_v56, %v5431_v31  ;;  %4053 = vmatprep.subr.bf16.mxu0 %v1665_v33  ;;  %v1470_v50 = vpop.f32.mrb[59].mxu0  ;;  %v4269_v56 = vld [vmem:[%s6072_s3 + $0x40] ss:$16 sps:$4 sm:$0xff]  }
 0x1f3   : > { %4054 = vmatpush3.bf16.msra.mxu0 %v5442_v10 }
 0x1f4   : > { %v1581_v19 = vmul.f32 0.01, %v1469_v42  ;;  %v1630_v12 = vmax.f32 %v1466_v45, %v1580_v17  ;;  %v4270_v17 = vld [vmem:[%s6072_s3 + $0x64] ss:$16 sps:$4 sm:$0xff]  }
 0x1f6   : > { %v1631_v53 = vmax.f32 %v1469_v42, %v1581_v19 }
 0x1f7   : > { %v1473_v16 = vpop.f32.mrb[60].mxu0 }
 0x1f8   : > { %v1474_v55 = vadd.f32 %v1473_v16, %v5444_v47  ;;  %v1475_v2 = vpop.f32.mrb[61].mxu0  ;;  %v1666_v26 = vpack.c.bf16 %v1631_v53, %v1630_v12 }
 0x1f9   : > { %v1476_v0 = vpop.f32.mrb[62].mxu0 }
 0x1fa   : > { %v1582_v24 = vmul.f32 0.01, %v1474_v55  ;;  %v1477_v5 = vadd.f32 %v1476_v0, %v5446_v28  ;;  %4055 = vmatprep.subr.bf16.mxu0 %v1666_v26  ;;  %v1478_v59 = vpop.f32.mrb[63].mxu0  ;;  %v4261_v28 = vld [vmem:[%s6072_s3] ss:$16 sps:$4 sm:$0xff]  }
 0x1fb   : > { %4056 = vmatpush3.bf16.msra.mxu0 %v5448_v8  ;;  %v4264_v8 = vld [vmem:[%s6072_s3 + $0x24] ss:$16 sps:$4 sm:$0xff]   ;;  %v4272_v0 = vld [vmem:[%s6072_s3 + $0x60] ss:$16 sps:$4 sm:$0xff]  }
 0x1fc   : > { %v1583_v31 = vmul.f32 0.01, %v1477_v5  ;;  %v1632_v1 = vmax.f32 %v1474_v55, %v1582_v24  ;;  %v4273_v24 = vld [vmem:[%s6072_s3 + $0x84] ss:$16 sps:$4 sm:$0xff]  }
 0x1fe   : > { %v1633_v6 = vmax.f32 %v1477_v5, %v1583_v31 }
 0x1ff   : > { %v1481_v10 = vpop.f32.mrb[64].mxu0 }
 0x200   : > { %v1482_v30 = vadd.f32 %v1481_v10, %v5074_v34  ;;  %v1483_v13 = vpop.f32.mrb[65].mxu0  ;;  %v1667_v15 = vpack.c.bf16 %v1633_v6, %v1632_v1 }
 0x201   : > { %v1484_v49 = vpop.f32.mrb[66].mxu0 }
 0x202   : > { %v1584_v47 = vmul.f32 0.01, %v1482_v30  ;;  %v1485_v22 = vadd.f32 %v1484_v49, %v5079_v54  ;;  %4057 = vmatprep.subr.bf16.mxu0 %v1667_v15  ;;  %v1486_v46 = vpop.f32.mrb[67].mxu0  ;;  %v4275_v49 = vld [vmem:[%s6072_s3 + $0x80] ss:$16 sps:$4 sm:$0xff]  }
 0x203   : > { %4058 = vmatpush3.bf16.msra.mxu0 %v5450_v32 }
 0x204   : > { %v1585_v29 = vmul.f32 0.01, %v1485_v22  ;;  %v1634_v34 = vmax.f32 %v1482_v30, %v1584_v47  ;;  %v4276_v47 = vld [vmem:[%s6072_s3 + $0xa4] ss:$16 sps:$4 sm:$0xff]  }
 0x206   : > { %v1635_v44 = vmax.f32 %v1485_v22, %v1585_v29  ;;  %2053 = vmatmul.mubr.bf16.vlgmr.msra.gmra.mrb[100].mxu0 %v4261_v28 }
 0x207   : > { %v1489_v4 = vpop.f32.mrb[68].mxu0  ;;  %2060 = vmatprep.mubr.bf16.mxu0 %v4264_v8 }
 0x208   : > { %v1490_v54 = vadd.f32 %v1489_v4, %v5130_v3  ;;  %v1491_v20 = vpop.f32.mrb[69].mxu0  ;;  %v1668_v51 = vpack.c.bf16 %v1635_v44, %v1634_v34 }
 0x209   : > { %v1492_v41 = vpop.f32.mrb[70].mxu0  ;;  %v4278_v20 = vld [vmem:[%s6072_s3 + $0xa0] ss:$16 sps:$4 sm:$0xff]  }
 0x20a   : > { %v1586_v11 = vmul.f32 0.01, %v1490_v54  ;;  %v1493_v21 = vadd.f32 %v1492_v41, %v5135_v57  ;;  %2126 = vmatpush1.bf16.msra.mxu1 %v1668_v51  ;;  %v1494_v32 = vpop.f32.mrb[71].mxu0  ;;  %v4279_v51 = vld [vmem:[%s6072_s3 + $0xc4] ss:$16 sps:$4 sm:$0xff]  }
 0x20b   : > { %2127 = vmatprep.subr.bf16.mxu1 %v4473_v27 }
 0x20c   : > { %v1587_v43 = vmul.f32 0.01, %v1493_v21  ;;  %v1636_v3 = vmax.f32 %v1490_v54, %v1586_v11 }
 0x20e   : > { %v1637_v60 = vmax.f32 %v1493_v21, %v1587_v43  ;;  %2061 = vmatmul.mubr.bf16.gmra.mrb[104].mxu0 %v4266_v40 }
 0x20f   : > { %v1497_v63 = vpop.f32.mrb[72].mxu0  ;;  %2068 = vmatprep.mubr.bf16.mxu0 %v4267_v62 }
 0x210   : > { %v1498_v57 = vadd.f32 %v1497_v63, %v5186_v18  ;;  %v1499_v14 = vpop.f32.mrb[73].mxu0  ;;  %v1669_v61 = vpack.c.bf16 %v1637_v60, %v1636_v3  ;;  %v4281_v63 = vld [vmem:[%s6072_s3 + $0xc0] ss:$16 sps:$4 sm:$0xff]  }
 0x211   : > { %v1500_v48 = vpop.f32.mrb[74].mxu0 }
 0x212   : > { %v1588_v45 = vmul.f32 0.01, %v1498_v57  ;;  %v1501_v52 = vadd.f32 %v1500_v48, %v5191_v39  ;;  %2128 = vmatpush1.bf16.msra.mxu1 %v1669_v61  ;;  %v1502_v33 = vpop.f32.mrb[75].mxu0  ;;  %v997_v48 = vpop.permute.xlu0 %996 }
 0x213   : > { %2129 = vmatprep.subr.bf16.mxu1 %v4473_v27 }
 0x214   : > { %v1589_v42 = vmul.f32 0.01, %v1501_v52  ;;  %v1638_v18 = vmax.f32 %v1498_v57, %v1588_v45  ;;  %v4282_v57 = vld [vmem:[%s6072_s3 + $0xe4] ss:$16 sps:$4 sm:$0xff]  }
 0x216   : > { %v1639_v50 = vmax.f32 %v1501_v52, %v1589_v42  ;;  %2069 = vmatmul.mubr.bf16.gmra.mrb[108].mxu0 %v4269_v56  ;;  %v1002_v56 = vpop.permute.xlu1 %1001 }
 0x217   : > { %v1505_v19 = vpop.f32.mrb[76].mxu0  ;;  %2076 = vmatprep.mubr.bf16.mxu0 %v4270_v17 }
 0x218   : > { %v1506_v39 = vadd.f32 %v1505_v19, %v5239_v36  ;;  %v1507_v12 = vpop.f32.mrb[77].mxu0  ;;  %v1670_v53 = vpack.c.bf16 %v1639_v50, %v1638_v18  ;;  %v4284_v19 = vld [vmem:[%s6072_s3 + $0xe0] ss:$16 sps:$4 sm:$0xff]  }
 0x219   : > { %v1508_v16 = vpop.f32.mrb[78].mxu0 }
 0x21a   : > { %v1590_v55 = vmul.f32 0.01, %v1506_v39  ;;  %v1509_v2 = vadd.f32 %v1508_v16, %v5242_v37  ;;  %2130 = vmatpush1.bf16.msra.mxu1 %v1670_v53  ;;  %v1510_v26 = vpop.f32.mrb[79].mxu0 }
 0x21b   : > { %2131 = vmatprep.subr.bf16.mxu1 %v4473_v27 }
 0x21c   : > { %v1591_v5 = vmul.f32 0.01, %v1509_v2  ;;  %v1640_v36 = vmax.f32 %v1506_v39, %v1590_v55  ;;  %v4285_v39 = vld [vmem:[%s6072_s3 + $0x104] ss:$16 sps:$4 sm:$0xff]   ;;  %v1007_v55 = vpop.permute.xlu0 %1006 }
 0x21e   : > { %v1641_v59 = vmax.f32 %v1509_v2, %v1591_v5  ;;  %2077 = vmatmul.mubr.bf16.gmra.mrb[112].mxu0 %v4272_v0  ;;  %v1012_v5 = vpop.permute.xlu1 %1011 }
 0x21f   : > { %v1513_v31 = vpop.f32.mrb[80].mxu0  ;;  %2084 = vmatprep.mubr.bf16.mxu0 %v4273_v24 }
 0x220   : > { %v1514_v37 = vadd.f32 %v1513_v31, %v5293_v7  ;;  %v1515_v1 = vpop.f32.mrb[81].mxu0  ;;  %v1671_v6 = vpack.c.bf16 %v1641_v59, %v1640_v36 }
 0x221   : > { %v1516_v10 = vpop.f32.mrb[82].mxu0 }
 0x222   : > { %v1592_v30 = vmul.f32 0.01, %v1514_v37  ;;  %v1517_v13 = vadd.f32 %v1516_v10, %v5298_v9  ;;  %2132 = vmatpush1.bf16.msra.mxu1 %v1671_v6  ;;  %v1518_v15 = vpop.f32.mrb[83].mxu0 }
 0x223   : > { %2133 = vmatprep.subr.bf16.mxu1 %v4473_v27  ;;  %v4288_v15 = vld [vmem:[%s6072_s3 + $0x8] ss:$16 sps:$4 sm:$0xff]  }
 0x224   : > { %v1593_v22 = vmul.f32 0.01, %v1517_v13  ;;  %v1642_v7 = vmax.f32 %v1514_v37, %v1592_v30  ;;  %v4287_v37 = vld [vmem:[%s6072_s3 + $0x100] ss:$16 sps:$4 sm:$0xff]  }
 0x226   : > { %v1643_v28 = vmax.f32 %v1517_v13, %v1593_v22  ;;  %2085 = vmatmul.mubr.bf16.gmra.mrb[116].mxu0 %v4275_v49  ;;  %v4291_v49 = vld [vmem:[%s6072_s3 + $0x2c] ss:$16 sps:$4 sm:$0xff]  }
 0x227   : > { %v1521_v46 = vpop.f32.mrb[84].mxu0  ;;  %2092 = vmatprep.mubr.bf16.mxu0 %v4276_v47  ;;  %v4293_v47 = vld [vmem:[%s6072_s3 + $0x28] ss:$16 sps:$4 sm:$0xff]   ;;  %v4294_v22 = vld [vmem:[%s6072_s3 + $0x4c] ss:$16 sps:$4 sm:$0xff]  }
 0x228   : > { %v1522_v9 = vadd.f32 %v1521_v46, %v5349_v35  ;;  %v1523_v8 = vpop.f32.mrb[85].mxu0  ;;  %v1672_v29 = vpack.c.bf16 %v1643_v28, %v1642_v7  ;;  %v4296_v7 = vld [vmem:[%s6072_s3 + $0x48] ss:$16 sps:$4 sm:$0xff]   ;;  %v4297_v28 = vld [vmem:[%s6072_s3 + $0x6c] ss:$16 sps:$4 sm:$0xff]  }
 0x229   : > { %v1524_v34 = vpop.f32.mrb[86].mxu0  ;;  %v4299_v46 = vld [vmem:[%s6072_s3 + $0x68] ss:$16 sps:$4 sm:$0xff]  }
 0x22a   : > { %v1594_v44 = vmul.f32 0.01, %v1522_v9  ;;  %v1525_v4 = vadd.f32 %v1524_v34, %v5354_v38  ;;  %2134 = vmatpush1.bf16.msra.mxu1 %v1672_v29  ;;  %v1526_v54 = vpop.f32.mrb[87].mxu0  ;;  %v4302_v8 = vld [vmem:[%s6072_s3 + $0x88] ss:$16 sps:$4 sm:$0xff]  }
 0x22b   : > { %2135 = vmatprep.subr.bf16.mxu1 %v4473_v27  ;;  %v4303_v29 = vld [vmem:[%s6072_s3 + $0xac] ss:$16 sps:$4 sm:$0xff]   ;;  %v4305_v34 = vld [vmem:[%s6072_s3 + $0xa8] ss:$16 sps:$4 sm:$0xff]  }
 0x22c   : > { %v1595_v41 = vmul.f32 0.01, %v1525_v4  ;;  %v1644_v35 = vmax.f32 %v1522_v9, %v1594_v44  ;;  %v4300_v9 = vld [vmem:[%s6072_s3 + $0x8c] ss:$16 sps:$4 sm:$0xff]  }
 0x22d   : > { %v4306_v44 = vld [vmem:[%s6072_s3 + $0xcc] ss:$16 sps:$4 sm:$0xff]  }
 0x22e   : > { %v1645_v11 = vmax.f32 %v1525_v4, %v1595_v41  ;;  %2093 = vmatmul.mubr.bf16.gmra.mrb[120].mxu0 %v4278_v20  ;;  %v4308_v4 = vld [vmem:[%s6072_s3 + $0xc8] ss:$16 sps:$4 sm:$0xff]   ;;  %v4309_v54 = vld [vmem:[%s6072_s3 + $0xec] ss:$16 sps:$4 sm:$0xff]  }
 0x22f   : > { %v1529_v21 = vpop.f32.mrb[88].mxu0  ;;  %2100 = vmatprep.mubr.bf16.mxu0 %v4279_v51  ;;  %v4311_v20 = vld [vmem:[%s6072_s3 + $0xe8] ss:$16 sps:$4 sm:$0xff]   ;;  %v4312_v51 = vld [vmem:[%s6072_s3 + $0x10c] ss:$16 sps:$4 sm:$0xff]  }
 0x230   : > { %v1530_v38 = vadd.f32 %v1529_v21, %v5438_v23  ;;  %v1531_v32 = vpop.f32.mrb[89].mxu0  ;;  %v1673_v40 = vpack.c.bf16 %v1645_v11, %v1644_v35  ;;  %v4314_v41 = vld [vmem:[%s6072_s3 + $0x108] ss:$16 sps:$4 sm:$0xff]  }
 0x231   : > { %v1532_v62 = vpop.f32.mrb[90].mxu0 }
 0x232   : > { %v1596_v43 = vmul.f32 0.01, %v1530_v38  ;;  %v1533_v3 = vadd.f32 %v1532_v62, %v5440_v25  ;;  %2136 = vmatpush1.bf16.msra.mxu1 %v1673_v40  ;;  %v1534_v60 = vpop.f32.mrb[91].mxu0 }
 0x233   : > { %2137 = vmatprep.subr.bf16.mxu1 %v4473_v27 }
 0x234   : > { %v1597_v14 = vmul.f32 0.01, %v1533_v3  ;;  %v1646_v23 = vmax.f32 %v1530_v38, %v1596_v43 }
 0x236   : > { %v1647_v61 = vmax.f32 %v1533_v3, %v1597_v14  ;;  %2101 = vmatmul.mubr.bf16.gmra.mrb[124].mxu0 %v4281_v63 }
 0x237   : > { %v1537_v45 = vpop.f32.mrb[92].mxu0  ;;  %2108 = vmatprep.mubr.bf16.mxu0 %v4282_v57 }
 0x238   : > { %v1538_v25 = vadd.f32 %v1537_v45, %v997_v48  ;;  %v1539_v52 = vpop.f32.mrb[93].mxu0  ;;  %v1674_v33 = vpack.c.bf16 %v1647_v61, %v1646_v23  ;;  %v4317_v45 = vld [vmem:[%s6074_s5 + $0x4] ss:$8 sps:$4 sm:$0xff]  }
 0x239   : > { %v1540_v17 = vpop.f32.mrb[94].mxu0 }
 0x23a   : > { %v1598_v42 = vmul.f32 0.01, %v1538_v25  ;;  %v1541_v18 = vadd.f32 %v1540_v17, %v1002_v56  ;;  %2138 = vmatpush1.bf16.msra.mxu1 %v1674_v33  ;;  %v1542_v50 = vpop.f32.mrb[95].mxu0 }
 0x23b   : > { %2139 = vmatprep.subr.bf16.mxu1 %v4473_v27 }
 0x23c   : > { %v1599_v12 = vmul.f32 0.01, %v1541_v18  ;;  %v1648_v53 = vmax.f32 %v1538_v25, %v1598_v42 }
 0x23e   : > { %v1649_v16 = vmax.f32 %v1541_v18, %v1599_v12  ;;  %2109 = vmatmul.mubr.bf16.gmra.mrb[128].mxu0 %v4284_v19 }
 0x23f   : > { %v1545_v2 = vpop.f32.mrb[96].mxu0  ;;  %2116 = vmatprep.mubr.bf16.mxu0 %v4285_v39 }
 0x240   : > { %v1546_v26 = vadd.f32 %v1545_v2, %v1007_v55  ;;  %v1547_v0 = vpop.f32.mrb[97].mxu0  ;;  %v1675_v24 = vpack.c.bf16 %v1649_v16, %v1648_v53 }
 0x241   : > { %v1548_v36 = vpop.f32.mrb[98].mxu0 }
 0x242   : > { %v1600_v59 = vmul.f32 0.01, %v1546_v26  ;;  %v1549_v31 = vadd.f32 %v1548_v36, %v1012_v5  ;;  %2140 = vmatpush1.bf16.msra.mxu1 %v1675_v24  ;;  %v1550_v1 = vpop.f32.mrb[99].mxu0 }
 0x243   : > { %2141 = vmatprep.subr.bf16.mxu1 %v4473_v27 }
 0x244   : > { %v1601_v6 = vmul.f32 0.01, %v1549_v31  ;;  %v1650_v10 = vmax.f32 %v1546_v26, %v1600_v59 }
 0x246   : > { %v1651_v30 = vmax.f32 %v1549_v31, %v1601_v6  ;;  %2117 = vmatmul.mubr.bf16.gmra.mrb[132].mxu0 %v4287_v37 }
 0x248   : > { %v1676_v13 = vpack.c.bf16 %v1651_v30, %v1650_v10 }
 0x24a   : > { %2142 = vmatpush1.bf16.msra.mxu1 %v1676_v13 }
 0x24b   : > { %3107 = vmatprep.subr.bf16.mxu1 %v4473_v27 }
 0x24d   : > { %2158 = vmatmul.mubr.bf16.vlgmr.msra.gmra.mrb[0].mxu1 %v4288_v15 }
 0x24e   : > { %3929 = vmatprep.mubr.msk.bf16.mxu1 %vm1992_vm4, %v4291_v49 }
 0x255   : > { %2166 = vmatmul.mubr.bf16.gmra.mrb[4].mxu1 %v4293_v47 }
 0x256   : > { %3930 = vmatprep.mubr.msk.bf16.mxu1 %vm1992_vm4, %v4294_v22 }
 0x25d   : > { %2174 = vmatmul.mubr.bf16.gmra.mrb[8].mxu1 %v4296_v7 }
 0x25e   : > { %3931 = vmatprep.mubr.msk.bf16.mxu1 %vm1992_vm4, %v4297_v28 }
 0x265   : > { %2182 = vmatmul.mubr.bf16.gmra.mrb[12].mxu1 %v4299_v46 }
 0x266   : > { %3932 = vmatprep.mubr.msk.bf16.mxu1 %vm1992_vm4, %v4300_v9 }
 0x26d   : > { %2190 = vmatmul.mubr.bf16.gmra.mrb[16].mxu1 %v4302_v8 }
 0x26e   : > { %3933 = vmatprep.mubr.msk.bf16.mxu1 %vm1992_vm4, %v4303_v29 }
 0x275   : > { %2198 = vmatmul.mubr.bf16.gmra.mrb[20].mxu1 %v4305_v34  ;;  %v1734_v34 = vpop.permute.xlu0 %1733 }
 0x276   : > { %3934 = vmatprep.mubr.msk.bf16.mxu1 %vm1992_vm4, %v4306_v44 }
 0x27d   : > { %2206 = vmatmul.mubr.bf16.gmra.mrb[24].mxu1 %v4308_v4  ;;  %v1739_v4 = vpop.permute.xlu1 %1738 }
 0x27e   : > { %3935 = vmatprep.mubr.msk.bf16.mxu1 %vm1992_vm4, %v4309_v54 }
 0x285   : > { %2214 = vmatmul.mubr.bf16.gmra.mrb[28].mxu1 %v4311_v20 }
 0x286   : > { %3936 = vmatprep.mubr.msk.bf16.mxu1 %vm1992_vm4, %v4312_v51 }
 0x28d   : > { %2222 = vmatmul.mubr.bf16.gmra.mrb[32].mxu1 %v4314_v41 }
 0x28e   : > { %4001 = vmatprep.mubr.msk.bf16.mxu1 %vm1992_vm4, %v4317_v45 }
 0x2d9   : > { %v4059_v35 = vpop.f32.mrb[100].mxu0 }
 0x2da   : > { %v4060_v11 = vpop.f32.mrb[101].mxu0 }
 0x2db   : > { %v4061_v21 = vadd.f32 %v4060_v11, %v4059_v35  ;;  %v4062_v38 = vpop.f32.mrb[102].mxu0 }
 0x2dc   : > { %v4063_v32 = vpop.f32.mrb[103].mxu0 }
 0x2dd   : > { %v4064_v40 = vadd.f32 %v4063_v32, %v4062_v38  ;;  %v2055_v44 = vadd.f32 %v4061_v21, %v1734_v34 }
 0x2df   : > { %v2058_v41 = vadd.f32 %v4064_v40, %v1739_v4 }
 0x2e1   : > { %v4065_v62 = vpop.f32.mrb[104].mxu0 }
 0x2e2   : > { %v4066_v43 = vpop.f32.mrb[105].mxu0 }
 0x2e3   : > { %v5613_v3 = vadd.f32 %v4066_v43, %v4065_v62  ;;  %v4068_v60 = vpop.f32.mrb[106].mxu0  ;;  %v1744_v43 = vpop.permute.xlu0 %1743 }
 0x2e4   : > { %v4069_v63 = vpop.f32.mrb[107].mxu0 }
 0x2e5   : > { %v5615_v57 = vadd.f32 %v4069_v63, %v4068_v60 }
 0x2e9   : > { %v4071_v14 = vpop.f32.mrb[108].mxu0 }
 0x2ea   : > { %v4072_v23 = vpop.f32.mrb[109].mxu0 }
 0x2eb   : > { %v5617_v61 = vadd.f32 %v4072_v23, %v4071_v14  ;;  %v4074_v48 = vpop.f32.mrb[110].mxu0  ;;  %v2063_v14 = vadd.f32 %v5613_v3, %v1744_v43  ;;  %v1749_v23 = vpop.permute.xlu1 %1748 }
 0x2ec   : > { %v4075_v25 = vpop.f32.mrb[111].mxu0 }
 0x2ed   : > { %v5622_v52 = vadd.f32 %v4075_v25, %v4074_v48 }
 0x2f1   : > { %v4077_v33 = vpop.f32.mrb[112].mxu0 }
 0x2f2   : > { %v4078_v56 = vpop.f32.mrb[113].mxu0 }
 0x2f3   : > { %v5625_v17 = vadd.f32 %v4078_v56, %v4077_v33  ;;  %v4080_v42 = vpop.f32.mrb[114].mxu0  ;;  %v2066_v33 = vadd.f32 %v5615_v57, %v1749_v23 }
 0x2f4   : > { %v4081_v18 = vpop.f32.mrb[115].mxu0 }
 0x2f5   : > { %v5627_v50 = vadd.f32 %v4081_v18, %v4080_v42 }
 0x2f9   : > { %v4083_v19 = vpop.f32.mrb[116].mxu0 }
 0x2fa   : > { %v4084_v39 = vpop.f32.mrb[117].mxu0 }
 0x2fb   : > { %v5629_v12 = vadd.f32 %v4084_v39, %v4083_v19  ;;  %v4086_v53 = vpop.f32.mrb[118].mxu0  ;;  %v1754_v39 = vpop.permute.xlu0 %1753 }
 0x2fc   : > { %v4087_v16 = vpop.f32.mrb[119].mxu0  ;;  %v2071_v3 = vadd.f32 %v5617_v61, %v1754_v39 }
 0x2fd   : > { %v5631_v55 = vadd.f32 %v4087_v16, %v4086_v53 }
 0x301   : > { %v4089_v2 = vpop.f32.mrb[120].mxu0 }
 0x302   : > { %v4090_v26 = vpop.f32.mrb[121].mxu0 }
 0x303   : > { %v5633_v0 = vadd.f32 %v4090_v26, %v4089_v2  ;;  %v4092_v24 = vpop.f32.mrb[122].mxu0  ;;  %v1759_v2 = vpop.permute.xlu1 %1758 }
 0x304   : > { %v4093_v5 = vpop.f32.mrb[123].mxu0  ;;  %v2074_v57 = vadd.f32 %v5622_v52, %v1759_v2 }
 0x305   : > { %v5635_v36 = vadd.f32 %v4093_v5, %v4092_v24 }
 0x309   : > { %v4095_v59 = vpop.f32.mrb[124].mxu0 }
 0x30a   : > { %v4096_v31 = vpop.f32.mrb[125].mxu0 }
 0x30b   : > { %v5637_v37 = vadd.f32 %v4096_v31, %v4095_v59  ;;  %v4098_v1 = vpop.f32.mrb[126].mxu0 }
 0x30c   : > { %v4099_v6 = vpop.f32.mrb[127].mxu0 }
 0x30d   : > { %v5639_v10 = vadd.f32 %v4099_v6, %v4098_v1 }
 0x311   : > { %v4101_v30 = vpop.f32.mrb[128].mxu0 }
 0x312   : > { %v4102_v13 = vpop.f32.mrb[129].mxu0 }
 0x313   : > { %v5641_v15 = vadd.f32 %v4102_v13, %v4101_v30  ;;  %v4104_v49 = vpop.f32.mrb[130].mxu0 }
 0x314   : > { %v4105_v47 = vpop.f32.mrb[131].mxu0 }
 0x315   : > { %v5643_v22 = vadd.f32 %v4105_v47, %v4104_v49  ;;  %v1764_v49 = vpop.permute.xlu0 %1763 }
 0x316   : > { %v2079_v61 = vadd.f32 %v5625_v17, %v1764_v49 }
 0x319   : > { %v4107_v7 = vpop.f32.mrb[132].mxu0 }
 0x31a   : > { %v4108_v28 = vpop.f32.mrb[133].mxu0 }
 0x31b   : > { %v5645_v46 = vadd.f32 %v4108_v28, %v4107_v7  ;;  %v4110_v9 = vpop.f32.mrb[134].mxu0  ;;  %v1769_v28 = vpop.permute.xlu1 %1768 }
 0x31c   : > { %v4111_v8 = vpop.f32.mrb[135].mxu0  ;;  %v2082_v52 = vadd.f32 %v5627_v50, %v1769_v28 }
 0x31d   : > { %v5647_v29 = vadd.f32 %v4111_v8, %v4110_v9 }
 0x320   : > { %v2159_v54 = vpop.f32.mrb[0].mxu1 }
 0x321   : > { %v2160_v20 = vadd.f32 %v2159_v54, %v2055_v44  ;;  %v2161_v51 = vpop.f32.mrb[1].mxu1 }
 0x322   : > { %v2162_v35 = vpop.f32.mrb[2].mxu1 }
 0x323   : > { %v2230_v11 = vmul.f32 0.01, %v2160_v20  ;;  %v2163_v38 = vadd.f32 %v2162_v35, %v2058_v41  ;;  %v2164_v32 = vpop.f32.mrb[3].mxu1  ;;  %v1774_v35 = vpop.permute.xlu0 %1773 }
 0x324   : > { %v2087_v17 = vadd.f32 %v5629_v12, %v1774_v35  ;;  %v1779_v32 = vpop.permute.xlu1 %1778 }
 0x325   : > { %v2231_v62 = vmul.f32 0.01, %v2163_v38  ;;  %v2248_v60 = vmax.f32 %v2160_v20, %v2230_v11  ;;  %v2090_v50 = vadd.f32 %v5631_v55, %v1779_v32 }
 0x327   : > { %v2249_v63 = vmax.f32 %v2163_v38, %v2231_v62 }
 0x328   : > { %v2167_v48 = vpop.f32.mrb[4].mxu1 }
 0x329   : > { %v2266_v45 = vpack.c.bf16 %v2249_v63, %v2248_v60  ;;  %v2168_v25 = vadd.f32 %v2167_v48, %v2063_v14  ;;  %v2169_v21 = vpop.f32.mrb[5].mxu1 }
 0x32a   : > { %v2170_v56 = vpop.f32.mrb[6].mxu1  ;;  %v1784_v21 = vpop.permute.xlu0 %1783 }
 0x32b   : > { %v2232_v42 = vmul.f32 0.01, %v2168_v25  ;;  %v2171_v40 = vadd.f32 %v2170_v56, %v2066_v33  ;;  %3108 = vmatpush1.bf16.msra.mxu1 %v2266_v45  ;;  %v2172_v18 = vpop.f32.mrb[7].mxu1  ;;  %v2095_v12 = vadd.f32 %v5633_v0, %v1784_v21 }
 0x32c   : > { %3109 = vmatprep.subr.bf16.mxu1 %v4473_v27 }
 0x32d   : > { %v2233_v19 = vmul.f32 0.01, %v2171_v40  ;;  %v2250_v53 = vmax.f32 %v2168_v25, %v2232_v42  ;;  %v1789_v42 = vpop.permute.xlu1 %1788 }
 0x32e   : > { %v2098_v55 = vadd.f32 %v5635_v36, %v1789_v42  ;;  %v4323_v42 = vld [vmem:[%s6074_s5 + $0x20] ss:$8 sps:$4 sm:$0xff]  }
 0x32f   : > { %v2251_v16 = vmax.f32 %v2171_v40, %v2233_v19 }
 0x330   : > { %v2175_v26 = vpop.f32.mrb[8].mxu1 }
 0x331   : > { %v2267_v24 = vpack.c.bf16 %v2251_v16, %v2250_v53  ;;  %v2176_v5 = vadd.f32 %v2175_v26, %v2071_v3  ;;  %v2177_v59 = vpop.f32.mrb[9].mxu1 }
 0x332   : > { %v2178_v31 = vpop.f32.mrb[10].mxu1 }
 0x333   : > { %v2234_v1 = vmul.f32 0.01, %v2176_v5  ;;  %v2179_v6 = vadd.f32 %v2178_v31, %v2074_v57  ;;  %3110 = vmatpush1.bf16.msra.mxu1 %v2267_v24  ;;  %v2180_v30 = vpop.f32.mrb[11].mxu1  ;;  %v1794_v24 = vpop.permute.xlu0 %1793 }
 0x334   : > { %3111 = vmatprep.subr.bf16.mxu1 %v4473_v27  ;;  %v2103_v0 = vadd.f32 %v5637_v37, %v1794_v24  ;;  %v1799_v57 = vpop.permute.xlu1 %1798  ;;  %v4339_v24 = vld [vmem:[%s6074_s5 + $0x84] ss:$8 sps:$4 sm:$0xff]  }
 0x335   : > { %v2235_v13 = vmul.f32 0.01, %v2179_v6  ;;  %v2252_v47 = vmax.f32 %v2176_v5, %v2234_v1  ;;  %v2106_v36 = vadd.f32 %v5639_v10, %v1799_v57  ;;  %v4345_v57 = vld [vmem:[%s6074_s5 + $0xa4] ss:$8 sps:$4 sm:$0xff]  }
 0x337   : > { %v2253_v7 = vmax.f32 %v2179_v6, %v2235_v13  ;;  %v1804_v28 = vpop.permute.xlu0 %1803 }
 0x338   : > { %v2183_v9 = vpop.f32.mrb[12].mxu1  ;;  %v2111_v37 = vadd.f32 %v5641_v15, %v1804_v28  ;;  %v4362_v28 = vld [vmem:[%s6074_s5 + $0xf0] ss:$8 sps:$4 sm:$0xff]  }
 0x339   : > { %v2268_v8 = vpack.c.bf16 %v2253_v7, %v2252_v47  ;;  %v2184_v34 = vadd.f32 %v2183_v9, %v2079_v61  ;;  %v2185_v44 = vpop.f32.mrb[13].mxu1 }
 0x33a   : > { %v2186_v4 = vpop.f32.mrb[14].mxu1 }
 0x33b   : > { %v2236_v54 = vmul.f32 0.01, %v2184_v34  ;;  %v2187_v20 = vadd.f32 %v2186_v4, %v2082_v52  ;;  %3112 = vmatpush1.bf16.msra.mxu1 %v2268_v8  ;;  %v2188_v51 = vpop.f32.mrb[15].mxu1 }
 0x33c   : > { %3113 = vmatprep.subr.bf16.mxu1 %v4473_v27 }
 0x33d   : > { %v2237_v41 = vmul.f32 0.01, %v2187_v20  ;;  %v2254_v11 = vmax.f32 %v2184_v34, %v2236_v54  ;;  %v1809_v34 = vpop.permute.xlu1 %1808 }
 0x33e   : > { %v2114_v10 = vadd.f32 %v5643_v22, %v1809_v34  ;;  %v4368_v34 = vld [vmem:[%s6074_s5 + $0x110] ss:$8 sps:$4 sm:$0xff]  }
 0x33f   : > { %v2255_v38 = vmax.f32 %v2187_v20, %v2237_v41 }
 0x340   : > { %v2191_v62 = vpop.f32.mrb[16].mxu1 }
 0x341   : > { %v2269_v43 = vpack.c.bf16 %v2255_v38, %v2254_v11  ;;  %v2192_v60 = vadd.f32 %v2191_v62, %v2087_v17  ;;  %v2193_v63 = vpop.f32.mrb[17].mxu1  ;;  %v1814_v38 = vpop.permute.xlu0 %1813 }
 0x342   : > { %v2194_v14 = vpop.f32.mrb[18].mxu1  ;;  %v2119_v15 = vadd.f32 %v5645_v46, %v1814_v38  ;;  %v1819_v62 = vpop.permute.xlu1 %1818  ;;  %v4315_v46 = vld [vmem:[%s6074_s5] ss:$8 sps:$4 sm:$0xff]   ;;  %v4384_v38 = vld [vmem:[%s6074_s5 + $0x174] ss:$8 sps:$4 sm:$0xff]  }
 0x343   : > { %v2238_v23 = vmul.f32 0.01, %v2192_v60  ;;  %v2195_v48 = vadd.f32 %v2194_v14, %v2090_v50  ;;  %3114 = vmatpush1.bf16.msra.mxu1 %v2269_v43  ;;  %v2196_v45 = vpop.f32.mrb[19].mxu1  ;;  %v2122_v22 = vadd.f32 %v5647_v29, %v1819_v62  ;;  %v4318_v29 = vld [vmem:[%s6074_s5 + $0x14] ss:$8 sps:$4 sm:$0xff]  }
 0x344   : > { %3115 = vmatprep.subr.bf16.mxu1 %v4473_v27  ;;  %v4387_v62 = vld [vmem:[%s6074_s5 + $0x184] ss:$8 sps:$4 sm:$0xff]  }
 0x345   : > { %v2239_v25 = vmul.f32 0.01, %v2195_v48  ;;  %v2256_v33 = vmax.f32 %v2192_v60, %v2238_v23 }
 0x347   : > { %v2257_v56 = vmax.f32 %v2195_v48, %v2239_v25 }
 0x348   : > { %v2199_v40 = vpop.f32.mrb[20].mxu1 }
 0x349   : > { %v2270_v18 = vpack.c.bf16 %v2257_v56, %v2256_v33  ;;  %v2200_v19 = vadd.f32 %v2199_v40, %v2095_v12  ;;  %v2201_v39 = vpop.f32.mrb[21].mxu1  ;;  %v4321_v12 = vld [vmem:[%s6074_s5 + $0x24] ss:$8 sps:$4 sm:$0xff]   ;;  %v4324_v40 = vld [vmem:[%s6074_s5 + $0x34] ss:$8 sps:$4 sm:$0xff]  }
 0x34a   : > { %v2202_v53 = vpop.f32.mrb[22].mxu1  ;;  %v4329_v39 = vld [vmem:[%s6074_s5 + $0x40] ss:$8 sps:$4 sm:$0xff]  }
 0x34b   : > { %v2240_v16 = vmul.f32 0.01, %v2200_v19  ;;  %v2203_v3 = vadd.f32 %v2202_v53, %v2098_v55  ;;  %3116 = vmatpush1.bf16.msra.mxu1 %v2270_v18  ;;  %v2204_v2 = vpop.f32.mrb[23].mxu1  ;;  %v4326_v18 = vld [vmem:[%s6074_s5 + $0x30] ss:$8 sps:$4 sm:$0xff]  }
 0x34c   : > { %3117 = vmatprep.subr.bf16.mxu1 %v4473_v27  ;;  %v4330_v55 = vld [vmem:[%s6074_s5 + $0x54] ss:$8 sps:$4 sm:$0xff]   ;;  %v4332_v53 = vld [vmem:[%s6074_s5 + $0x50] ss:$8 sps:$4 sm:$0xff]  }
 0x34d   : > { %v2241_v26 = vmul.f32 0.01, %v2203_v3  ;;  %v2258_v5 = vmax.f32 %v2200_v19, %v2240_v16  ;;  %v4327_v19 = vld [vmem:[%s6074_s5 + $0x44] ss:$8 sps:$4 sm:$0xff]   ;;  %v4336_v2 = vld [vmem:[%s6074_s5 + $0x74] ss:$8 sps:$4 sm:$0xff]  }
 0x34e   : > { %v4333_v16 = vld [vmem:[%s6074_s5 + $0x64] ss:$8 sps:$4 sm:$0xff]  }
 0x34f   : > { %v2259_v59 = vmax.f32 %v2203_v3, %v2241_v26  ;;  %v4335_v3 = vld [vmem:[%s6074_s5 + $0x60] ss:$8 sps:$4 sm:$0xff]   ;;  %v4338_v26 = vld [vmem:[%s6074_s5 + $0x70] ss:$8 sps:$4 sm:$0xff]  }
 0x350   : > { %v2207_v31 = vpop.f32.mrb[24].mxu1 }
 0x351   : > { %v2271_v1 = vpack.c.bf16 %v2259_v59, %v2258_v5  ;;  %v2208_v6 = vadd.f32 %v2207_v31, %v2103_v0  ;;  %v2209_v30 = vpop.f32.mrb[25].mxu1  ;;  %v4341_v5 = vld [vmem:[%s6074_s5 + $0x80] ss:$8 sps:$4 sm:$0xff]   ;;  %v4342_v59 = vld [vmem:[%s6074_s5 + $0x94] ss:$8 sps:$4 sm:$0xff]  }
 0x352   : > { %v2210_v13 = vpop.f32.mrb[26].mxu1  ;;  %v4344_v0 = vld [vmem:[%s6074_s5 + $0x90] ss:$8 sps:$4 sm:$0xff]   ;;  %v4347_v31 = vld [vmem:[%s6074_s5 + $0xa0] ss:$8 sps:$4 sm:$0xff]  }
 0x353   : > { %v2242_v49 = vmul.f32 0.01, %v2208_v6  ;;  %v2211_v47 = vadd.f32 %v2210_v13, %v2106_v36  ;;  %3118 = vmatpush1.bf16.msra.mxu1 %v2271_v1  ;;  %v2212_v7 = vpop.f32.mrb[27].mxu1  ;;  %v4348_v1 = vld [vmem:[%s6074_s5 + $0xb4] ss:$8 sps:$4 sm:$0xff]  }
 0x354   : > { %3119 = vmatprep.subr.bf16.mxu1 %v4473_v27  ;;  %v4351_v30 = vld [vmem:[%s6074_s5 + $0xc4] ss:$8 sps:$4 sm:$0xff]   ;;  %v4353_v36 = vld [vmem:[%s6074_s5 + $0xc0] ss:$8 sps:$4 sm:$0xff]   ;;  %v4354_v13 = vld [vmem:[%s6074_s5 + $0xd4] ss:$8 sps:$4 sm:$0xff]  }
 0x355   : > { %v2243_v61 = vmul.f32 0.01, %v2211_v47  ;;  %v2260_v9 = vmax.f32 %v2208_v6, %v2242_v49  ;;  %v4350_v6 = vld [vmem:[%s6074_s5 + $0xb0] ss:$8 sps:$4 sm:$0xff]   ;;  %v4359_v7 = vld [vmem:[%s6074_s5 + $0xe0] ss:$8 sps:$4 sm:$0xff]  }
 0x356   : > { %v4356_v49 = vld [vmem:[%s6074_s5 + $0xd0] ss:$8 sps:$4 sm:$0xff]  }
 0x357   : > { %v2261_v8 = vmax.f32 %v2211_v47, %v2243_v61  ;;  %v4357_v47 = vld [vmem:[%s6074_s5 + $0xe4] ss:$8 sps:$4 sm:$0xff]   ;;  %v4360_v61 = vld [vmem:[%s6074_s5 + $0xf4] ss:$8 sps:$4 sm:$0xff]  }
 0x358   : > { %v2215_v44 = vpop.f32.mrb[28].mxu1 }
 0x359   : > { %v2272_v52 = vpack.c.bf16 %v2261_v8, %v2260_v9  ;;  %v2216_v4 = vadd.f32 %v2215_v44, %v2111_v37  ;;  %v2217_v54 = vpop.f32.mrb[29].mxu1  ;;  %v4363_v9 = vld [vmem:[%s6074_s5 + $0x104] ss:$8 sps:$4 sm:$0xff]   ;;  %v4365_v8 = vld [vmem:[%s6074_s5 + $0x100] ss:$8 sps:$4 sm:$0xff]  }
 0x35a   : > { %v2218_v20 = vpop.f32.mrb[30].mxu1  ;;  %v4366_v37 = vld [vmem:[%s6074_s5 + $0x114] ss:$8 sps:$4 sm:$0xff]   ;;  %v4369_v44 = vld [vmem:[%s6074_s5 + $0x124] ss:$8 sps:$4 sm:$0xff]  }
 0x35b   : > { %v2244_v51 = vmul.f32 0.01, %v2216_v4  ;;  %v2219_v41 = vadd.f32 %v2218_v20, %v2114_v10  ;;  %3120 = vmatpush1.bf16.msra.mxu1 %v2272_v52  ;;  %v2220_v35 = vpop.f32.mrb[31].mxu1  ;;  %v4371_v52 = vld [vmem:[%s6074_s5 + $0x120] ss:$8 sps:$4 sm:$0xff]  }
 0x35c   : > { %3121 = vmatprep.subr.bf16.mxu1 %v4473_v27  ;;  %v4374_v54 = vld [vmem:[%s6074_s5 + $0x130] ss:$8 sps:$4 sm:$0xff]   ;;  %v4375_v10 = vld [vmem:[%s6074_s5 + $0x144] ss:$8 sps:$4 sm:$0xff]   ;;  %v4377_v20 = vld [vmem:[%s6074_s5 + $0x140] ss:$8 sps:$4 sm:$0xff]  }
 0x35d   : > { %v2245_v11 = vmul.f32 0.01, %v2219_v41  ;;  %v2262_v17 = vmax.f32 %v2216_v4, %v2244_v51  ;;  %v4372_v4 = vld [vmem:[%s6074_s5 + $0x134] ss:$8 sps:$4 sm:$0xff]   ;;  %v4381_v35 = vld [vmem:[%s6074_s5 + $0x164] ss:$8 sps:$4 sm:$0xff]  }
 0x35e   : > { %v4378_v51 = vld [vmem:[%s6074_s5 + $0x154] ss:$8 sps:$4 sm:$0xff]  }
 0x35f   : > { %v2263_v32 = vmax.f32 %v2219_v41, %v2245_v11  ;;  %v4380_v41 = vld [vmem:[%s6074_s5 + $0x150] ss:$8 sps:$4 sm:$0xff]   ;;  %v4383_v11 = vld [vmem:[%s6074_s5 + $0x160] ss:$8 sps:$4 sm:$0xff]  }
 0x360   : > { %v2223_v43 = vpop.f32.mrb[32].mxu1 }
 0x361   : > { %v2273_v60 = vpack.c.bf16 %v2263_v32, %v2262_v17  ;;  %v2224_v63 = vadd.f32 %v2223_v43, %v2119_v15  ;;  %v2225_v50 = vpop.f32.mrb[33].mxu1  ;;  %v5833_v17 = vpop.permute.xlu0 %2485  ;;  %v4386_v15 = vld [vmem:[%s6074_s5 + $0x170] ss:$8 sps:$4 sm:$0xff]  }
 0x362   : > { %v2226_v14 = vpop.f32.mrb[34].mxu1  ;;  %v5836_v32 = vpop.permute.xlu1 %2490 }
 0x363   : > { %v2246_v23 = vmul.f32 0.01, %v2224_v63  ;;  %v2227_v48 = vadd.f32 %v2226_v14, %v2122_v22  ;;  %3122 = vmatpush1.bf16.msra.mxu1 %v2273_v60  ;;  %v2228_v45 = vpop.f32.mrb[35].mxu1  ;;  %v4390_v22 = vld [vmem:[%s6074_s5 + $0x194] ss:$8 sps:$4 sm:$0xff]  }
 0x364   : > { %3123 = vmatprep.subr.bf16.mxu1 %v4473_v27  ;;  %v4320_v27 = vld [vmem:[%s6074_s5 + $0x10] ss:$8 sps:$4 sm:$0xff]  }
 0x365   : > { %v2247_v25 = vmul.f32 0.01, %v2227_v48  ;;  %v2264_v21 = vmax.f32 %v2224_v63, %v2246_v23  ;;  %v2406_v43 = vpop.permute.xlu0 %2405  ;;  %v4389_v63 = vld [vmem:[%s6074_s5 + $0x180] ss:$8 sps:$4 sm:$0xff]  }
 0x366   : > { %v2411_v60 = vpop.permute.xlu1 %2410 }
 0x367   : > { %v2265_v33 = vmax.f32 %v2227_v48, %v2247_v25  ;;  %v4392_v48 = vld [vmem:[%s6074_s5 + $0x190] ss:$8 sps:$4 sm:$0xff]   ;;  %v4393_v25 = vld [vmem:[%s6074_s5 + $0x1a4] ss:$8 sps:$4 sm:$0xff]  }
 0x369   : > { %v2274_v56 = vpack.c.bf16 %v2265_v33, %v2264_v21  ;;  %v5848_v50 = vpop.permute.xlu0 %2495 }
 0x36a   : > { %v5853_v14 = vpop.permute.xlu1 %2500 }
 0x36b   : > { %3124 = vmatpush1.bf16.msra.mxu1 %v2274_v56  ;;  %v4395_v56 = vld [vmem:[%s6074_s5 + $0x1a0] ss:$8 sps:$4 sm:$0xff]  }
 0x36d   : > { %v2416_v23 = vpop.permute.xlu0 %2415 }
 0x36e   : > { %3140 = vmatmul.mubr.bf16.vlgmr.msra.gmra.mrb[36].mxu1 %v4315_v46  ;;  %v2421_v45 = vpop.permute.xlu1 %2420  ;;  %v4396_v46 = vld [vmem:[%s6074_s5 + $0x1b4] ss:$8 sps:$4 sm:$0xff]  }
 0x36f   : > { %4002 = vmatprep.mubr.msk.bf16.mxu1 %vm1992_vm4, %v4318_v29 }
 0x371   : > { %v5862_v21 = vpop.permute.xlu0 %2505 }
 0x372   : > { %v5865_v33 = vpop.permute.xlu1 %2510 }
 0x375   : > { %v2426_v29 = vpop.permute.xlu0 %2425 }
 0x376   : > { %3148 = vmatmul.mubr.bf16.gmra.mrb[40].mxu1 %v4320_v27  ;;  %v2431_v27 = vpop.permute.xlu1 %2430 }
 0x377   : > { %4003 = vmatprep.mubr.msk.bf16.mxu1 %vm1992_vm4, %v4321_v12 }
 0x37e   : > { %3156 = vmatmul.mubr.bf16.gmra.mrb[44].mxu1 %v4323_v42 }
 0x37f   : > { %4004 = vmatprep.mubr.msk.bf16.mxu1 %vm1992_vm4, %v4324_v40 }
 0x386   : > { %3164 = vmatmul.mubr.bf16.gmra.mrb[48].mxu1 %v4326_v18  ;;  %v4398_v18 = vld [vmem:[%s6074_s5 + $0x1b0] ss:$8 sps:$4 sm:$0xff]  }
 0x387   : > { %4005 = vmatprep.mubr.msk.bf16.mxu1 %vm1992_vm4, %v4327_v19  ;;  %v5877_v19 = vpop.permute.xlu0 %2515 }
 0x38e   : > { %3172 = vmatmul.mubr.bf16.gmra.mrb[52].mxu1 %v4329_v39 }
 0x38f   : > { %4006 = vmatprep.mubr.msk.bf16.mxu1 %vm1992_vm4, %v4330_v55  ;;  %v4399_v55 = vld [vmem:[%s6074_s5 + $0x1c4] ss:$8 sps:$4 sm:$0xff]  }
 0x396   : > { %3180 = vmatmul.mubr.bf16.gmra.mrb[56].mxu1 %v4332_v53 }
 0x397   : > { %4007 = vmatprep.mubr.msk.bf16.mxu1 %vm1992_vm4, %v4333_v16 }
 0x39e   : > { %3188 = vmatmul.mubr.bf16.gmra.mrb[60].mxu1 %v4335_v3 }
 0x39f   : > { %4008 = vmatprep.mubr.msk.bf16.mxu1 %vm1992_vm4, %v4336_v2  ;;  %v5882_v2 = vpop.permute.xlu1 %2520 }
 0x3a6   : > { %3196 = vmatmul.mubr.bf16.gmra.mrb[64].mxu1 %v4338_v26  ;;  %v4413_v26 = vld [vmem:[%s6076_s7 + $0x4] ss:$16 sps:$4 sm:$0xff]  }
 0x3a7   : > { %4009 = vmatprep.mubr.msk.bf16.mxu1 %vm1992_vm4, %v4339_v24  ;;  %3624 = vmatprep.mubr.bf16.mxu0 %v4413_v26 }
 0x3ae   : > { %3204 = vmatmul.mubr.bf16.gmra.mrb[68].mxu1 %v4341_v5 }
 0x3af   : > { %4010 = vmatprep.mubr.msk.bf16.mxu1 %vm1992_vm4, %v4342_v59 }
 0x3b6   : > { %3212 = vmatmul.mubr.bf16.gmra.mrb[72].mxu1 %v4344_v0  ;;  %v2436_v0 = vpop.permute.xlu0 %2435 }
 0x3b7   : > { %4011 = vmatprep.mubr.msk.bf16.mxu1 %vm1992_vm4, %v4345_v57 }
 0x3be   : > { %3220 = vmatmul.mubr.bf16.gmra.mrb[76].mxu1 %v4347_v31 }
 0x3bf   : > { %4012 = vmatprep.mubr.msk.bf16.mxu1 %vm1992_vm4, %v4348_v1 }
 0x3c6   : > { %3228 = vmatmul.mubr.bf16.gmra.mrb[80].mxu1 %v4350_v6 }
 0x3c7   : > { %4013 = vmatprep.mubr.msk.bf16.mxu1 %vm1992_vm4, %v4351_v30  ;;  %v4401_v30 = vld [vmem:[%s6074_s5 + $0x1c0] ss:$8 sps:$4 sm:$0xff]  }
 0x3ce   : > { %3236 = vmatmul.mubr.bf16.gmra.mrb[84].mxu1 %v4353_v36  ;;  %v2441_v36 = vpop.permute.xlu1 %2440 }
 0x3cf   : > { %4014 = vmatprep.mubr.msk.bf16.mxu1 %vm1992_vm4, %v4354_v13 }
 0x3d6   : > { %3244 = vmatmul.mubr.bf16.gmra.mrb[88].mxu1 %v4356_v49  ;;  %v4402_v49 = vld [vmem:[%s6074_s5 + $0x1d4] ss:$8 sps:$4 sm:$0xff]  }
 0x3d7   : > { %4015 = vmatprep.mubr.msk.bf16.mxu1 %vm1992_vm4, %v4357_v47 }
 0x3de   : > { %3252 = vmatmul.mubr.bf16.gmra.mrb[92].mxu1 %v4359_v7 }
 0x3df   : > { %4016 = vmatprep.mubr.msk.bf16.mxu1 %vm1992_vm4, %v4360_v61 }
 0x3e6   : > { %3260 = vmatmul.mubr.bf16.gmra.mrb[96].mxu1 %v4362_v28 }
 0x3e7   : > { %4017 = vmatprep.mubr.msk.bf16.mxu1 %vm1992_vm4, %v4363_v9  ;;  %v5896_v9 = vpop.permute.xlu0 %2525 }
 0x3ee   : > { %3268 = vmatmul.mubr.bf16.gmra.mrb[100].mxu1 %v4365_v8 }
 0x3ef   : > { %4018 = vmatprep.mubr.msk.bf16.mxu1 %vm1992_vm4, %v4366_v37 }
 0x3f6   : > { %3276 = vmatmul.mubr.bf16.gmra.mrb[104].mxu1 %v4368_v34  ;;  %v5899_v34 = vpop.permute.xlu1 %2530 }
 0x3f7   : > { %4019 = vmatprep.mubr.msk.bf16.mxu1 %vm1992_vm4, %v4369_v44 }
 0x3fe   : > { %3284 = vmatmul.mubr.bf16.gmra.mrb[108].mxu1 %v4371_v52 }
 0x3ff   : > { %4020 = vmatprep.mubr.msk.bf16.mxu1 %vm1992_vm4, %v4372_v4 }
 0x406   : > { %3292 = vmatmul.mubr.bf16.gmra.mrb[112].mxu1 %v4374_v54 }
 0x407   : > { %4021 = vmatprep.mubr.msk.bf16.mxu1 %vm1992_vm4, %v4375_v10  ;;  %v4404_v10 = vld [vmem:[%s6074_s5 + $0x1d0] ss:$8 sps:$4 sm:$0xff]  }
 0x40e   : > { %3300 = vmatmul.mubr.bf16.gmra.mrb[116].mxu1 %v4377_v20 }
 0x40f   : > { %4022 = vmatprep.mubr.msk.bf16.mxu1 %vm1992_vm4, %v4378_v51  ;;  %v4405_v51 = vld [vmem:[%s6074_s5 + $0x1e4] ss:$8 sps:$4 sm:$0xff]  }
 0x416   : > { %3308 = vmatmul.mubr.bf16.gmra.mrb[120].mxu1 %v4380_v41 }
 0x417   : > { %4023 = vmatprep.mubr.msk.bf16.mxu1 %vm1992_vm4, %v4381_v35 }
 0x41e   : > { %3316 = vmatmul.mubr.bf16.gmra.mrb[124].mxu1 %v4383_v11 }
 0x41f   : > { %4024 = vmatprep.mubr.msk.bf16.mxu1 %vm1992_vm4, %v4384_v38  ;;  %v2446_v38 = vpop.permute.xlu0 %2445 }
 0x426   : > { %3324 = vmatmul.mubr.bf16.gmra.mrb[128].mxu1 %v4386_v15 }
 0x427   : > { %4025 = vmatprep.mubr.msk.bf16.mxu1 %vm1992_vm4, %v4387_v62  ;;  %v2451_v62 = vpop.permute.xlu1 %2450 }
 0x42e   : > { %3332 = vmatmul.mubr.bf16.gmra.mrb[132].mxu1 %v4389_v63 }
 0x42f   : > { %4026 = vmatprep.mubr.msk.bf16.mxu1 %vm1992_vm4, %v4390_v22 }
 0x436   : > { %3340 = vmatmul.mubr.bf16.gmra.mrb[136].mxu1 %v4392_v48 }
 0x437   : > { %4027 = vmatprep.mubr.msk.bf16.mxu1 %vm1992_vm4, %v4393_v25  ;;  %v5915_v25 = vpop.permute.xlu0 %2535 }
 0x43e   : > { %3348 = vmatmul.mubr.bf16.gmra.mrb[140].mxu1 %v4395_v56 }
 0x43f   : > { %4028 = vmatprep.mubr.msk.bf16.mxu1 %vm1992_vm4, %v4396_v46  ;;  %v4408_v46 = vld [vmem:[%s6074_s5 + $0x1f4] ss:$8 sps:$4 sm:$0xff]  }
 0x441   : > { %v3141_v12 = vpop.f32.mrb[36].mxu1 }
 0x442   : > { %v3142_v42 = vadd.f32 %v3141_v12, %v2406_v43  ;;  %v3143_v40 = vpop.f32.mrb[37].mxu1 }
 0x443   : > { %v3144_v39 = vpop.f32.mrb[38].mxu1 }
 0x444   : > { %v3396_v53 = vmul.f32 0.01, %v3142_v42  ;;  %v3145_v16 = vadd.f32 %v3144_v39, %v2411_v60  ;;  %v3146_v3 = vpop.f32.mrb[39].mxu1 }
 0x446   : > { %v3397_v24 = vmul.f32 0.01, %v3145_v16  ;;  %3356 = vmatmul.mubr.bf16.gmra.mrb[144].mxu1 %v4398_v18  ;;  %v3460_v5 = vmax.f32 %v3142_v42, %v3396_v53  ;;  %v5920_v42 = vpop.permute.xlu1 %2540 }
 0x447   : > { %4029 = vmatprep.mubr.msk.bf16.mxu1 %vm1992_vm4, %v4399_v55  ;;  %v2456_v55 = vpop.permute.xlu0 %2455 }
 0x448   : > { %v3461_v59 = vmax.f32 %v3145_v16, %v3397_v24  ;;  %v4410_v24 = vld [vmem:[%s6074_s5 + $0x1f0] ss:$8 sps:$4 sm:$0xff]  }
 0x449   : > { %v3149_v57 = vpop.f32.mrb[40].mxu1 }
 0x44a   : > { %v5888_v31 = vpack.c.bf16 %v3461_v59, %v3460_v5  ;;  %v3150_v1 = vadd.f32 %v3149_v57, %v2416_v23  ;;  %v3151_v6 = vpop.f32.mrb[41].mxu1  ;;  %v2461_v5 = vpop.permute.xlu1 %2460 }
 0x44b   : > { %v3152_v13 = vpop.f32.mrb[42].mxu1 }
 0x44c   : > { %v3398_v47 = vmul.f32 0.01, %v3150_v1  ;;  %v3153_v7 = vadd.f32 %v3152_v13, %v2421_v45  ;;  %v3154_v61 = vpop.f32.mrb[43].mxu1  ;;  %v4407_v45 = vld [vmem:[%s6074_s5 + $0x1e0] ss:$8 sps:$4 sm:$0xff]  }
 0x44e   : > { %v3399_v28 = vmul.f32 0.01, %v3153_v7  ;;  %3364 = vmatmul.mubr.bf16.gmra.mrb[148].mxu1 %v4401_v30  ;;  %v3462_v8 = vmax.f32 %v3150_v1, %v3398_v47  ;;  %v5928_v30 = vpop.permute.xlu0 %2545 }
 0x44f   : > { %4030 = vmatprep.mubr.msk.bf16.mxu1 %vm1992_vm4, %v4402_v49  ;;  %v5930_v49 = vpop.permute.xlu1 %2550 }
 0x450   : > { %v3463_v37 = vmax.f32 %v3153_v7, %v3399_v28 }
 0x451   : > { %v3157_v44 = vpop.f32.mrb[44].mxu1 }
 0x452   : > { %v5901_v52 = vpack.c.bf16 %v3463_v37, %v3462_v8  ;;  %v3158_v4 = vadd.f32 %v3157_v44, %v2426_v29  ;;  %v3159_v54 = vpop.f32.mrb[45].mxu1 }
 0x453   : > { %v3160_v20 = vpop.f32.mrb[46].mxu1  ;;  %v2466_v54 = vpop.permute.xlu0 %2465 }
 0x454   : > { %v3400_v41 = vmul.f32 0.01, %v3158_v4  ;;  %v3161_v35 = vadd.f32 %v3160_v20, %v2431_v27  ;;  %v3162_v11 = vpop.f32.mrb[47].mxu1  ;;  %v2471_v20 = vpop.permute.xlu1 %2470 }
 0x456   : > { %v3401_v15 = vmul.f32 0.01, %v3161_v35  ;;  %3372 = vmatmul.mubr.bf16.gmra.mrb[152].mxu1 %v4404_v10  ;;  %v3464_v43 = vmax.f32 %v3158_v4, %v3400_v41 }
 0x457   : > { %4031 = vmatprep.mubr.msk.bf16.mxu1 %vm1992_vm4, %v4405_v51 }
 0x458   : > { %v3465_v60 = vmax.f32 %v3161_v35, %v3401_v15 }
 0x459   : > { %v3165_v63 = vpop.f32.mrb[48].mxu1 }
 0x45a   : > { %v5910_v22 = vpack.c.bf16 %v3465_v60, %v3464_v43  ;;  %v3166_v23 = vadd.f32 %v3165_v63, %v2436_v0  ;;  %v3167_v48 = vpop.f32.mrb[49].mxu1 }
 0x45b   : > { %v3168_v56 = vpop.f32.mrb[50].mxu1  ;;  %v5938_v48 = vpop.permute.xlu1 %2560 }
 0x45c   : > { %v3402_v29 = vmul.f32 0.01, %v3166_v23  ;;  %v3169_v27 = vadd.f32 %v3168_v56, %v2441_v36  ;;  %v3170_v12 = vpop.f32.mrb[51].mxu1 }
 0x45e   : > { %v3403_v40 = vmul.f32 0.01, %v3169_v27  ;;  %3380 = vmatmul.mubr.bf16.gmra.mrb[156].mxu1 %v4407_v45  ;;  %v3466_v18 = vmax.f32 %v3166_v23, %v3402_v29 }
 0x45f   : > { %4032 = vmatprep.mubr.msk.bf16.mxu1 %vm1992_vm4, %v4408_v46 }
 0x460   : > { %v3467_v39 = vmax.f32 %v3169_v27, %v3403_v40 }
 0x461   : > { %v3173_v53 = vpop.f32.mrb[52].mxu1 }
 0x462   : > { %v5923_v16 = vpack.c.bf16 %v3467_v39, %v3466_v18  ;;  %v3174_v3 = vadd.f32 %v3173_v53, %v2446_v38  ;;  %v3175_v26 = vpop.f32.mrb[53].mxu1  ;;  %v2481_v39 = vpop.permute.xlu1 %2480 }
 0x463   : > { %v3176_v59 = vpop.f32.mrb[54].mxu1 }
 0x464   : > { %v3404_v0 = vmul.f32 0.01, %v3174_v3  ;;  %v3177_v57 = vadd.f32 %v3176_v59, %v2451_v62  ;;  %v3178_v1 = vpop.f32.mrb[55].mxu1  ;;  %v5936_v62 = vpop.permute.xlu0 %2555 }
 0x466   : > { %v3405_v6 = vmul.f32 0.01, %v3177_v57  ;;  %3388 = vmatmul.mubr.bf16.gmra.mrb[160].mxu1 %v4410_v24  ;;  %v3468_v36 = vmax.f32 %v3174_v3, %v3404_v0 }
 0x468   : > { %v3469_v13 = vmax.f32 %v3177_v57, %v3405_v6  ;;  %v2476_v29 = vpop.permute.xlu0 %2475 }
 0x469   : > { %v3181_v47 = vpop.f32.mrb[56].mxu1 }
 0x46a   : > { %v5932_v7 = vpack.c.bf16 %v3469_v13, %v3468_v36  ;;  %v3182_v61 = vadd.f32 %v3181_v47, %v2456_v55  ;;  %v3183_v28 = vpop.f32.mrb[57].mxu1 }
 0x46b   : > { %v3184_v8 = vpop.f32.mrb[58].mxu1 }
 0x46c   : > { %v3406_v37 = vmul.f32 0.01, %v3182_v61  ;;  %v3185_v44 = vadd.f32 %v3184_v8, %v2461_v5  ;;  %v3186_v4 = vpop.f32.mrb[59].mxu1 }
 0x46e   : > { %v3407_v10 = vmul.f32 0.01, %v3185_v44  ;;  %v3470_v51 = vmax.f32 %v3182_v61, %v3406_v37 }
 0x470   : > { %v3471_v41 = vmax.f32 %v3185_v44, %v3407_v10 }
 0x471   : > { %v3189_v35 = vpop.f32.mrb[60].mxu1 }
 0x472   : > { %v5934_v11 = vpack.c.bf16 %v3471_v41, %v3470_v51  ;;  %v3190_v38 = vadd.f32 %v3189_v35, %v2466_v54  ;;  %v3191_v15 = vpop.f32.mrb[61].mxu1 }
 0x473   : > { %v3192_v43 = vpop.f32.mrb[62].mxu1 }
 0x474   : > { %v3408_v60 = vmul.f32 0.01, %v3190_v38  ;;  %v3193_v63 = vadd.f32 %v3192_v43, %v2471_v20  ;;  %v3194_v23 = vpop.f32.mrb[63].mxu1 }
 0x476   : > { %v3409_v45 = vmul.f32 0.01, %v3193_v63  ;;  %v3472_v56 = vmax.f32 %v3190_v38, %v3408_v60 }
 0x478   : > { %v3473_v46 = vmax.f32 %v3193_v63, %v3409_v45 }
 0x479   : > { %v3197_v27 = vpop.f32.mrb[64].mxu1 }
 0x47a   : > { %v5940_v12 = vpack.c.bf16 %v3473_v46, %v3472_v56  ;;  %v3198_v40 = vadd.f32 %v3197_v27, %v2476_v29  ;;  %v3199_v18 = vpop.f32.mrb[65].mxu1 }
 0x47b   : > { %v3200_v55 = vpop.f32.mrb[66].mxu1 }
 0x47c   : > { %v3410_v53 = vmul.f32 0.01, %v3198_v40  ;;  %v3201_v3 = vadd.f32 %v3200_v55, %v2481_v39  ;;  %v3202_v26 = vpop.f32.mrb[67].mxu1 }
 0x47e   : > { %v3411_v24 = vmul.f32 0.01, %v3201_v3  ;;  %v3474_v5 = vmax.f32 %v3198_v40, %v3410_v53 }
 0x480   : > { %v3475_v59 = vmax.f32 %v3201_v3, %v3411_v24  ;;  %v5955_v3 = vpop.permute.xlu0 %2645  ;;  %v5957_v24 = vpop.permute.xlu1 %2650 }
 0x481   : > { %v3205_v0 = vpop.f32.mrb[68].mxu1 }
 0x482   : > { %v5942_v57 = vpack.c.bf16 %v3475_v59, %v3474_v5  ;;  %v3206_v1 = vadd.f32 %v3205_v0, %v5833_v17  ;;  %v3207_v6 = vpop.f32.mrb[69].mxu1 }
 0x483   : > { %v3208_v36 = vpop.f32.mrb[70].mxu1 }
 0x484   : > { %v3412_v13 = vmul.f32 0.01, %v3206_v1  ;;  %v3209_v47 = vadd.f32 %v3208_v36, %v5836_v32  ;;  %v3210_v61 = vpop.f32.mrb[71].mxu1 }
 0x486   : > { %v3413_v28 = vmul.f32 0.01, %v3209_v47  ;;  %v3476_v8 = vmax.f32 %v3206_v1, %v3412_v13  ;;  %v2566_v13 = vpop.permute.xlu0 %2565 }
 0x488   : > { %v3477_v37 = vmax.f32 %v3209_v47, %v3413_v28  ;;  %v2571_v47 = vpop.permute.xlu1 %2570 }
 0x489   : > { %v3213_v44 = vpop.f32.mrb[72].mxu1 }
 0x48a   : > { %v3214_v4 = vadd.f32 %v3213_v44, %v5848_v50  ;;  %v3215_v54 = vpop.f32.mrb[73].mxu1  ;;  %v3532_v10 = vpack.c.bf16 %v3477_v37, %v3476_v8 }
 0x48b   : > { %v3216_v20 = vpop.f32.mrb[74].mxu1 }
 0x48c   : > { %v3414_v51 = vmul.f32 0.01, %v3214_v4  ;;  %v3217_v41 = vadd.f32 %v3216_v20, %v5853_v14  ;;  %4113 = vmatprep.subr.bf16.mxu0 %v3532_v10  ;;  %v3218_v17 = vpop.f32.mrb[75].mxu1 }
 0x48d   : > { %4114 = vmatpush3.bf16.msra.mxu0 %v5888_v31 }
 0x48e   : > { %v3415_v35 = vmul.f32 0.01, %v3217_v41  ;;  %v3478_v38 = vmax.f32 %v3214_v4, %v3414_v51  ;;  %v5963_v4 = vpop.permute.xlu0 %2655  ;;  %v5966_v51 = vpop.permute.xlu1 %2660 }
 0x490   : > { %v3479_v32 = vmax.f32 %v3217_v41, %v3415_v35 }
 0x491   : > { %v3221_v15 = vpop.f32.mrb[76].mxu1 }
 0x492   : > { %v3222_v43 = vadd.f32 %v3221_v15, %v5862_v21  ;;  %v3223_v60 = vpop.f32.mrb[77].mxu1  ;;  %v3533_v63 = vpack.c.bf16 %v3479_v32, %v3478_v38  ;;  %v2576_v35 = vpop.permute.xlu0 %2575 }
 0x493   : > { %v3224_v23 = vpop.f32.mrb[78].mxu1 }
 0x494   : > { %v3416_v50 = vmul.f32 0.01, %v3222_v43  ;;  %v3225_v45 = vadd.f32 %v3224_v23, %v5865_v33  ;;  %4115 = vmatprep.subr.bf16.mxu0 %v3533_v63  ;;  %v3226_v56 = vpop.f32.mrb[79].mxu1 }
 0x495   : > { %4116 = vmatpush3.bf16.msra.mxu0 %v5901_v52 }
 0x496   : > { %v3417_v14 = vmul.f32 0.01, %v3225_v45  ;;  %v3480_v46 = vmax.f32 %v3222_v43, %v3416_v50  ;;  %v2581_v43 = vpop.permute.xlu1 %2580 }
 0x498   : > { %v3481_v29 = vmax.f32 %v3225_v45, %v3417_v14 }
 0x499   : > { %v3229_v31 = vpop.f32.mrb[80].mxu1 }
 0x49a   : > { %v3230_v27 = vadd.f32 %v3229_v31, %v5877_v19  ;;  %v3231_v40 = vpop.f32.mrb[81].mxu1  ;;  %v3534_v18 = vpack.c.bf16 %v3481_v29, %v3480_v46  ;;  %v5974_v14 = vpop.permute.xlu1 %2670 }
 0x49b   : > { %v3232_v39 = vpop.f32.mrb[82].mxu1 }
 0x49c   : > { %v3418_v21 = vmul.f32 0.01, %v3230_v27  ;;  %v3233_v55 = vadd.f32 %v3232_v39, %v5882_v2  ;;  %4117 = vmatprep.subr.bf16.mxu0 %v3534_v18  ;;  %v3234_v53 = vpop.f32.mrb[83].mxu1 }
 0x49d   : > { %4118 = vmatpush3.bf16.msra.mxu0 %v5910_v22 }
 0x49e   : > { %v3419_v33 = vmul.f32 0.01, %v3233_v55  ;;  %v3482_v52 = vmax.f32 %v3230_v27, %v3418_v21  ;;  %v2591_v21 = vpop.permute.xlu1 %2590 }
 0x4a0   : > { %v3483_v26 = vmax.f32 %v3233_v55, %v3419_v33 }
 0x4a1   : > { %v3237_v5 = vpop.f32.mrb[84].mxu1 }
 0x4a2   : > { %v3238_v19 = vadd.f32 %v3237_v5, %v5896_v9  ;;  %v3239_v59 = vpop.f32.mrb[85].mxu1  ;;  %v3535_v0 = vpack.c.bf16 %v3483_v26, %v3482_v52 }
 0x4a3   : > { %v3240_v1 = vpop.f32.mrb[86].mxu1 }
 0x4a4   : > { %v3420_v6 = vmul.f32 0.01, %v3238_v19  ;;  %v3241_v2 = vadd.f32 %v3240_v1, %v5899_v34  ;;  %4119 = vmatprep.subr.bf16.mxu0 %v3535_v0  ;;  %v3242_v36 = vpop.f32.mrb[87].mxu1 }
 0x4a5   : > { %4120 = vmatpush3.bf16.msra.mxu0 %v5923_v16 }
 0x4a6   : > { %v3421_v22 = vmul.f32 0.01, %v3241_v2  ;;  %v3484_v61 = vmax.f32 %v3238_v19, %v3420_v6  ;;  %v4416_v6 = vld [vmem:[%s6076_s7 + $0xc] ss:$16 sps:$4 sm:$0xff]  }
 0x4a8   : > { %v3485_v28 = vmax.f32 %v3241_v2, %v3421_v22 }
 0x4a9   : > { %v3245_v8 = vpop.f32.mrb[88].mxu1 }
 0x4aa   : > { %v3246_v37 = vadd.f32 %v3245_v8, %v5915_v25  ;;  %v3247_v44 = vpop.f32.mrb[89].mxu1  ;;  %v3536_v9 = vpack.c.bf16 %v3485_v28, %v3484_v61 }
 0x4ab   : > { %v3248_v54 = vpop.f32.mrb[90].mxu1 }
 0x4ac   : > { %v3422_v10 = vmul.f32 0.01, %v3246_v37  ;;  %v3249_v34 = vadd.f32 %v3248_v54, %v5920_v42  ;;  %4121 = vmatprep.subr.bf16.mxu0 %v3536_v9  ;;  %v3250_v20 = vpop.f32.mrb[91].mxu1 }
 0x4ad   : > { %4122 = vmatpush3.bf16.msra.mxu0 %v5932_v7  ;;  %v5972_v7 = vpop.permute.xlu0 %2665 }
 0x4ae   : > { %v3423_v16 = vmul.f32 0.01, %v3249_v34  ;;  %v3486_v41 = vmax.f32 %v3246_v37, %v3422_v10 }
 0x4b0   : > { %v3487_v17 = vmax.f32 %v3249_v34, %v3423_v16 }
 0x4b1   : > { %v3253_v38 = vpop.f32.mrb[92].mxu1  ;;  %v2586_v39 = vpop.permute.xlu0 %2585 }
 0x4b2   : > { %v3254_v25 = vadd.f32 %v3253_v38, %v5928_v30  ;;  %v3255_v32 = vpop.f32.mrb[93].mxu1  ;;  %v3537_v15 = vpack.c.bf16 %v3487_v17, %v3486_v41 }
 0x4b3   : > { %v3256_v60 = vpop.f32.mrb[94].mxu1 }
 0x4b4   : > { %v3424_v63 = vmul.f32 0.01, %v3254_v25  ;;  %v3257_v42 = vadd.f32 %v3256_v60, %v5930_v49  ;;  %4123 = vmatprep.subr.bf16.mxu0 %v3537_v15  ;;  %v3258_v23 = vpop.f32.mrb[95].mxu1 }
 0x4b5   : > { %4124 = vmatpush3.bf16.msra.mxu0 %v5934_v11 }
 0x4b6   : > { %v3425_v50 = vmul.f32 0.01, %v3257_v42  ;;  %v3488_v45 = vmax.f32 %v3254_v25, %v3424_v63 }
 0x4b8   : > { %v3489_v56 = vmax.f32 %v3257_v42, %v3425_v50 }
 0x4b9   : > { %v3261_v46 = vpop.f32.mrb[96].mxu1 }
 0x4ba   : > { %v3262_v30 = vadd.f32 %v3261_v46, %v5936_v62  ;;  %v3263_v29 = vpop.f32.mrb[97].mxu1  ;;  %v3538_v31 = vpack.c.bf16 %v3489_v56, %v3488_v45  ;;  %v5979_v62 = vpop.permute.xlu0 %2675 }
 0x4bb   : > { %v3264_v27 = vpop.f32.mrb[98].mxu1 }
 0x4bc   : > { %v3426_v40 = vmul.f32 0.01, %v3262_v30  ;;  %v3265_v49 = vadd.f32 %v3264_v27, %v5938_v48  ;;  %4125 = vmatprep.subr.bf16.mxu0 %v3538_v31  ;;  %v3266_v18 = vpop.f32.mrb[99].mxu1  ;;  %v4411_v48 = vld [vmem:[%s6076_s7] ss:$16 sps:$4 sm:$0xff]  }
 0x4bd   : > { %4126 = vmatpush3.bf16.msra.mxu0 %v5940_v12  ;;  %v5984_v12 = vpop.permute.xlu1 %2680 }
 0x4be   : > { %v3427_v11 = vmul.f32 0.01, %v3265_v49  ;;  %v3490_v55 = vmax.f32 %v3262_v30, %v3426_v40  ;;  %v2596_v22 = vpop.permute.xlu0 %2595 }
 0x4c0   : > { %v3491_v53 = vmax.f32 %v3265_v49, %v3427_v11 }
 0x4c1   : > { %v3269_v33 = vpop.f32.mrb[100].mxu1  ;;  %v2601_v37 = vpop.permute.xlu1 %2600 }
 0x4c2   : > { %v3270_v52 = vadd.f32 %v3269_v33, %v2566_v13  ;;  %v3271_v26 = vpop.f32.mrb[101].mxu1  ;;  %v3539_v5 = vpack.c.bf16 %v3491_v53, %v3490_v55  ;;  %v5992_v34 = vpop.permute.xlu0 %2685 }
 0x4c3   : > { %v3272_v19 = vpop.f32.mrb[102].mxu1 }
 0x4c4   : > { %v3428_v59 = vmul.f32 0.01, %v3270_v52  ;;  %v3273_v0 = vadd.f32 %v3272_v19, %v2571_v47  ;;  %4127 = vmatprep.subr.bf16.mxu0 %v3539_v5  ;;  %v3274_v1 = vpop.f32.mrb[103].mxu1 }
 0x4c5   : > { %4128 = vmatpush3.bf16.msra.mxu0 %v5942_v57  ;;  %v5994_v41 = vpop.permute.xlu1 %2690 }
 0x4c6   : > { %v3429_v2 = vmul.f32 0.01, %v3273_v0  ;;  %v3492_v36 = vmax.f32 %v3270_v52, %v3428_v59  ;;  %v2606_v42 = vpop.permute.xlu0 %2605 }
 0x4c8   : > { %v3493_v13 = vmax.f32 %v3273_v0, %v3429_v2  ;;  %3625 = vmatmul.mubr.bf16.vlgmr.msra.gmra.mrb[136].mxu0 %v4411_v48 }
 0x4c9   : > { %v3277_v47 = vpop.f32.mrb[104].mxu1  ;;  %3665 = vmatprep.mubr.bf16.mxu0 %v4416_v6 }
 0x4ca   : > { %v5990_v61 = vpack.c.bf16 %v3493_v13, %v3492_v36  ;;  %v3278_v28 = vadd.f32 %v3277_v47, %v2576_v35  ;;  %v3279_v8 = vpop.f32.mrb[105].mxu1  ;;  %v6000_v31 = vpop.permute.xlu0 %2695 }
 0x4cb   : > { %v3280_v44 = vpop.f32.mrb[106].mxu1 }
 0x4cc   : > { %v3430_v9 = vmul.f32 0.01, %v3278_v28  ;;  %v3281_v54 = vadd.f32 %v3280_v44, %v2581_v43  ;;  %v3282_v57 = vpop.f32.mrb[107].mxu1  ;;  %v2611_v43 = vpop.permute.xlu1 %2610 }
 0x4ce   : > { %v3431_v10 = vmul.f32 0.01, %v3281_v54  ;;  %v3494_v20 = vmax.f32 %v3278_v28, %v3430_v9  ;;  %v2616_v53 = vpop.permute.xlu0 %2615 }
 0x4d0   : > { %v3495_v16 = vmax.f32 %v3281_v54, %v3431_v10 }
 0x4d1   : > { %v3285_v17 = vpop.f32.mrb[108].mxu1 }
 0x4d2   : > { %v5996_v38 = vpack.c.bf16 %v3495_v16, %v3494_v20  ;;  %v3286_v25 = vadd.f32 %v3285_v17, %v2586_v39  ;;  %v3287_v32 = vpop.f32.mrb[109].mxu1  ;;  %v6002_v39 = vpop.permute.xlu1 %2700 }
 0x4d3   : > { %v3288_v15 = vpop.f32.mrb[110].mxu1  ;;  %v6006_v2 = vpop.permute.xlu0 %2705 }
 0x4d4   : > { %v3432_v35 = vmul.f32 0.01, %v3286_v25  ;;  %v3289_v60 = vadd.f32 %v3288_v15, %v2591_v21  ;;  %v3290_v63 = vpop.f32.mrb[111].mxu1 }
 0x4d6   : > { %v3433_v23 = vmul.f32 0.01, %v3289_v60  ;;  %v3496_v50 = vmax.f32 %v3286_v25, %v3432_v35  ;;  %v2621_v19 = vpop.permute.xlu1 %2620 }
 0x4d7   : > { %v2626_v10 = vpop.permute.xlu0 %2625 }
 0x4d8   : > { %v3497_v45 = vmax.f32 %v3289_v60, %v3433_v23 }
 0x4d9   : > { %v3293_v56 = vpop.f32.mrb[112].mxu1 }
 0x4da   : > { %v5998_v46 = vpack.c.bf16 %v3497_v45, %v3496_v50  ;;  %v3294_v30 = vadd.f32 %v3293_v56, %v2596_v22  ;;  %v3295_v29 = vpop.f32.mrb[113].mxu1  ;;  %v6008_v22 = vpop.permute.xlu1 %2710 }
 0x4db   : > { %v3296_v27 = vpop.f32.mrb[114].mxu1  ;;  %v6014_v63 = vpop.permute.xlu0 %2715 }
 0x4dc   : > { %v3434_v40 = vmul.f32 0.01, %v3294_v30  ;;  %v3297_v49 = vadd.f32 %v3296_v27, %v2601_v37  ;;  %v3298_v18 = vpop.f32.mrb[115].mxu1 }
 0x4de   : > { %v3435_v11 = vmul.f32 0.01, %v3297_v49  ;;  %v3498_v21 = vmax.f32 %v3294_v30, %v3434_v40  ;;  %v2631_v16 = vpop.permute.xlu1 %2630 }
 0x4df   : > { %v2636_v27 = vpop.permute.xlu0 %2635 }
 0x4e0   : > { %v3499_v55 = vmax.f32 %v3297_v49, %v3435_v11 }
 0x4e1   : > { %v3301_v33 = vpop.f32.mrb[116].mxu1 }
 0x4e2   : > { %v6004_v52 = vpack.c.bf16 %v3499_v55, %v3498_v21  ;;  %v3302_v26 = vadd.f32 %v3301_v33, %v2606_v42  ;;  %v3303_v5 = vpop.f32.mrb[117].mxu1  ;;  %v6016_v45 = vpop.permute.xlu1 %2720 }
 0x4e3   : > { %v3304_v59 = vpop.f32.mrb[118].mxu1 }
 0x4e4   : > { %v3436_v0 = vmul.f32 0.01, %v3302_v26  ;;  %v3305_v48 = vadd.f32 %v3304_v59, %v2611_v43  ;;  %v3306_v1 = vpop.f32.mrb[119].mxu1 }
 0x4e6   : > { %v3437_v6 = vmul.f32 0.01, %v3305_v48  ;;  %v3500_v36 = vmax.f32 %v3302_v26, %v3436_v0  ;;  %v2641_v21 = vpop.permute.xlu1 %2640 }
 0x4e8   : > { %v3501_v13 = vmax.f32 %v3305_v48, %v3437_v6 }
 0x4e9   : > { %v3309_v47 = vpop.f32.mrb[120].mxu1 }
 0x4ea   : > { %v6010_v28 = vpack.c.bf16 %v3501_v13, %v3500_v36  ;;  %v3310_v8 = vadd.f32 %v3309_v47, %v2616_v53  ;;  %v3311_v37 = vpop.f32.mrb[121].mxu1 }
 0x4eb   : > { %v3312_v44 = vpop.f32.mrb[122].mxu1 }
 0x4ec   : > { %v3438_v9 = vmul.f32 0.01, %v3310_v8  ;;  %v3313_v54 = vadd.f32 %v3312_v44, %v2621_v19  ;;  %v3314_v57 = vpop.f32.mrb[123].mxu1 }
 0x4ee   : > { %v3439_v20 = vmul.f32 0.01, %v3313_v54  ;;  %v3502_v17 = vmax.f32 %v3310_v8, %v3438_v9 }
 0x4f0   : > { %v3503_v25 = vmax.f32 %v3313_v54, %v3439_v20 }
 0x4f1   : > { %v3317_v32 = vpop.f32.mrb[124].mxu1 }
 0x4f2   : > { %v6012_v15 = vpack.c.bf16 %v3503_v25, %v3502_v17  ;;  %v3318_v35 = vadd.f32 %v3317_v32, %v2626_v10  ;;  %v3319_v60 = vpop.f32.mrb[125].mxu1 }
 0x4f3   : > { %v3320_v42 = vpop.f32.mrb[126].mxu1 }
 0x4f4   : > { %v3440_v23 = vmul.f32 0.01, %v3318_v35  ;;  %v3321_v43 = vadd.f32 %v3320_v42, %v2631_v16  ;;  %v3322_v50 = vpop.f32.mrb[127].mxu1 }
 0x4f6   : > { %v3441_v56 = vmul.f32 0.01, %v3321_v43  ;;  %v3504_v30 = vmax.f32 %v3318_v35, %v3440_v23 }
 0x4f8   : > { %v3505_v29 = vmax.f32 %v3321_v43, %v3441_v56 }
 0x4f9   : > { %v3325_v40 = vpop.f32.mrb[128].mxu1 }
 0x4fa   : > { %v6018_v49 = vpack.c.bf16 %v3505_v29, %v3504_v30  ;;  %v3326_v18 = vadd.f32 %v3325_v40, %v2636_v27  ;;  %v3327_v11 = vpop.f32.mrb[129].mxu1 }
 0x4fb   : > { %v3328_v55 = vpop.f32.mrb[130].mxu1 }
 0x4fc   : > { %v3442_v53 = vmul.f32 0.01, %v3326_v18  ;;  %v3329_v33 = vadd.f32 %v3328_v55, %v2641_v21  ;;  %v3330_v26 = vpop.f32.mrb[131].mxu1 }
 0x4fe   : > { %v3443_v5 = vmul.f32 0.01, %v3329_v33  ;;  %v3506_v19 = vmax.f32 %v3326_v18, %v3442_v53 }
 0x500   : > { %v3507_v59 = vmax.f32 %v3329_v33, %v3443_v5 }
 0x501   : > { %v3333_v0 = vpop.f32.mrb[132].mxu1 }
 0x502   : > { %v6020_v48 = vpack.c.bf16 %v3507_v59, %v3506_v19  ;;  %v3334_v1 = vadd.f32 %v3333_v0, %v5955_v3  ;;  %v3335_v6 = vpop.f32.mrb[133].mxu1 }
 0x503   : > { %v3336_v36 = vpop.f32.mrb[134].mxu1 }
 0x504   : > { %v3444_v13 = vmul.f32 0.01, %v3334_v1  ;;  %v3337_v47 = vadd.f32 %v3336_v36, %v5957_v24  ;;  %v3338_v8 = vpop.f32.mrb[135].mxu1 }
 0x506   : > { %v3445_v37 = vmul.f32 0.01, %v3337_v47  ;;  %v3508_v44 = vmax.f32 %v3334_v1, %v3444_v13 }
 0x508   : > { %v3509_v9 = vmax.f32 %v3337_v47, %v3445_v37 }
 0x509   : > { %v3341_v54 = vpop.f32.mrb[136].mxu1 }
 0x50a   : > { %v3342_v57 = vadd.f32 %v3341_v54, %v5963_v4  ;;  %v3343_v10 = vpop.f32.mrb[137].mxu1  ;;  %v3548_v20 = vpack.c.bf16 %v3509_v9, %v3508_v44 }
 0x50b   : > { %v3344_v16 = vpop.f32.mrb[138].mxu1 }
 0x50c   : > { %v3446_v17 = vmul.f32 0.01, %v3342_v57  ;;  %v3345_v25 = vadd.f32 %v3344_v16, %v5966_v51  ;;  %4135 = vmatprep.subr.bf16.mxu0 %v3548_v20  ;;  %v3346_v3 = vpop.f32.mrb[139].mxu1 }
 0x50d   : > { %4136 = vmatpush3.bf16.msra.mxu0 %v5990_v61 }
 0x50e   : > { %v3447_v32 = vmul.f32 0.01, %v3345_v25  ;;  %v3510_v35 = vmax.f32 %v3342_v57, %v3446_v17 }
 0x510   : > { %v3511_v24 = vmax.f32 %v3345_v25, %v3447_v32 }
 0x511   : > { %v3349_v60 = vpop.f32.mrb[140].mxu1 }
 0x512   : > { %v3350_v42 = vadd.f32 %v3349_v60, %v5972_v7  ;;  %v3351_v23 = vpop.f32.mrb[141].mxu1  ;;  %v3549_v43 = vpack.c.bf16 %v3511_v24, %v3510_v35 }
 0x513   : > { %v3352_v50 = vpop.f32.mrb[142].mxu1 }
 0x514   : > { %v3448_v4 = vmul.f32 0.01, %v3350_v42  ;;  %v3353_v56 = vadd.f32 %v3352_v50, %v5974_v14  ;;  %4137 = vmatprep.subr.bf16.mxu0 %v3549_v43  ;;  %v3354_v30 = vpop.f32.mrb[143].mxu1 }
 0x515   : > { %4138 = vmatpush3.bf16.msra.mxu0 %v5996_v38 }
 0x516   : > { %v3449_v51 = vmul.f32 0.01, %v3353_v56  ;;  %v3512_v29 = vmax.f32 %v3350_v42, %v3448_v4 }
 0x518   : > { %v3513_v27 = vmax.f32 %v3353_v56, %v3449_v51  ;;  %v4414_v51 = vld [vmem:[%s6076_s7 + $0x8] ss:$16 sps:$4 sm:$0xff]  }
 0x519   : > { %v3357_v61 = vpop.f32.mrb[144].mxu1 }
 0x51a   : > { %v3358_v40 = vadd.f32 %v3357_v61, %v5979_v62  ;;  %v3359_v18 = vpop.f32.mrb[145].mxu1  ;;  %v3550_v11 = vpack.c.bf16 %v3513_v27, %v3512_v29 }
 0x51b   : > { %v3360_v21 = vpop.f32.mrb[146].mxu1 }
 0x51c   : > { %v3450_v7 = vmul.f32 0.01, %v3358_v40  ;;  %v3361_v55 = vadd.f32 %v3360_v21, %v5984_v12  ;;  %4139 = vmatprep.subr.bf16.mxu0 %v3550_v11  ;;  %v3362_v53 = vpop.f32.mrb[147].mxu1  ;;  %v3565_v11 = vpop.permute.xlu0 %3564 }
 0x51d   : > { %4140 = vmatpush3.bf16.msra.mxu0 %v5998_v46 }
 0x51e   : > { %v3451_v14 = vmul.f32 0.01, %v3361_v55  ;;  %v3514_v33 = vmax.f32 %v3358_v40, %v3450_v7 }
 0x520   : > { %v3515_v26 = vmax.f32 %v3361_v55, %v3451_v14  ;;  %v3570_v14 = vpop.permute.xlu1 %3569 }
 0x521   : > { %v3365_v38 = vpop.f32.mrb[148].mxu1 }
 0x522   : > { %v3366_v5 = vadd.f32 %v3365_v38, %v5992_v34  ;;  %v3367_v19 = vpop.f32.mrb[149].mxu1  ;;  %v3551_v59 = vpack.c.bf16 %v3515_v26, %v3514_v33 }
 0x523   : > { %v3368_v0 = vpop.f32.mrb[150].mxu1 }
 0x524   : > { %v3452_v62 = vmul.f32 0.01, %v3366_v5  ;;  %v3369_v1 = vadd.f32 %v3368_v0, %v5994_v41  ;;  %4141 = vmatprep.subr.bf16.mxu0 %v3551_v59  ;;  %v3370_v6 = vpop.f32.mrb[151].mxu1 }
 0x525   : > { %4142 = vmatpush3.bf16.msra.mxu0 %v6004_v52 }
 0x526   : > { %v3453_v12 = vmul.f32 0.01, %v3369_v1  ;;  %v3516_v36 = vmax.f32 %v3366_v5, %v3452_v62 }
 0x528   : > { %v3517_v13 = vmax.f32 %v3369_v1, %v3453_v12 }
 0x529   : > { %v3373_v46 = vpop.f32.mrb[152].mxu1 }
 0x52a   : > { %v3374_v47 = vadd.f32 %v3373_v46, %v6000_v31  ;;  %v3375_v8 = vpop.f32.mrb[153].mxu1  ;;  %v3552_v37 = vpack.c.bf16 %v3517_v13, %v3516_v36 }
 0x52b   : > { %v3376_v44 = vpop.f32.mrb[154].mxu1 }
 0x52c   : > { %v3454_v34 = vmul.f32 0.01, %v3374_v47  ;;  %v3377_v9 = vadd.f32 %v3376_v44, %v6002_v39  ;;  %4143 = vmatprep.subr.bf16.mxu0 %v3552_v37  ;;  %v3378_v54 = vpop.f32.mrb[155].mxu1 }
 0x52d   : > { %4144 = vmatpush3.bf16.msra.mxu0 %v6010_v28 }
 0x52e   : > { %v3455_v41 = vmul.f32 0.01, %v3377_v9  ;;  %v3518_v57 = vmax.f32 %v3374_v47, %v3454_v34 }
 0x530   : > { %v3519_v10 = vmax.f32 %v3377_v9, %v3455_v41 }
 0x531   : > { %v3381_v52 = vpop.f32.mrb[156].mxu1 }
 0x532   : > { %v3382_v20 = vadd.f32 %v3381_v52, %v6006_v2  ;;  %v3383_v16 = vpop.f32.mrb[157].mxu1  ;;  %v3553_v17 = vpack.c.bf16 %v3519_v10, %v3518_v57 }
 0x533   : > { %v3384_v25 = vpop.f32.mrb[158].mxu1 }
 0x534   : > { %v3456_v31 = vmul.f32 0.01, %v3382_v20  ;;  %v3385_v3 = vadd.f32 %v3384_v25, %v6008_v22  ;;  %4145 = vmatprep.subr.bf16.mxu0 %v3553_v17  ;;  %v3386_v32 = vpop.f32.mrb[159].mxu1 }
 0x535   : > { %4146 = vmatpush3.bf16.msra.mxu0 %v6012_v15 }
 0x536   : > { %v3457_v39 = vmul.f32 0.01, %v3385_v3  ;;  %v3520_v35 = vmax.f32 %v3382_v20, %v3456_v31 }
 0x538   : > { %v3521_v24 = vmax.f32 %v3385_v3, %v3457_v39 }
 0x539   : > { %v3389_v28 = vpop.f32.mrb[160].mxu1 }
 0x53a   : > { %v3390_v60 = vadd.f32 %v3389_v28, %v6014_v63  ;;  %v3391_v42 = vpop.f32.mrb[161].mxu1  ;;  %v3554_v23 = vpack.c.bf16 %v3521_v24, %v3520_v35 }
 0x53b   : > { %v3392_v43 = vpop.f32.mrb[162].mxu1 }
 0x53c   : > { %v3458_v2 = vmul.f32 0.01, %v3390_v60  ;;  %v3393_v50 = vadd.f32 %v3392_v43, %v6016_v45  ;;  %4147 = vmatprep.subr.bf16.mxu0 %v3554_v23  ;;  %v3394_v4 = vpop.f32.mrb[163].mxu1 }
 0x53d   : > { %4148 = vmatpush3.bf16.msra.mxu0 %v6018_v49  ;;  %v588_v49 = vmul.f32 1.442695, %v4805_v58 }
 0x53e   : > { %v3459_v22 = vmul.f32 0.01, %v3393_v50  ;;  %v3522_v56 = vmax.f32 %v3390_v60, %v3458_v2 }
 0x53f   : > { %4447 = vpow2.f32 %v588_v49 }
 0x540   : > { %v3523_v30 = vmax.f32 %v3393_v50, %v3459_v22 }
 0x542   : > { %v3555_v15 = vpack.c.bf16 %v3523_v30, %v3522_v56 }
 0x544   : > { %4149 = vmatprep.subr.bf16.mxu0 %v3555_v15 }
 0x545   : > { %4150 = vmatpush3.bf16.msra.mxu0 %v6020_v48 }
 0x548   : > { %3666 = vmatmul.mubr.bf16.vlgmr.msra.gmra.mrb[140].mxu0 %v4414_v51 }
 0x549   : > { %v4448_v59 = vpop.eup %4447 }
 0x59b   : > { %v4129_v63 = vpop.f32.mrb[136].mxu0 }
 0x59c   : > { %v4130_v29 = vpop.f32.mrb[137].mxu0 }
 0x59d   : > { %v4131_v27 = vadd.f32 %v4130_v29, %v4129_v63  ;;  %v4132_v45 = vpop.f32.mrb[138].mxu0 }
 0x59e   : > { %v4133_v61 = vpop.f32.mrb[139].mxu0 }
 0x59f   : > { %v4134_v40 = vadd.f32 %v4133_v61, %v4132_v45  ;;  %v3627_v7 = vadd.f32 %v4131_v27, %v3565_v11 }
 0x5a1   : > { %v3630_v48 = vadd.f32 %v4134_v40, %v3570_v14 }
 0x61b   : > { %v4151_v18 = vpop.f32.mrb[140].mxu0 }
 0x61c   : > { %v4152_v21 = vpop.f32.mrb[141].mxu0 }
 0x61d   : > { %v4153_v55 = vadd.f32 %v4152_v21, %v4151_v18  ;;  %v4154_v53 = vpop.f32.mrb[142].mxu0 }
 0x61e   : > { %v4155_v33 = vpop.f32.mrb[143].mxu0 }
 0x61f   : > { %v3668_v26 = vadd.f32 %v4153_v55, %v3627_v7  ;;  %v4156_v38 = vadd.f32 %v4155_v33, %v4154_v53 }
 0x621   : > { %v3674_v5 = vmax.f32 %v3668_v26, -0.5  ;;  %v3671_v19 = vadd.f32 %v4156_v38, %v3630_v48 }
 0x623   : > { %v3676_v0 = vadd.f32 1.0, %v3674_v5  ;;  %v3675_v58 = vmax.f32 %v3671_v19, -0.5 }
 0x625   : > { %v3678_v62 = vmul.f32 %v4448_v59, %v3676_v0  ;;  %v3677_v1 = vadd.f32 1.0, %v3675_v58  ;;  %3690 = sbr.rel (!%p4554_p5) target bundleno = 1588 (0x634), region = 98 }
 0x627   : > { %v4037_v6 = vadd.f32 -1.0, %v3678_v62  ;;  %v3679_v12 = vmul.f32 %v4448_v59, %v3677_v1 }
 0x629   : > { %3682 = vst [vmem:[%s456_s26] sm:$0xff] %v4037_v6  ;;  %v4038_v36 = vadd.f32 -1.0, %v3679_v12 }
 0x62b   : > { %3683 = vst [vmem:[%s456_s26 + $0x8] sm:$0xff] %v4038_v36 }
 0x630   : > { %v3722_v13 = vld [vmem:[%s456_s26] sm:$0xff] }
 0x631   : > { %3723 = vst [vmem:[%s3692_s27] sm:$0xff] %v3722_v13 }
 0x632   : > { %v3724_v46 = vld [vmem:[%s456_s26 + $0x8] sm:$0xff] }
 0x633   : > { %3725 = vst [vmem:[%s3692_s27 + $0x10] sm:$0xff] %v3724_v46 }
 0x634 PF: > { %p16_p10 = scmp.ge.s32.totalorder %s4541_s13, 4   ;;  %s6080_s30 = smov %s4467_s10 }
 0x635   : > { %s6081_s10 = smov %s4552_s16  ;;  %s6082_s11 = smov %s4541_s13 }
 0x636   :  { %18 = sbr.rel (!%p16_p10) target bundleno = 2 (0x2), region = 167 }

</bundles_post_ra>
